<compile_context>
chip_gen: v6e
topology: v6e:2x2x1
jax: 0.10.0
libtpu: 0.0.40
codegen_flags: <defaults>
</compile_context>

<pallas_src>
import functools

import jax
import jax.numpy as jnp
from jax.experimental import pallas as pl
from jax.experimental.pallas import tpu as pltpu


def _sepconv_kernel(x_ref, dw1_ref, pw1_ref, s1_ref, b1_ref,
                    dw2_ref, pw2_ref, s2_ref, b2_ref,
                    o_ref, ypad_ref,
                    *, k, stride, padding, Ho1, Wo1, Ho2, Wo2, Cin, Cout):
    f32 = jnp.float32

    def depthwise(xp, dw_ref, s, Ho, Wo):
        # xp: (Hp, Wp, C) already ReLU'd and zero-padded. k*k shifted MACs on the VPU.
        C = xp.shape[-1]
        acc = jnp.zeros((Ho, Wo, C), f32)
        for dy in range(k):
            for dx in range(k):
                if s == 1:
                    win = xp[dy:dy + Ho, dx:dx + Wo, :]
                else:
                    # stride > 1: static strided slice of the in-register tile
                    win = jax.lax.slice(
                        xp, (dy, dx, 0),
                        (dy + s * (Ho - 1) + 1, dx + s * (Wo - 1) + 1, C),
                        (s, s, 1))
                acc = acc + win.astype(f32) * dw_ref[dy * k + dx].astype(f32)
        return acc

    # ---- block 1: ReLU -> depthwise (stride) -> 1x1 (MXU) -> BN ----
    x = jnp.maximum(x_ref[0].astype(f32), 0.0)            # fused ReLU (zero pad stays zero)
    y = depthwise(x, dw1_ref, stride, Ho1, Wo1)            # VPU shifted MACs
    y = jnp.dot(y.reshape(Ho1 * Wo1, Cin), pw1_ref[...].astype(f32),
                preferred_element_type=f32)                # pointwise conv on the MXU
    y = y * s1_ref[...] + b1_ref[...]                      # folded BatchNorm (inference)

    # ---- block 2: ReLU -> zero-pad into VMEM scratch -> depthwise (stride 1) -> 1x1 -> BN ----
    y = jnp.maximum(y, 0.0).reshape(Ho1, Wo1, Cin)
    ypad_ref[...] = jnp.zeros_like(ypad_ref)
    ypad_ref[padding:padding + Ho1, padding:padding + Wo1, :] = y
    y2 = depthwise(ypad_ref[...], dw2_ref, 1, Ho2, Wo2)
    y2 = jnp.dot(y2.reshape(Ho2 * Wo2, Cin), pw2_ref[...].astype(f32),
                 preferred_element_type=f32)
    y2 = y2 * s2_ref[...] + b2_ref[...]
    o_ref[...] = y2.reshape(1, Ho2, Wo2, Cout).astype(o_ref.dtype)


def sep_conv_forward(x_nchw, params, *, kernel_size, stride, padding, eps=1e-5):
    """Pallas forward of SepConv. x_nchw: (N, C_in, H, W) -> (N, C_out, Ho, Wo)."""
    k, s, p = kernel_size, stride, padding
    N, Cin, H, W = x_nchw.shape
    Cout = params["pw2"].shape[1]

    Ho1 = (H + 2 * p - k) // s + 1
    Wo1 = (W + 2 * p - k) // s + 1
    Ho2 = Ho1 + 2 * p - k + 1
    Wo2 = Wo1 + 2 * p - k + 1
    Hp1, Wp1 = H + 2 * p, W + 2 * p

    # NCHW -> NHWC so channels are lane-dense inside the kernel; zero-pad once here.
    x = jnp.transpose(x_nchw, (0, 2, 3, 1)).astype(jnp.float32)
    xpad = jnp.pad(x, ((0, 0), (p, p), (p, p), (0, 0)))

    # Fold inference BatchNorm into per-channel scale/bias (affine=False -> gamma=1, beta=0).
    s1 = (params["gamma1"] / jnp.sqrt(params["var1"] + eps)).astype(jnp.float32)
    b1 = (params["beta1"] - params["mean1"] * s1).astype(jnp.float32)
    s2 = (params["gamma2"] / jnp.sqrt(params["var2"] + eps)).astype(jnp.float32)
    b2 = (params["beta2"] - params["mean2"] * s2).astype(jnp.float32)

    dw1 = params["dw1"].reshape(k * k, 1, 1, Cin).astype(jnp.float32)
    dw2 = params["dw2"].reshape(k * k, 1, 1, Cin).astype(jnp.float32)
    pw1 = params["pw1"].astype(jnp.float32)
    pw2 = params["pw2"].astype(jnp.float32)

    kernel = functools.partial(
        _sepconv_kernel, k=k, stride=s, padding=p,
        Ho1=Ho1, Wo1=Wo1, Ho2=Ho2, Wo2=Wo2, Cin=Cin, Cout=Cout)

    out = pl.pallas_call(
        kernel,
        out_shape=jax.ShapeDtypeStruct((N, Ho2, Wo2, Cout), jnp.float32),
        grid=(N,),
        in_specs=[
            pl.BlockSpec((1, Hp1, Wp1, Cin), lambda n: (n, 0, 0, 0)),   # padded input image
            pl.BlockSpec((k * k, 1, 1, Cin), lambda n: (0, 0, 0, 0)),   # dw1
            pl.BlockSpec((Cin, Cin), lambda n: (0, 0)),                 # pw1
            pl.BlockSpec((1, Cin), lambda n: (0, 0)),                   # bn1 scale
            pl.BlockSpec((1, Cin), lambda n: (0, 0)),                   # bn1 bias
            pl.BlockSpec((k * k, 1, 1, Cin), lambda n: (0, 0, 0, 0)),   # dw2
            pl.BlockSpec((Cin, Cout), lambda n: (0, 0)),                # pw2
            pl.BlockSpec((1, Cout), lambda n: (0, 0)),                  # bn2 scale
            pl.BlockSpec((1, Cout), lambda n: (0, 0)),                  # bn2 bias
        ],
        out_specs=pl.BlockSpec((1, Ho2, Wo2, Cout), lambda n: (n, 0, 0, 0)),
        scratch_shapes=[pltpu.VMEM((Ho1 + 2 * p, Wo1 + 2 * p, Cin), jnp.float32)],
        compiler_params=pltpu.CompilerParams(dimension_semantics=("parallel",)),
    )(xpad, dw1, pw1, s1.reshape(1, Cin), b1.reshape(1, Cin),
      dw2, pw2, s2.reshape(1, Cout), b2.reshape(1, Cout))

    return jnp.transpose(out, (0, 3, 1, 2))  # NHWC -> NCHW (match PyTorch I/O layout)


def _reference_sep_conv(x_nchw, params, *, kernel_size, stride, padding, eps=1e-5):
    """Pure-JAX reference (XLA convs) for correctness checking."""
    p = padding
    hi = jax.lax.Precision.HIGHEST

    def dwconv(x, w_kkC, s):
        C = w_kkC.shape[-1]
        w = jnp.transpose(w_kkC, (2, 0, 1))[:, None, :, :]          # (C, 1, k, k)
        return jax.lax.conv_general_dilated(
            x, w, (s, s), [(p, p), (p, p)], feature_group_count=C,
            dimension_numbers=("NCHW", "OIHW", "NCHW"), precision=hi)

    def pwconv(x, w_io):
        w = jnp.transpose(w_io, (1, 0))[:, :, None, None]            # (Cout, Cin, 1, 1)
        return jax.lax.conv_general_dilated(
            x, w, (1, 1), [(0, 0), (0, 0)],
            dimension_numbers=("NCHW", "OIHW", "NCHW"), precision=hi)

    def bn(x, g, b, m, v):
        sc = g / jnp.sqrt(v + eps)
        return x * sc[None, :, None, None] + (b - m * sc)[None, :, None, None]

    y = jnp.maximum(x_nchw, 0.0)
    y = dwconv(y, params["dw1"], stride)
    y = pwconv(y, params["pw1"])
    y = bn(y, params["gamma1"], params["beta1"], params["mean1"], params["var1"])
    y = jnp.maximum(y, 0.0)
    y = dwconv(y, params["dw2"], 1)
    y = pwconv(y, params["pw2"])
    y = bn(y, params["gamma2"], params["beta2"], params["mean2"], params["var2"])
    return y


if __name__ == "__main__":
    key = jax.random.PRNGKey(0)
    ks = jax.random.split(key, 14)

    N, Cin, Cout, H, W = 2, 4, 8, 16, 16
    kernel_size, stride, padding = 3, 1, 1

    x = jax.random.normal(ks[0], (N, Cin, H, W), dtype=jnp.float32)
    params = {
        # depthwise weights stored as (k, k, C)  (PyTorch (C,1,k,k) transposed)
        "dw1": 0.3 * jax.random.normal(ks[1], (kernel_size, kernel_size, Cin), jnp.float32),
        # pointwise weights stored as (C_in, C_out)  (PyTorch (C_out,C_in,1,1) transposed)
        "pw1": 0.3 * jax.random.normal(ks[2], (Cin, Cin), jnp.float32),
        "gamma1": 1.0 + 0.1 * jax.random.normal(ks[3], (Cin,), jnp.float32),
        "beta1": 0.1 * jax.random.normal(ks[4], (Cin,), jnp.float32),
        "mean1": 0.1 * jax.random.normal(ks[5], (Cin,), jnp.float32),
        "var1": jax.random.uniform(ks[6], (Cin,), jnp.float32, 0.5, 1.5),
        "dw2": 0.3 * jax.random.normal(ks[7], (kernel_size, kernel_size, Cin), jnp.float32),
        "pw2": 0.3 * jax.random.normal(ks[8], (Cin, Cout), jnp.float32),
        "gamma2": 1.0 + 0.1 * jax.random.normal(ks[9], (Cout,), jnp.float32),
        "beta2": 0.1 * jax.random.normal(ks[10], (Cout,), jnp.float32),
        "mean2": 0.1 * jax.random.normal(ks[11], (Cout,), jnp.float32),
        "var2": jax.random.uniform(ks[12], (Cout,), jnp.float32, 0.5, 1.5),
    }

    y = sep_conv_forward(x, params, kernel_size=kernel_size, stride=stride, padding=padding)
    jax.block_until_ready(y)

    y_ref = _reference_sep_conv(x, params, kernel_size=kernel_size, stride=stride, padding=padding)
    assert y.shape == y_ref.shape, (y.shape, y_ref.shape)
    assert bool(jnp.allclose(y, y_ref, rtol=1e-2, atol=1e-2)), float(jnp.max(jnp.abs(y - y_ref)))

    print("KERNEL_OK")
</pallas_src>

<mosaic_0001>
module attributes {stable_mosaic.version = 11 : i64} {
  func.func @_sepconv_kernel(%arg0: i32, %arg1: memref<1x18x18x4xf32, #tpu.memory_space<vmem>>, %arg2: memref<9x1x1x4xf32, #tpu.memory_space<vmem>>, %arg3: memref<4x4xf32, #tpu.memory_space<vmem>>, %arg4: memref<1x4xf32, #tpu.memory_space<vmem>>, %arg5: memref<1x4xf32, #tpu.memory_space<vmem>>, %arg6: memref<9x1x1x4xf32, #tpu.memory_space<vmem>>, %arg7: memref<4x8xf32, #tpu.memory_space<vmem>>, %arg8: memref<1x8xf32, #tpu.memory_space<vmem>>, %arg9: memref<1x8xf32, #tpu.memory_space<vmem>>, %arg10: memref<1x16x16x8xf32, #tpu.memory_space<vmem>>, %arg11: memref<18x18x4xf32, #tpu.memory_space<vmem>>) attributes {dimension_semantics = [#tpu.dimension_semantics<parallel>], iteration_bounds = array<i64: 2>, scalar_prefetch = 0 : i64, scratch_operands = 1 : i64, tpu.core_type = #tpu.core_type<tc>, window_params = [{transform_indices = @transform_0, window_bounds = array<i64: 1, 18, 18, 4>}, {pipeline_mode = #tpu.pipeline_mode<synchronous>, transform_indices = @transform_1, window_bounds = array<i64: 9, 1, 1, 4>}, {pipeline_mode = #tpu.pipeline_mode<synchronous>, transform_indices = @transform_2, window_bounds = array<i64: 4, 4>}, {pipeline_mode = #tpu.pipeline_mode<synchronous>, transform_indices = @transform_3, window_bounds = array<i64: 1, 4>}, {pipeline_mode = #tpu.pipeline_mode<synchronous>, transform_indices = @transform_4, window_bounds = array<i64: 1, 4>}, {pipeline_mode = #tpu.pipeline_mode<synchronous>, transform_indices = @transform_5, window_bounds = array<i64: 9, 1, 1, 4>}, {pipeline_mode = #tpu.pipeline_mode<synchronous>, transform_indices = @transform_6, window_bounds = array<i64: 4, 8>}, {pipeline_mode = #tpu.pipeline_mode<synchronous>, transform_indices = @transform_7, window_bounds = array<i64: 1, 8>}, {pipeline_mode = #tpu.pipeline_mode<synchronous>, transform_indices = @transform_8, window_bounds = array<i64: 1, 8>}, {transform_indices = @transform_9, window_bounds = array<i64: 1, 16, 16, 8>}]} {
    %c0 = arith.constant 0 : index
    %c0_0 = arith.constant 0 : index
    %c0_1 = arith.constant 0 : index
    %c0_2 = arith.constant 0 : index
    %0 = vector.load %arg1[%c0, %c0_0, %c0_1, %c0_2] : memref<1x18x18x4xf32, #tpu.memory_space<vmem>>, vector<1x18x18x4xf32>
    %1 = vector.shape_cast %0 : vector<1x18x18x4xf32> to vector<18x18x4xf32>
    %cst = arith.constant 0.000000e+00 : f32
    %2 = vector.broadcast %cst : f32 to vector<18x18x4xf32>
    %3 = arith.maximumf %1, %2 : vector<18x18x4xf32>
    %cst_3 = arith.constant 0.000000e+00 : f32
    %4 = vector.broadcast %cst_3 : f32 to vector<16x16x4xf32>
    %5 = vector.extract_strided_slice %3 {offsets = [0, 0, 0], sizes = [16, 16, 4], strides = [1, 1, 1]} : vector<18x18x4xf32> to vector<16x16x4xf32>
    %c0_4 = arith.constant 0 : index
    %c0_5 = arith.constant 0 : index
    %c0_6 = arith.constant 0 : index
    %c0_7 = arith.constant 0 : index
    %6 = vector.load %arg2[%c0_4, %c0_5, %c0_6, %c0_7] : memref<9x1x1x4xf32, #tpu.memory_space<vmem>>, vector<1x1x1x4xf32>
    %7 = vector.shape_cast %6 : vector<1x1x1x4xf32> to vector<1x1x4xf32>
    %8 = vector.broadcast %7 : vector<1x1x4xf32> to vector<16x16x4xf32>
    %9 = arith.mulf %5, %8 : vector<16x16x4xf32>
    %10 = arith.addf %4, %9 : vector<16x16x4xf32>
    %11 = vector.extract_strided_slice %3 {offsets = [0, 1, 0], sizes = [16, 16, 4], strides = [1, 1, 1]} : vector<18x18x4xf32> to vector<16x16x4xf32>
    %c1 = arith.constant 1 : index
    %c0_8 = arith.constant 0 : index
    %c0_9 = arith.constant 0 : index
    %c0_10 = arith.constant 0 : index
    %12 = vector.load %arg2[%c1, %c0_8, %c0_9, %c0_10] : memref<9x1x1x4xf32, #tpu.memory_space<vmem>>, vector<1x1x1x4xf32>
    %13 = vector.shape_cast %12 : vector<1x1x1x4xf32> to vector<1x1x4xf32>
    %14 = vector.broadcast %13 : vector<1x1x4xf32> to vector<16x16x4xf32>
    %15 = arith.mulf %11, %14 : vector<16x16x4xf32>
    %16 = arith.addf %10, %15 : vector<16x16x4xf32>
    %17 = vector.extract_strided_slice %3 {offsets = [0, 2, 0], sizes = [16, 16, 4], strides = [1, 1, 1]} : vector<18x18x4xf32> to vector<16x16x4xf32>
    %c2 = arith.constant 2 : index
    %c0_11 = arith.constant 0 : index
    %c0_12 = arith.constant 0 : index
    %c0_13 = arith.constant 0 : index
    %18 = vector.load %arg2[%c2, %c0_11, %c0_12, %c0_13] : memref<9x1x1x4xf32, #tpu.memory_space<vmem>>, vector<1x1x1x4xf32>
    %19 = vector.shape_cast %18 : vector<1x1x1x4xf32> to vector<1x1x4xf32>
    %20 = vector.broadcast %19 : vector<1x1x4xf32> to vector<16x16x4xf32>
    %21 = arith.mulf %17, %20 : vector<16x16x4xf32>
    %22 = arith.addf %16, %21 : vector<16x16x4xf32>
    %23 = vector.extract_strided_slice %3 {offsets = [1, 0, 0], sizes = [16, 16, 4], strides = [1, 1, 1]} : vector<18x18x4xf32> to vector<16x16x4xf32>
    %c3 = arith.constant 3 : index
    %c0_14 = arith.constant 0 : index
    %c0_15 = arith.constant 0 : index
    %c0_16 = arith.constant 0 : index
    %24 = vector.load %arg2[%c3, %c0_14, %c0_15, %c0_16] : memref<9x1x1x4xf32, #tpu.memory_space<vmem>>, vector<1x1x1x4xf32>
    %25 = vector.shape_cast %24 : vector<1x1x1x4xf32> to vector<1x1x4xf32>
    %26 = vector.broadcast %25 : vector<1x1x4xf32> to vector<16x16x4xf32>
    %27 = arith.mulf %23, %26 : vector<16x16x4xf32>
    %28 = arith.addf %22, %27 : vector<16x16x4xf32>
    %29 = vector.extract_strided_slice %3 {offsets = [1, 1, 0], sizes = [16, 16, 4], strides = [1, 1, 1]} : vector<18x18x4xf32> to vector<16x16x4xf32>
    %c4 = arith.constant 4 : index
    %c0_17 = arith.constant 0 : index
    %c0_18 = arith.constant 0 : index
    %c0_19 = arith.constant 0 : index
    %30 = vector.load %arg2[%c4, %c0_17, %c0_18, %c0_19] : memref<9x1x1x4xf32, #tpu.memory_space<vmem>>, vector<1x1x1x4xf32>
    %31 = vector.shape_cast %30 : vector<1x1x1x4xf32> to vector<1x1x4xf32>
    %32 = vector.broadcast %31 : vector<1x1x4xf32> to vector<16x16x4xf32>
    %33 = arith.mulf %29, %32 : vector<16x16x4xf32>
    %34 = arith.addf %28, %33 : vector<16x16x4xf32>
    %35 = vector.extract_strided_slice %3 {offsets = [1, 2, 0], sizes = [16, 16, 4], strides = [1, 1, 1]} : vector<18x18x4xf32> to vector<16x16x4xf32>
    %c5 = arith.constant 5 : index
    %c0_20 = arith.constant 0 : index
    %c0_21 = arith.constant 0 : index
    %c0_22 = arith.constant 0 : index
    %36 = vector.load %arg2[%c5, %c0_20, %c0_21, %c0_22] : memref<9x1x1x4xf32, #tpu.memory_space<vmem>>, vector<1x1x1x4xf32>
    %37 = vector.shape_cast %36 : vector<1x1x1x4xf32> to vector<1x1x4xf32>
    %38 = vector.broadcast %37 : vector<1x1x4xf32> to vector<16x16x4xf32>
    %39 = arith.mulf %35, %38 : vector<16x16x4xf32>
    %40 = arith.addf %34, %39 : vector<16x16x4xf32>
    %41 = vector.extract_strided_slice %3 {offsets = [2, 0, 0], sizes = [16, 16, 4], strides = [1, 1, 1]} : vector<18x18x4xf32> to vector<16x16x4xf32>
    %c6 = arith.constant 6 : index
    %c0_23 = arith.constant 0 : index
    %c0_24 = arith.constant 0 : index
    %c0_25 = arith.constant 0 : index
    %42 = vector.load %arg2[%c6, %c0_23, %c0_24, %c0_25] : memref<9x1x1x4xf32, #tpu.memory_space<vmem>>, vector<1x1x1x4xf32>
    %43 = vector.shape_cast %42 : vector<1x1x1x4xf32> to vector<1x1x4xf32>
    %44 = vector.broadcast %43 : vector<1x1x4xf32> to vector<16x16x4xf32>
    %45 = arith.mulf %41, %44 : vector<16x16x4xf32>
    %46 = arith.addf %40, %45 : vector<16x16x4xf32>
    %47 = vector.extract_strided_slice %3 {offsets = [2, 1, 0], sizes = [16, 16, 4], strides = [1, 1, 1]} : vector<18x18x4xf32> to vector<16x16x4xf32>
    %c7 = arith.constant 7 : index
    %c0_26 = arith.constant 0 : index
    %c0_27 = arith.constant 0 : index
    %c0_28 = arith.constant 0 : index
    %48 = vector.load %arg2[%c7, %c0_26, %c0_27, %c0_28] : memref<9x1x1x4xf32, #tpu.memory_space<vmem>>, vector<1x1x1x4xf32>
    %49 = vector.shape_cast %48 : vector<1x1x1x4xf32> to vector<1x1x4xf32>
    %50 = vector.broadcast %49 : vector<1x1x4xf32> to vector<16x16x4xf32>
    %51 = arith.mulf %47, %50 : vector<16x16x4xf32>
    %52 = arith.addf %46, %51 : vector<16x16x4xf32>
    %53 = vector.extract_strided_slice %3 {offsets = [2, 2, 0], sizes = [16, 16, 4], strides = [1, 1, 1]} : vector<18x18x4xf32> to vector<16x16x4xf32>
    %c8 = arith.constant 8 : index
    %c0_29 = arith.constant 0 : index
    %c0_30 = arith.constant 0 : index
    %c0_31 = arith.constant 0 : index
    %54 = vector.load %arg2[%c8, %c0_29, %c0_30, %c0_31] : memref<9x1x1x4xf32, #tpu.memory_space<vmem>>, vector<1x1x1x4xf32>
    %55 = vector.shape_cast %54 : vector<1x1x1x4xf32> to vector<1x1x4xf32>
    %56 = vector.broadcast %55 : vector<1x1x4xf32> to vector<16x16x4xf32>
    %57 = arith.mulf %53, %56 : vector<16x16x4xf32>
    %58 = arith.addf %52, %57 : vector<16x16x4xf32>
    %59 = vector.shape_cast %58 : vector<16x16x4xf32> to vector<256x4xf32>
    %c0_32 = arith.constant 0 : index
    %c0_33 = arith.constant 0 : index
    %60 = vector.load %arg3[%c0_32, %c0_33] : memref<4x4xf32, #tpu.memory_space<vmem>>, vector<4x4xf32>
    %cst_34 = arith.constant dense<0.000000e+00> : vector<256x4xf32>
    %61 = tpu.matmul %59, %60, %cst_34 {dimension_numbers = #tpu.dot_dimension_numbers<[1], [0], [0], [1], [0, 0, 1, 1], [], []>} : vector<256x4xf32>, vector<4x4xf32>, vector<256x4xf32> -> vector<256x4xf32>
    %c0_35 = arith.constant 0 : index
    %c0_36 = arith.constant 0 : index
    %62 = vector.load %arg4[%c0_35, %c0_36] : memref<1x4xf32, #tpu.memory_space<vmem>>, vector<1x4xf32>
    %63 = vector.broadcast %62 : vector<1x4xf32> to vector<256x4xf32>
    %64 = arith.mulf %61, %63 : vector<256x4xf32>
    %c0_37 = arith.constant 0 : index
    %c0_38 = arith.constant 0 : index
    %65 = vector.load %arg5[%c0_37, %c0_38] : memref<1x4xf32, #tpu.memory_space<vmem>>, vector<1x4xf32>
    %66 = vector.broadcast %65 : vector<1x4xf32> to vector<256x4xf32>
    %67 = arith.addf %64, %66 : vector<256x4xf32>
    %cst_39 = arith.constant 0.000000e+00 : f32
    %68 = vector.broadcast %cst_39 : f32 to vector<256x4xf32>
    %69 = arith.maximumf %67, %68 : vector<256x4xf32>
    %70 = vector.shape_cast %69 : vector<256x4xf32> to vector<16x16x4xf32>
    %cst_40 = arith.constant 0.000000e+00 : f32
    %71 = vector.broadcast %cst_40 : f32 to vector<18x18x4xf32>
    %c0_41 = arith.constant 0 : index
    %c0_42 = arith.constant 0 : index
    %c0_43 = arith.constant 0 : index
    %72 = vector.load %arg11[%c0_41, %c0_42, %c0_43] : memref<18x18x4xf32, #tpu.memory_space<vmem>>, vector<18x18x4xf32>
    tpu.vector_store %arg11[%c0_41, %c0_42, %c0_43], %71 {strides = array<i32>} : memref<18x18x4xf32, #tpu.memory_space<vmem>>, vector<18x18x4xf32>,
    %c1_44 = arith.constant 1 : index
    %c1_45 = arith.constant 1 : index
    %c0_46 = arith.constant 0 : index
    %73 = vector.load %arg11[%c1_44, %c1_45, %c0_46] : memref<18x18x4xf32, #tpu.memory_space<vmem>>, vector<16x16x4xf32>
    tpu.vector_store %arg11[%c1_44, %c1_45, %c0_46], %70 {strides = array<i32>} : memref<18x18x4xf32, #tpu.memory_space<vmem>>, vector<16x16x4xf32>,
    %c0_47 = arith.constant 0 : index
    %c0_48 = arith.constant 0 : index
    %c0_49 = arith.constant 0 : index
    %74 = vector.load %arg11[%c0_47, %c0_48, %c0_49] : memref<18x18x4xf32, #tpu.memory_space<vmem>>, vector<18x18x4xf32>
    %cst_50 = arith.constant 0.000000e+00 : f32
    %75 = vector.broadcast %cst_50 : f32 to vector<16x16x4xf32>
    %76 = vector.extract_strided_slice %74 {offsets = [0, 0, 0], sizes = [16, 16, 4], strides = [1, 1, 1]} : vector<18x18x4xf32> to vector<16x16x4xf32>
    %c0_51 = arith.constant 0 : index
    %c0_52 = arith.constant 0 : index
    %c0_53 = arith.constant 0 : index
    %c0_54 = arith.constant 0 : index
    %77 = vector.load %arg6[%c0_51, %c0_52, %c0_53, %c0_54] : memref<9x1x1x4xf32, #tpu.memory_space<vmem>>, vector<1x1x1x4xf32>
    %78 = vector.shape_cast %77 : vector<1x1x1x4xf32> to vector<1x1x4xf32>
    %79 = vector.broadcast %78 : vector<1x1x4xf32> to vector<16x16x4xf32>
    %80 = arith.mulf %76, %79 : vector<16x16x4xf32>
    %81 = arith.addf %75, %80 : vector<16x16x4xf32>
    %82 = vector.extract_strided_slice %74 {offsets = [0, 1, 0], sizes = [16, 16, 4], strides = [1, 1, 1]} : vector<18x18x4xf32> to vector<16x16x4xf32>
    %c1_55 = arith.constant 1 : index
    %c0_56 = arith.constant 0 : index
    %c0_57 = arith.constant 0 : index
    %c0_58 = arith.constant 0 : index
    %83 = vector.load %arg6[%c1_55, %c0_56, %c0_57, %c0_58] : memref<9x1x1x4xf32, #tpu.memory_space<vmem>>, vector<1x1x1x4xf32>
    %84 = vector.shape_cast %83 : vector<1x1x1x4xf32> to vector<1x1x4xf32>
    %85 = vector.broadcast %84 : vector<1x1x4xf32> to vector<16x16x4xf32>
    %86 = arith.mulf %82, %85 : vector<16x16x4xf32>
    %87 = arith.addf %81, %86 : vector<16x16x4xf32>
    %88 = vector.extract_strided_slice %74 {offsets = [0, 2, 0], sizes = [16, 16, 4], strides = [1, 1, 1]} : vector<18x18x4xf32> to vector<16x16x4xf32>
    %c2_59 = arith.constant 2 : index
    %c0_60 = arith.constant 0 : index
    %c0_61 = arith.constant 0 : index
    %c0_62 = arith.constant 0 : index
    %89 = vector.load %arg6[%c2_59, %c0_60, %c0_61, %c0_62] : memref<9x1x1x4xf32, #tpu.memory_space<vmem>>, vector<1x1x1x4xf32>
    %90 = vector.shape_cast %89 : vector<1x1x1x4xf32> to vector<1x1x4xf32>
    %91 = vector.broadcast %90 : vector<1x1x4xf32> to vector<16x16x4xf32>
    %92 = arith.mulf %88, %91 : vector<16x16x4xf32>
    %93 = arith.addf %87, %92 : vector<16x16x4xf32>
    %94 = vector.extract_strided_slice %74 {offsets = [1, 0, 0], sizes = [16, 16, 4], strides = [1, 1, 1]} : vector<18x18x4xf32> to vector<16x16x4xf32>
    %c3_63 = arith.constant 3 : index
    %c0_64 = arith.constant 0 : index
    %c0_65 = arith.constant 0 : index
    %c0_66 = arith.constant 0 : index
    %95 = vector.load %arg6[%c3_63, %c0_64, %c0_65, %c0_66] : memref<9x1x1x4xf32, #tpu.memory_space<vmem>>, vector<1x1x1x4xf32>
    %96 = vector.shape_cast %95 : vector<1x1x1x4xf32> to vector<1x1x4xf32>
    %97 = vector.broadcast %96 : vector<1x1x4xf32> to vector<16x16x4xf32>
    %98 = arith.mulf %94, %97 : vector<16x16x4xf32>
    %99 = arith.addf %93, %98 : vector<16x16x4xf32>
    %100 = vector.extract_strided_slice %74 {offsets = [1, 1, 0], sizes = [16, 16, 4], strides = [1, 1, 1]} : vector<18x18x4xf32> to vector<16x16x4xf32>
    %c4_67 = arith.constant 4 : index
    %c0_68 = arith.constant 0 : index
    %c0_69 = arith.constant 0 : index
    %c0_70 = arith.constant 0 : index
    %101 = vector.load %arg6[%c4_67, %c0_68, %c0_69, %c0_70] : memref<9x1x1x4xf32, #tpu.memory_space<vmem>>, vector<1x1x1x4xf32>
    %102 = vector.shape_cast %101 : vector<1x1x1x4xf32> to vector<1x1x4xf32>
    %103 = vector.broadcast %102 : vector<1x1x4xf32> to vector<16x16x4xf32>
    %104 = arith.mulf %100, %103 : vector<16x16x4xf32>
    %105 = arith.addf %99, %104 : vector<16x16x4xf32>
    %106 = vector.extract_strided_slice %74 {offsets = [1, 2, 0], sizes = [16, 16, 4], strides = [1, 1, 1]} : vector<18x18x4xf32> to vector<16x16x4xf32>
    %c5_71 = arith.constant 5 : index
    %c0_72 = arith.constant 0 : index
    %c0_73 = arith.constant 0 : index
    %c0_74 = arith.constant 0 : index
    %107 = vector.load %arg6[%c5_71, %c0_72, %c0_73, %c0_74] : memref<9x1x1x4xf32, #tpu.memory_space<vmem>>, vector<1x1x1x4xf32>
    %108 = vector.shape_cast %107 : vector<1x1x1x4xf32> to vector<1x1x4xf32>
    %109 = vector.broadcast %108 : vector<1x1x4xf32> to vector<16x16x4xf32>
    %110 = arith.mulf %106, %109 : vector<16x16x4xf32>
    %111 = arith.addf %105, %110 : vector<16x16x4xf32>
    %112 = vector.extract_strided_slice %74 {offsets = [2, 0, 0], sizes = [16, 16, 4], strides = [1, 1, 1]} : vector<18x18x4xf32> to vector<16x16x4xf32>
    %c6_75 = arith.constant 6 : index
    %c0_76 = arith.constant 0 : index
    %c0_77 = arith.constant 0 : index
    %c0_78 = arith.constant 0 : index
    %113 = vector.load %arg6[%c6_75, %c0_76, %c0_77, %c0_78] : memref<9x1x1x4xf32, #tpu.memory_space<vmem>>, vector<1x1x1x4xf32>
    %114 = vector.shape_cast %113 : vector<1x1x1x4xf32> to vector<1x1x4xf32>
    %115 = vector.broadcast %114 : vector<1x1x4xf32> to vector<16x16x4xf32>
    %116 = arith.mulf %112, %115 : vector<16x16x4xf32>
    %117 = arith.addf %111, %116 : vector<16x16x4xf32>
    %118 = vector.extract_strided_slice %74 {offsets = [2, 1, 0], sizes = [16, 16, 4], strides = [1, 1, 1]} : vector<18x18x4xf32> to vector<16x16x4xf32>
    %c7_79 = arith.constant 7 : index
    %c0_80 = arith.constant 0 : index
    %c0_81 = arith.constant 0 : index
    %c0_82 = arith.constant 0 : index
    %119 = vector.load %arg6[%c7_79, %c0_80, %c0_81, %c0_82] : memref<9x1x1x4xf32, #tpu.memory_space<vmem>>, vector<1x1x1x4xf32>
    %120 = vector.shape_cast %119 : vector<1x1x1x4xf32> to vector<1x1x4xf32>
    %121 = vector.broadcast %120 : vector<1x1x4xf32> to vector<16x16x4xf32>
    %122 = arith.mulf %118, %121 : vector<16x16x4xf32>
    %123 = arith.addf %117, %122 : vector<16x16x4xf32>
    %124 = vector.extract_strided_slice %74 {offsets = [2, 2, 0], sizes = [16, 16, 4], strides = [1, 1, 1]} : vector<18x18x4xf32> to vector<16x16x4xf32>
    %c8_83 = arith.constant 8 : index
    %c0_84 = arith.constant 0 : index
    %c0_85 = arith.constant 0 : index
    %c0_86 = arith.constant 0 : index
    %125 = vector.load %arg6[%c8_83, %c0_84, %c0_85, %c0_86] : memref<9x1x1x4xf32, #tpu.memory_space<vmem>>, vector<1x1x1x4xf32>
    %126 = vector.shape_cast %125 : vector<1x1x1x4xf32> to vector<1x1x4xf32>
    %127 = vector.broadcast %126 : vector<1x1x4xf32> to vector<16x16x4xf32>
    %128 = arith.mulf %124, %127 : vector<16x16x4xf32>
    %129 = arith.addf %123, %128 : vector<16x16x4xf32>
    %130 = vector.shape_cast %129 : vector<16x16x4xf32> to vector<256x4xf32>
    %c0_87 = arith.constant 0 : index
    %c0_88 = arith.constant 0 : index
    %131 = vector.load %arg7[%c0_87, %c0_88] : memref<4x8xf32, #tpu.memory_space<vmem>>, vector<4x8xf32>
    %cst_89 = arith.constant dense<0.000000e+00> : vector<256x8xf32>
    %132 = tpu.matmul %130, %131, %cst_89 {dimension_numbers = #tpu.dot_dimension_numbers<[1], [0], [0], [1], [0, 0, 1, 1], [], []>} : vector<256x4xf32>, vector<4x8xf32>, vector<256x8xf32> -> vector<256x8xf32>
    %c0_90 = arith.constant 0 : index
    %c0_91 = arith.constant 0 : index
    %133 = vector.load %arg8[%c0_90, %c0_91] : memref<1x8xf32, #tpu.memory_space<vmem>>, vector<1x8xf32>
    %134 = vector.broadcast %133 : vector<1x8xf32> to vector<256x8xf32>
    %135 = arith.mulf %132, %134 : vector<256x8xf32>
    %c0_92 = arith.constant 0 : index
    %c0_93 = arith.constant 0 : index
    %136 = vector.load %arg9[%c0_92, %c0_93] : memref<1x8xf32, #tpu.memory_space<vmem>>, vector<1x8xf32>
    %137 = vector.broadcast %136 : vector<1x8xf32> to vector<256x8xf32>
    %138 = arith.addf %135, %137 : vector<256x8xf32>
    %139 = vector.shape_cast %138 : vector<256x8xf32> to vector<1x16x16x8xf32>
    %c0_94 = arith.constant 0 : index
    %c0_95 = arith.constant 0 : index
    %c0_96 = arith.constant 0 : index
    %c0_97 = arith.constant 0 : index
    %140 = vector.load %arg10[%c0_94, %c0_95, %c0_96, %c0_97] : memref<1x16x16x8xf32, #tpu.memory_space<vmem>>, vector<1x16x16x8xf32>
    tpu.vector_store %arg10[%c0_94, %c0_95, %c0_96, %c0_97], %139 {strides = array<i32>} : memref<1x16x16x8xf32, #tpu.memory_space<vmem>>, vector<1x16x16x8xf32>,
    return
  }
  func.func @transform_0(%arg0: i32) -> (i32, i32, i32, i32) {
    %c0_i32 = arith.constant 0 : i32
    %c0_i32_0 = arith.constant 0 : i32
    %c0_i32_1 = arith.constant 0 : i32
    %c0_i32_2 = arith.constant 0 : i32
    return %arg0, %c0_i32, %c0_i32_0, %c0_i32_1 : i32, i32, i32, i32
  }
  func.func @transform_1(%arg0: i32) -> (i32, i32, i32, i32) {
    %c0_i32 = arith.constant 0 : i32
    %c0_i32_0 = arith.constant 0 : i32
    %c0_i32_1 = arith.constant 0 : i32
    %c0_i32_2 = arith.constant 0 : i32
    %c0_i32_3 = arith.constant 0 : i32
    return %c0_i32, %c0_i32_0, %c0_i32_1, %c0_i32_2 : i32, i32, i32, i32
  }
  func.func @transform_2(%arg0: i32) -> (i32, i32) {
    %c0_i32 = arith.constant 0 : i32
    %c0_i32_0 = arith.constant 0 : i32
    %c0_i32_1 = arith.constant 0 : i32
    return %c0_i32, %c0_i32_0 : i32, i32
  }
  func.func @transform_3(%arg0: i32) -> (i32, i32) {
    %c0_i32 = arith.constant 0 : i32
    %c0_i32_0 = arith.constant 0 : i32
    %c0_i32_1 = arith.constant 0 : i32
    return %c0_i32, %c0_i32_0 : i32, i32
  }
  func.func @transform_4(%arg0: i32) -> (i32, i32) {
    %c0_i32 = arith.constant 0 : i32
    %c0_i32_0 = arith.constant 0 : i32
    %c0_i32_1 = arith.constant 0 : i32
    return %c0_i32, %c0_i32_0 : i32, i32
  }
  func.func @transform_5(%arg0: i32) -> (i32, i32, i32, i32) {
    %c0_i32 = arith.constant 0 : i32
    %c0_i32_0 = arith.constant 0 : i32
    %c0_i32_1 = arith.constant 0 : i32
    %c0_i32_2 = arith.constant 0 : i32
    %c0_i32_3 = arith.constant 0 : i32
    return %c0_i32, %c0_i32_0, %c0_i32_1, %c0_i32_2 : i32, i32, i32, i32
  }
  func.func @transform_6(%arg0: i32) -> (i32, i32) {
    %c0_i32 = arith.constant 0 : i32
    %c0_i32_0 = arith.constant 0 : i32
    %c0_i32_1 = arith.constant 0 : i32
    return %c0_i32, %c0_i32_0 : i32, i32
  }
  func.func @transform_7(%arg0: i32) -> (i32, i32) {
    %c0_i32 = arith.constant 0 : i32
    %c0_i32_0 = arith.constant 0 : i32
    %c0_i32_1 = arith.constant 0 : i32
    return %c0_i32, %c0_i32_0 : i32, i32
  }
  func.func @transform_8(%arg0: i32) -> (i32, i32) {
    %c0_i32 = arith.constant 0 : i32
    %c0_i32_0 = arith.constant 0 : i32
    %c0_i32_1 = arith.constant 0 : i32
    return %c0_i32, %c0_i32_0 : i32, i32
  }
  func.func @transform_9(%arg0: i32) -> (i32, i32, i32, i32) {
    %c0_i32 = arith.constant 0 : i32
    %c0_i32_0 = arith.constant 0 : i32
    %c0_i32_1 = arith.constant 0 : i32
    %c0_i32_2 = arith.constant 0 : i32
    return %arg0, %c0_i32, %c0_i32_0, %c0_i32_1 : i32, i32, i32, i32
  }
}

</mosaic_0001>

<bundles_post_ra>
// kernel: tpu_custom_call.1
= control target key start
LH: loop header
LB: loop body
LE: loop exit
PB: predicated region body
PF: predicated region fallthrough
CT: control target
= control target key end

     0   :  { %s5307_s30 = smov 0   ;;  %s8593_s0 = inlined_call_operand.vmem [shape: f32[2,18,18,4], index: 0, kind: input, shape index: {}]   ;;  %s8594_s1 = inlined_call_operand.vmem [shape: f32[9,1,1,4], index: 1, kind: input, shape index: {}]   ;;  %s8595_s2 = inlined_call_operand.vmem [shape: f32[4,4], index: 2, kind: input, shape index: {}]   ;;  %s8596_s3 = inlined_call_operand.vmem [shape: f32[1,4], index: 3, kind: input, shape index: {}]   ;;  %s8597_s4 = inlined_call_operand.vmem [shape: f32[1,4], index: 4, kind: input, shape index: {}]   ;;  %s8598_s5 = inlined_call_operand.vmem [shape: f32[9,1,1,4], index: 5, kind: input, shape index: {}]   ;;  %s8599_s6 = inlined_call_operand.vmem [shape: f32[4,8], index: 6, kind: input, shape index: {}]   ;;  %s8600_s7 = inlined_call_operand.vmem [shape: f32[1,8], index: 7, kind: input, shape index: {}]   ;;  %s8601_s8 = inlined_call_operand.vmem [shape: f32[1,8], index: 8, kind: input, shape index: {}]   ;;  %s8602_s9 = inlined_call_operand.vmem [shape: f32[2,16,16,8], index: 9, kind: output, shape index: {}]  }
   0x1 LB: > { %s4919_s10 = sadd.s32 4294967295, %s5254_s30   ;;  %p4923_p0 = scmp.ge.s32.totalorder %s5254_s30, 1  ;;  %s5254_s30 = sphi %s5307_s30, %s19_s30  }
   0x2   : > { %p287_p1 = scmp.lt.s32.totalorder %s5254_s30, 3 }
   0x4   : > { %p288_p2 = pnand %p4923_p0, %p287_p1 }
   0x5   : > { %p323_p3 = scmp.lt.s32.totalorder (!%p288_p2), %s4919_s10, 1 }
   0x6   : > { %291 = sbr.rel (%p288_p2) target bundleno = 846 (0x34e), region = 56 }
   0xb   : > { %v2146_v0 = vld [vmem:[%s8595_s2] sm:$0xf]  ;;  %vm2244_vm0 = vcmask 1043456   ;;  %s8604_s10 = smov (!%p323_p3, %s4919_s10), 1  ;;  %v5351_v11 = vld [vmem:[%s8594_s1 + $0x4] ss:$0 sm:$0xff] }
   0xc   : > { %5100 = vmatprep.subr.msk.mxu0 %vm2244_vm0, %v2146_v0  ;;  %s5200_s13 = smul.u32 432, %s8604_s10  ;;  %v5331_v1 = vld [vmem:[%s8594_s1] ss:$0 sm:$0xff]  ;;  %v5336_v2 = vld [vmem:[%s8594_s1 + $0x1] ss:$0 sm:$0xff]  ;;  %vm616_vm1 = vcmask 1046528  }
   0xd   : > { %5101 = vmatpush3.msk.msra.mxu0 %vm2244_vm0, %v2146_v0  ;;  %v5341_v3 = vld [vmem:[%s8594_s1 + $0x2] ss:$0 sm:$0xff]  ;;  %vm865_vm2 = vcmask 1045504   ;;  %v5360_v14 = vld [vmem:[%s8594_s1 + $0x5] ss:$0 sm:$0xff]  ;;  %vm2147_vm3 = vcmask 31744  }
   0xe   : > { %s5326_s16 = scalar_lea.vmem %s8593_s0, %s5200_s13  ;;  %v5373_v22 = vld [vmem:[%s8594_s1 + $0x3] ss:$0 sm:$0xff]  ;;  %v5384_v25 = vld [vmem:[%s8594_s1 + $0x7] ss:$0 sm:$0xff]  ;;  %v5394_v34 = vld [vmem:[%s8594_s1 + $0x8] ss:$0 sm:$0xff] }
   0xf   : > { %v333_v4 = vld [vmem:[%s5326_s16] sm:$0xff]  ;;  %v334_v5 = vld [vmem:[%s5326_s16 + $0x8] sm:$0xff]  ;;  %v336_v6 = vld [vmem:[%s5326_s16 + $0x18] sm:$0xff]  ;;  %vm2585_vm4 = vcmask 25600   ;;  %s5033_s25 = sshll.u32 %s8604_s10, 8  ;;  %vm4831_vm5 = vcmask 64512  }
  0x10   : > { %v337_v7 = vld [vmem:[%s5326_s16 + $0x20] sm:$0xff]  ;;  %v339_v8 = vld [vmem:[%s5326_s16 + $0x30] sm:$0xff]  ;;  %v387_v9 = vmax.f32 %v333_v4, 0.0  ;;  %v388_v10 = vmax.f32 %v334_v5, 0.0  ;;  %v5353_v12 = vmax.f32 %v336_v6, 0.0  ;;  %v340_v19 = vld [vmem:[%s5326_s16 + $0x38] sm:$0xff]  ;;  %s8448_s29 = scalar_lea.vmem %s8602_s9, %s5033_s25 }
  0x11   : > { %v5355_v13 = vmax.f32 %v337_v7, 0.0  ;;  %v5362_v15 = vmax.f32 %v339_v8, 0.0  ;;  %v5396_v35 = vmax.f32 %v340_v19, 0.0  ;;  %v5404_v38 = vld [vmem:[%s8594_s1 + $0x6] ss:$0 sm:$0xff] }
  0x12   : > { %v520_v16 = vmul.f32 %v5336_v2, %v387_v9  ;;  %v521_v17 = vmul.f32 %v5336_v2, %v388_v10  ;;  %v769_v18 = vmul.f32 %v5341_v3, %v387_v9  ;;  %v448_v20 = vmul.f32 %v5331_v1, %v387_v9  ;;  %v335_v40 = vld [vmem:[%s5326_s16 + $0x10] sm:$0x3]  ;;  %v338_v45 = vld [vmem:[%s5326_s16 + $0x28] sm:$0x3]  ;;  %v341_v53 = vld [vmem:[%s5326_s16 + $0x40] sm:$0x3] }
  0x13   : > { %v770_v21 = vmul.f32 %v5341_v3, %v388_v10  ;;  %v1090_v23 = vmul.f32 %v5351_v11, %v5353_v12  ;;  %v5379_v24 = vmul.f32 %v5351_v11, %v5355_v13  ;;  %v1338_v29 = vmul.f32 %v5360_v14, %v5353_v12 }
  0x14   : > { %v617_v26 = vrot.slane %v520_v16, 1  ;;  %v618_v27 = vrot.slane %v521_v17, 1  ;;  %v866_v28 = vrot.slane %v769_v18, 2  ;;  %v1339_v33 = vmul.f32 %v5360_v14, %v5355_v13 }
  0x15   : > { %v867_v30 = vrot.slane %v770_v21, 2  ;;  %v1186_v31 = vrot.slane %v1090_v23, 1  ;;  %v1187_v32 = vrot.slane %v5379_v24, 1  ;;  %v1018_v37 = vmul.f32 %v5373_v22, %v5353_v12  ;;  %v342_v24 = vld [vmem:[%s5326_s16 + $0x48] sm:$0xff] }
  0x16   : > { %v619_v36 = vsel %vm616_vm1, %v617_v26, %v618_v27  ;;  %v1658_v39 = vmul.f32 %v5384_v25, %v5362_v15  ;;  %v1434_v43 = vrot.slane %v1338_v29, 2  ;;  %v1435_v44 = vrot.slane %v1339_v33, 2  ;;  %v343_v26 = vld [vmem:[%s5326_s16 + $0x50] sm:$0xff] }
  0x17   : > { %v729_v41 = vadd.f32 %v619_v36, %v448_v20  ;;  %v868_v42 = vsel %vm865_vm2, %v866_v28, %v867_v30  ;;  %v1659_v46 = vmul.f32 %v5384_v25, %v5396_v35  ;;  %v1906_v48 = vmul.f32 %v5394_v34, %v5362_v15 }
  0x18   : > { %v1754_v47 = vrot.slane %v1658_v39, 1  ;;  %v5417_v49 = vmul.f32 %v5394_v34, %v5396_v35  ;;  %v1188_v51 = vsel %vm616_vm1, %v1186_v31, %v1187_v32  ;;  %v1586_v52 = vmul.f32 %v5404_v38, %v5362_v15 }
  0x19   : > { %v978_v50 = vadd.f32 %v868_v42, %v729_v41  ;;  %v389_v54 = vmax.f32 %v335_v40, 0.0  ;;  %v1755_v55 = vrot.slane %v1659_v46, 1  ;;  %v2002_v56 = vrot.slane %v1906_v48, 2 }
  0x1a   : > { %v2003_v57 = vrot.slane %v5417_v49, 2  ;;  %v5424_v58 = vmax.f32 %v338_v45, 0.0  ;;  %v1436_v60 = vsel %vm865_vm2, %v1434_v43, %v1435_v44  ;;  %v5430_v0 = vmax.f32 %v341_v53, 0.0 }
  0x1b   : > { %v1050_v59 = vadd.f32 %v1018_v37, %v978_v50  ;;  %v522_v61 = vmul.f32 %v5336_v2, %v389_v54  ;;  %v771_v62 = vmul.f32 %v5341_v3, %v389_v54  ;;  %v1756_v63 = vsel %vm616_vm1, %v1754_v47, %v1755_v55 }
  0x1c   : > { %v449_v4 = vmul.f32 %v5331_v1, %v388_v10  ;;  %v1092_v5 = vmul.f32 %v5351_v11, %v5424_v58  ;;  %v1340_v9 = vmul.f32 %v5360_v14, %v5424_v58  ;;  %v2004_v16 = vsel %vm865_vm2, %v2002_v56, %v2003_v57 }
  0x1d   : > { %v1298_v6 = vadd.f32 %v1188_v51, %v1050_v59  ;;  %v620_v7 = vrot.slane %v522_v61, 1  ;;  %v869_v8 = vrot.slane %v771_v62, 2  ;;  %v1660_v18 = vmul.f32 %v5384_v25, %v5430_v0 }
  0x1e   : > { %v1189_v17 = vrot.slane %v1092_v5, 1  ;;  %v1908_v10 = vmul.f32 %v5394_v34, %v5430_v0  ;;  %v1437_v23 = vrot.slane %v1340_v9, 2  ;;  %v1019_v29 = vmul.f32 %v5373_v22, %v5355_v13 }
  0x1f   : > { %v1546_v19 = vadd.f32 %v1436_v60, %v1298_v6  ;;  %v621_v20 = vsel %vm616_vm1, %v618_v27, %v620_v7  ;;  %v870_v21 = vsel %vm865_vm2, %v867_v30, %v869_v8  ;;  %v1587_v31 = vmul.f32 %v5404_v38, %v5396_v35 }
  0x20   : > { %v730_v28 = vadd.f32 %v621_v20, %v449_v4  ;;  %v1757_v33 = vrot.slane %v1660_v18, 1  ;;  %v1190_v37 = vsel %vm616_vm1, %v1187_v32, %v1189_v17  ;;  %v1438_v39 = vsel %vm865_vm2, %v1435_v44, %v1437_v23 }
  0x21   : > { %v1618_v36 = vadd.f32 %v1586_v52, %v1546_v19  ;;  %v2005_v40 = vrot.slane %v1908_v10, 2  ;;  %v5455_v41 = vmax.f32 %v342_v24, 0.0  ;;  %v5457_v42 = vmax.f32 %v343_v26, 0.0 }
  0x22   : > { %v979_v27 = vadd.f32 %v870_v21, %v730_v28  ;;  %v1758_v30 = vsel %vm616_vm1, %v1755_v55, %v1757_v33  ;;  %v523_v45 = vmul.f32 %v5336_v2, %v5353_v12  ;;  %v524_v46 = vmul.f32 %v5336_v2, %v5355_v13  ;;  %v344_v21 = vld [vmem:[%s5326_s16 + $0x58] sm:$0x3] }
  0x23   : > { %v1866_v43 = vadd.f32 %v1756_v63, %v1618_v36  ;;  %v772_v32 = vmul.f32 %v5341_v3, %v5353_v12  ;;  %v450_v44 = vmul.f32 %v5331_v1, %v5353_v12  ;;  %v5469_v48 = vmul.f32 %v5341_v3, %v5355_v13 }
  0x24   : > { %v1051_v47 = vadd.f32 %v1019_v29, %v979_v27  ;;  %v1093_v50 = vmul.f32 %v5351_v11, %v5362_v15  ;;  %v622_v52 = vrot.slane %v523_v45, 1  ;;  %v623_v53 = vrot.slane %v524_v46, 1 }
  0x25   : > { %v2114_v51 = vadd.f32 %v2004_v16, %v1866_v43  ;;  %v871_v54 = vrot.slane %v772_v32, 2  ;;  %v872_v56 = vrot.slane %v5469_v48, 2  ;;  %v1020_v59 = vmul.f32 %v5373_v22, %v5362_v15 }
  0x26   : > { %v1299_v55 = vadd.f32 %v1190_v37, %v1051_v47  ;;  %v1094_v12 = vmul.f32 %v5351_v11, %v5396_v35  ;;  %v624_v60 = vsel %vm616_vm1, %v622_v52, %v623_v53  ;;  %v1191_v61 = vrot.slane %v1093_v50, 1 }
  0x27   : > { %5102 = vmatprep.mubr.msk.f32.mxu0 %vm2147_vm3, %v2114_v51  ;;  %v1341_v62 = vmul.f32 %v5360_v14, %v5362_v15  ;;  %v1342_v63 = vmul.f32 %v5360_v14, %v5396_v35  ;;  %v731_v5 = vadd.f32 %v624_v60, %v450_v44  ;;  %v873_v6 = vsel %vm865_vm2, %v871_v54, %v872_v56 }
  0x28   : > { %v1547_v4 = vadd.f32 %v1438_v39, %v1299_v55  ;;  %v1192_v7 = vrot.slane %v1094_v12, 1  ;;  %v1661_v16 = vmul.f32 %v5384_v25, %v5455_v41  ;;  %v5489_v17 = vmul.f32 %v5384_v25, %v5457_v42  ;;  %v345_v55 = vld [vmem:[%s5326_s16 + $0x60] sm:$0xff] }
  0x29   : > { %v1439_v8 = vrot.slane %v1341_v62, 2  ;;  %v1440_v9 = vrot.slane %v1342_v63, 2  ;;  %v2006_v10 = vsel %vm865_vm2, %v2003_v57, %v2005_v40  ;;  %v980_v19 = vadd.f32 %v873_v6, %v731_v5  ;;  %v346_v62 = vld [vmem:[%s5326_s16 + $0x68] sm:$0xff] }
  0x2a   : > { %v1619_v18 = vadd.f32 %v1587_v31, %v1547_v4  ;;  %v1909_v20 = vmul.f32 %v5394_v34, %v5455_v41  ;;  %v1193_v23 = vsel %vm616_vm1, %v1191_v61, %v1192_v7  ;;  %v1759_v24 = vrot.slane %v1661_v16, 1 }
  0x2b   : > { %v1760_v26 = vrot.slane %v5489_v17, 1  ;;  %v5501_v28 = vmul.f32 %v5394_v34, %v5457_v42  ;;  %v1052_v31 = vadd.f32 %v1020_v59, %v980_v19  ;;  %v1441_v49 = vsel %vm865_vm2, %v1439_v8, %v1440_v9 }
  0x2c   : > { %v1867_v29 = vadd.f32 %v1758_v30, %v1619_v18  ;;  %v1588_v57 = vmul.f32 %v5404_v38, %v5455_v41  ;;  %v2007_v33 = vrot.slane %v1909_v20, 2  ;;  %v5507_v37 = vmax.f32 %v344_v21, 0.0 }
  0x2d   : > { %v2008_v36 = vrot.slane %v5501_v28, 2  ;;  %v525_v39 = vmul.f32 %v5336_v2, %v5424_v58  ;;  %v1300_v27 = vadd.f32 %v1193_v23, %v1052_v31  ;;  %v451_v30 = vmul.f32 %v5331_v1, %v5355_v13 }
  0x2e   : > { %v2115_v40 = vadd.f32 %v2006_v10, %v1867_v29  ;;  %v774_v43 = vmul.f32 %v5341_v3, %v5424_v58  ;;  %v1761_v45 = vsel %vm616_vm1, %v1759_v24, %v1760_v26  ;;  %v1095_v32 = vmul.f32 %v5351_v11, %v5430_v0 }
  0x2f   : > { %v625_v46 = vrot.slane %v525_v39, 1  ;;  %v1343_v47 = vmul.f32 %v5360_v14, %v5430_v0  ;;  %v1548_v44 = vadd.f32 %v1441_v49, %v1300_v27  ;;  %v1021_v13 = vmul.f32 %v5373_v22, %v5396_v35 }
  0x30   : > { %5103 = vmatmul.mubr.msk.f32.vlgmr.msra.gmra.mxu0 %vm2147_vm3, %v2115_v40  ;;  %v874_v48 = vrot.slane %v774_v43, 2  ;;  %v1663_v58 = vmul.f32 %v5384_v25, %v5507_v37  ;;  %v1194_v51 = vrot.slane %v1095_v32, 1  ;;  %v1911_v54 = vmul.f32 %v5394_v34, %v5507_v37 }
  0x31   : > { %v626_v50 = vsel %vm616_vm1, %v623_v53, %v625_v46  ;;  %v1442_v52 = vrot.slane %v1343_v47, 2  ;;  %v1620_v59 = vadd.f32 %v1588_v57, %v1548_v44  ;;  %v2009_v12 = vsel %vm865_vm2, %v2007_v33, %v2008_v36 }
  0x32   : > { %v732_v60 = vadd.f32 %v626_v50, %v451_v30  ;;  %v875_v61 = vsel %vm865_vm2, %v872_v56, %v874_v48  ;;  %v1195_v63 = vsel %vm616_vm1, %v1192_v7, %v1194_v51  ;;  %v1589_v53 = vmul.f32 %v5404_v38, %v5457_v42 }
  0x33   : > { %v1443_v4 = vsel %vm865_vm2, %v1440_v9, %v1442_v52  ;;  %v1762_v5 = vrot.slane %v1663_v58, 1  ;;  %v1868_v6 = vadd.f32 %v1761_v45, %v1620_v59  ;;  %v2010_v16 = vrot.slane %v1911_v54, 2 }
  0x34   : > { %v981_v8 = vadd.f32 %v875_v61, %v732_v60  ;;  %v5540_v18 = vmax.f32 %v345_v55, 0.0  ;;  %v5542_v10 = vmax.f32 %v346_v62, 0.0  ;;  %v452_v19 = vmul.f32 %v5331_v1, %v5362_v15  ;;  %v347_v55 = vld [vmem:[%s5326_s16 + $0x70] sm:$0x3] }
  0x35   : > { %v526_v56 = vmul.f32 %v5336_v2, %v5362_v15  ;;  %v527_v7 = vmul.f32 %v5336_v2, %v5396_v35  ;;  %v2116_v9 = vadd.f32 %v2009_v12, %v1868_v6  ;;  %v775_v21 = vmul.f32 %v5341_v3, %v5362_v15 }
  0x36   : > { %v1053_v20 = vadd.f32 %v1021_v13, %v981_v8  ;;  %v776_v23 = vmul.f32 %v5341_v3, %v5396_v35  ;;  %v1022_v31 = vmul.f32 %v5373_v22, %v5455_v41  ;;  %v1096_v49 = vmul.f32 %v5351_v11, %v5455_v41 }
  0x37   : > { %v627_v24 = vrot.slane %v526_v56, 1  ;;  %v628_v29 = vrot.slane %v527_v7, 1  ;;  %5105 = vmatprep.mubr.msk.f32.mxu0 %vm2147_vm3, %v2116_v9  ;;  %v876_v33 = vrot.slane %v775_v21, 2  ;;  %v1097_v40 = vmul.f32 %v5351_v11, %v5457_v42 }
  0x38   : > { %v1301_v57 = vadd.f32 %v1195_v63, %v1053_v20  ;;  %v877_v39 = vrot.slane %v776_v23, 2  ;;  %v1196_v27 = vrot.slane %v1096_v49, 1  ;;  %v1344_v30 = vmul.f32 %v5360_v14, %v5455_v41 }
  0x39   : > { %v629_v15 = vsel %vm616_vm1, %v627_v24, %v628_v29  ;;  %v1345_v43 = vmul.f32 %v5360_v14, %v5457_v42  ;;  %v1197_v47 = vrot.slane %v1097_v40, 1  ;;  %v1763_v44 = vsel %vm616_vm1, %v1760_v26, %v1762_v5 }
  0x3a   : > { %v1549_v45 = vadd.f32 %v1443_v4, %v1301_v57  ;;  %v733_v46 = vadd.f32 %v629_v15, %v452_v19  ;;  %v878_v32 = vsel %vm865_vm2, %v876_v33, %v877_v39  ;;  %v1444_v48 = vrot.slane %v1344_v30, 2  ;;  %v348_v57 = vld [vmem:[%s5326_s16 + $0x78] sm:$0xff]  ;;  %v349_v30 = vld [vmem:[%s5326_s16 + $0x80] sm:$0xff] }
  0x3b   : > { %v1445_v13 = vrot.slane %v1345_v43, 2  ;;  %v1664_v58 = vmul.f32 %v5384_v25, %v5540_v18  ;;  %v2011_v51 = vsel %vm865_vm2, %v2008_v36, %v2010_v16  ;;  %v1665_v54 = vmul.f32 %v5384_v25, %v5542_v10 }
  0x3c   : > { %v1621_v50 = vadd.f32 %v1589_v53, %v1549_v45  ;;  %v982_v52 = vadd.f32 %v878_v32, %v733_v46  ;;  %v1198_v59 = vsel %vm616_vm1, %v1196_v27, %v1197_v47  ;;  %v1912_v26 = vmul.f32 %v5394_v34, %v5540_v18 }
  0x3d   : > { %v1764_v17 = vrot.slane %v1664_v58, 1  ;;  %v5583_v12 = vmul.f32 %v5394_v34, %v5542_v10  ;;  %v1590_v28 = vmul.f32 %v5404_v38, %v5540_v18  ;;  %v1765_v36 = vrot.slane %v1665_v54, 1 }
  0x3e   : > { %v1869_v60 = vadd.f32 %v1763_v44, %v1621_v50  ;;  %v1054_v61 = vadd.f32 %v1022_v31, %v982_v52  ;;  %v1446_v62 = vsel %vm865_vm2, %v1444_v48, %v1445_v13  ;;  %v2012_v63 = vrot.slane %v1912_v26, 2 }
  0x3f   : > { %v5588_v4 = vmax.f32 %v347_v55, 0.0  ;;  %v528_v53 = vmul.f32 %v5336_v2, %v5430_v0  ;;  %v453_v8 = vmul.f32 %v5331_v1, %v5396_v35  ;;  %v777_v16 = vmul.f32 %v5341_v3, %v5430_v0 }
  0x40   : > { %v2117_v5 = vadd.f32 %v2011_v51, %v1869_v60  ;;  %v1302_v6 = vadd.f32 %v1198_v59, %v1054_v61  ;;  %v1766_v19 = vsel %vm616_vm1, %v1764_v17, %v1765_v36  ;;  %v2013_v56 = vrot.slane %v5583_v12, 2 }
  0x41   : > { %v630_v7 = vrot.slane %v528_v53, 1  ;;  %v1098_v9 = vmul.f32 %v5351_v11, %v5507_v37  ;;  %v879_v21 = vrot.slane %v777_v16, 2  ;;  %v1023_v23 = vmul.f32 %v5373_v22, %v5457_v42 }
  0x42   : > { %5106 = vmatmul.mubr.msk.f32.gmra.mxu0 %vm2147_vm3, %v2117_v5  ;;  %v1550_v20 = vadd.f32 %v1446_v62, %v1302_v6  ;;  %v1346_v35 = vmul.f32 %v5360_v14, %v5507_v37  ;;  %v1666_v31 = vmul.f32 %v5384_v25, %v5588_v4  ;;  %v1914_v49 = vmul.f32 %v5394_v34, %v5588_v4 }
  0x43   : > { %v631_v0 = vsel %vm616_vm1, %v628_v29, %v630_v7  ;;  %v1199_v24 = vrot.slane %v1098_v9, 1  ;;  %v880_v15 = vsel %vm865_vm2, %v877_v39, %v879_v21  ;;  %v2014_v43 = vsel %vm865_vm2, %v2012_v63, %v2013_v56 }
  0x44   : > { %v1622_v33 = vadd.f32 %v1590_v28, %v1550_v20  ;;  %v734_v40 = vadd.f32 %v631_v0, %v453_v8  ;;  %v1447_v27 = vrot.slane %v1346_v35, 2  ;;  %v1591_v29 = vmul.f32 %v5404_v38, %v5542_v10 }
  0x45   : > { %v1200_v45 = vsel %vm616_vm1, %v1197_v47, %v1199_v24  ;;  %v1767_v46 = vrot.slane %v1666_v31, 1  ;;  %v2015_v48 = vrot.slane %v1914_v49, 2  ;;  %v5617_v58 = vmax.f32 %v348_v57, 0.0 }
  0x46   : > { %v1870_v32 = vadd.f32 %v1766_v19, %v1622_v33  ;;  %v983_v44 = vadd.f32 %v880_v15, %v734_v40  ;;  %v1448_v50 = vsel %vm865_vm2, %v1445_v13, %v1447_v27  ;;  %v5621_v39 = vmax.f32 %v349_v30, 0.0  ;;  %v350_v33 = vld [vmem:[%s5326_s16 + $0x88] sm:$0x3] }
  0x47   : > { %v1768_v51 = vsel %vm616_vm1, %v1765_v36, %v1767_v46  ;;  %v529_v52 = vmul.f32 %v5336_v2, %v5455_v41  ;;  %v530_v55 = vmul.f32 %v5336_v2, %v5457_v42  ;;  %v778_v59 = vmul.f32 %v5341_v3, %v5455_v41 }
  0x48   : > { %v2118_v54 = vadd.f32 %v2014_v43, %v1870_v32  ;;  %v1055_v47 = vadd.f32 %v1023_v23, %v983_v44  ;;  %v454_v17 = vmul.f32 %v5331_v1, %v5455_v41  ;;  %v779_v13 = vmul.f32 %v5341_v3, %v5457_v42 }
  0x49   : > { %v632_v26 = vrot.slane %v529_v52, 1  ;;  %v1099_v12 = vmul.f32 %v5351_v11, %v5540_v18  ;;  %v633_v61 = vrot.slane %v530_v55, 1  ;;  %v881_v28 = vrot.slane %v778_v59, 2 }
  0x4a   : > { %5108 = vmatprep.mubr.msk.f32.mxu0 %vm2147_vm3, %v2118_v54  ;;  %v1303_v60 = vadd.f32 %v1200_v45, %v1055_v47  ;;  %v1100_v36 = vmul.f32 %v5351_v11, %v5542_v10  ;;  %v882_v62 = vrot.slane %v779_v13, 2  ;;  %v1024_v63 = vmul.f32 %v5373_v22, %v5540_v18 }
  0x4b   : > { %v1347_v41 = vmul.f32 %v5360_v14, %v5540_v18  ;;  %v1348_v53 = vmul.f32 %v5360_v14, %v5542_v10  ;;  %v634_v6 = vsel %vm616_vm1, %v632_v26, %v633_v61  ;;  %v1201_v8 = vrot.slane %v1099_v12, 1  ;;  %v351_v12 = vld [vmem:[%s5326_s16 + $0x90] sm:$0xff] }
  0x4c   : > { %v1551_v5 = vadd.f32 %v1448_v50, %v1303_v60  ;;  %v1202_v16 = vrot.slane %v1100_v36, 1  ;;  %v735_v19 = vadd.f32 %v634_v6, %v454_v17  ;;  %v883_v7 = vsel %vm865_vm2, %v881_v28, %v882_v62 }
  0x4d   : > { %v1449_v9 = vrot.slane %v1347_v41, 2  ;;  %v1450_v20 = vrot.slane %v1348_v53, 2  ;;  %v2016_v23 = vsel %vm865_vm2, %v2013_v56, %v2015_v48  ;;  %v1667_v35 = vmul.f32 %v5384_v25, %v5617_v58  ;;  %v352_v41 = vld [vmem:[%s5326_s16 + $0x98] sm:$0xff] }
  0x4e   : > { %v1623_v21 = vadd.f32 %v1591_v29, %v1551_v5  ;;  %v1668_v0 = vmul.f32 %v5384_v25, %v5621_v39  ;;  %v984_v24 = vadd.f32 %v883_v7, %v735_v19  ;;  %v1592_v31 = vmul.f32 %v5404_v38, %v5617_v58 }
  0x4f   : > { %v1915_v49 = vmul.f32 %v5394_v34, %v5617_v58  ;;  %v5657_v57 = vmul.f32 %v5394_v34, %v5621_v39  ;;  %v1203_v56 = vsel %vm616_vm1, %v1201_v8, %v1202_v16  ;;  %v1769_v15 = vrot.slane %v1667_v35, 1 }
  0x50   : > { %v1871_v40 = vadd.f32 %v1768_v51, %v1623_v21  ;;  %v1770_v27 = vrot.slane %v1668_v0, 1  ;;  %v1056_v30 = vadd.f32 %v1024_v63, %v984_v24  ;;  %v1451_v43 = vsel %vm865_vm2, %v1449_v9, %v1450_v20 }
  0x51   : > { %v2017_v45 = vrot.slane %v1915_v49, 2  ;;  %v2018_v29 = vrot.slane %v5657_v57, 2  ;;  %v5663_v32 = vmax.f32 %v350_v33, 0.0  ;;  %v531_v44 = vmul.f32 %v5336_v2, %v5507_v37 }
  0x52   : > { %v2119_v46 = vadd.f32 %v2016_v23, %v1871_v40  ;;  %v780_v48 = vmul.f32 %v5341_v3, %v5507_v37  ;;  %v1304_v50 = vadd.f32 %v1203_v56, %v1056_v30  ;;  %v1771_v51 = vsel %vm616_vm1, %v1769_v15, %v1770_v27 }
  0x53   : > { %v455_v52 = vmul.f32 %v5331_v1, %v5457_v42  ;;  %v1101_v54 = vmul.f32 %v5351_v11, %v5588_v4  ;;  %v2019_v47 = vsel %vm865_vm2, %v2017_v45, %v2018_v29  ;;  %v635_v55 = vrot.slane %v531_v44, 1 }
  0x54   : > { %5109 = vmatmul.mubr.msk.f32.gmra.mxu0 %vm2147_vm3, %v2119_v46  ;;  %v884_v59 = vrot.slane %v780_v48, 2  ;;  %v1349_v37 = vmul.f32 %v5360_v14, %v5588_v4  ;;  %v1552_v17 = vadd.f32 %v1451_v43, %v1304_v50  ;;  %v1669_v42 = vmul.f32 %v5384_v25, %v5663_v32 }
  0x55   : > { %v1204_v26 = vrot.slane %v1101_v54, 1  ;;  %v1917_v13 = vmul.f32 %v5394_v34, %v5663_v32  ;;  %v636_v60 = vsel %vm616_vm1, %v633_v61, %v635_v55  ;;  %v1025_v36 = vmul.f32 %v5373_v22, %v5542_v10 }
  0x56   : > { %v885_v28 = vsel %vm865_vm2, %v882_v62, %v884_v59  ;;  %v1452_v63 = vrot.slane %v1349_v37, 2  ;;  %v1624_v53 = vadd.f32 %v1592_v31, %v1552_v17  ;;  %v736_v5 = vadd.f32 %v636_v60, %v455_v52 }
  0x57   : > { %v1593_v6 = vmul.f32 %v5404_v38, %v5621_v39  ;;  %v1772_v8 = vrot.slane %v1669_v42, 1  ;;  %v1205_v19 = vsel %vm616_vm1, %v1202_v16, %v1204_v26  ;;  %v2020_v9 = vrot.slane %v1917_v13, 2 }
  0x58   : > { %v1453_v7 = vsel %vm865_vm2, %v1450_v20, %v1452_v63  ;;  %v5694_v21 = vmax.f32 %v351_v12, 0.0  ;;  %v1872_v61 = vadd.f32 %v1771_v51, %v1624_v53  ;;  %v985_v62 = vadd.f32 %v885_v28, %v736_v5  ;;  %v353_v28 = vld [vmem:[%s5326_s16 + $0xa0] sm:$0x3] }
  0x59   : > { %v5696_v23 = vmax.f32 %v352_v41, 0.0  ;;  %v532_v35 = vmul.f32 %v5336_v2, %v5540_v18  ;;  %v456_v0 = vmul.f32 %v5331_v1, %v5540_v18  ;;  %v533_v24 = vmul.f32 %v5336_v2, %v5542_v10 }
  0x5a   : > { %v781_v16 = vmul.f32 %v5341_v3, %v5540_v18  ;;  %v782_v20 = vmul.f32 %v5341_v3, %v5542_v10  ;;  %v2120_v31 = vadd.f32 %v2019_v47, %v1872_v61  ;;  %v1057_v49 = vadd.f32 %v1025_v36, %v985_v62 }
  0x5b   : > { %v1773_v33 = vsel %vm616_vm1, %v1770_v27, %v1772_v8  ;;  %v637_v40 = vrot.slane %v532_v35, 1  ;;  %v638_v56 = vrot.slane %v533_v24, 1  ;;  %v1102_v43 = vmul.f32 %v5351_v11, %v5617_v58 }
  0x5c   : > { %v886_v15 = vrot.slane %v781_v16, 2  ;;  %v887_v30 = vrot.slane %v782_v20, 2  ;;  %5111 = vmatprep.mubr.msk.f32.mxu0 %vm2147_vm3, %v2120_v31  ;;  %v1305_v45 = vadd.f32 %v1205_v19, %v1057_v49  ;;  %v1103_v18 = vmul.f32 %v5351_v11, %v5621_v39 }
  0x5d   : > { %v1350_v46 = vmul.f32 %v5360_v14, %v5617_v58  ;;  %v1351_v44 = vmul.f32 %v5360_v14, %v5621_v39  ;;  %v639_v27 = vsel %vm616_vm1, %v637_v40, %v638_v56  ;;  %v1026_v50 = vmul.f32 %v5373_v22, %v5617_v58 }
  0x5e   : > { %v888_v48 = vsel %vm865_vm2, %v886_v15, %v887_v30  ;;  %v1206_v51 = vrot.slane %v1102_v43, 1  ;;  %v1553_v52 = vadd.f32 %v1453_v7, %v1305_v45  ;;  %v737_v54 = vadd.f32 %v639_v27, %v456_v0 }
  0x5f   : > { %v1207_v47 = vrot.slane %v1103_v18, 1  ;;  %v1454_v55 = vrot.slane %v1350_v46, 2  ;;  %v1455_v59 = vrot.slane %v1351_v44, 2  ;;  %v1670_v37 = vmul.f32 %v5384_v25, %v5694_v21  ;;  %v354_v18 = vld [vmem:[%s5326_s16 + $0xa8] sm:$0xff]  ;;  %v355_v46 = vld [vmem:[%s5326_s16 + $0xb0] sm:$0xff] }
  0x60   : > { %v1671_v17 = vmul.f32 %v5384_v25, %v5696_v23  ;;  %v1918_v26 = vmul.f32 %v5394_v34, %v5694_v21  ;;  %v1625_v42 = vadd.f32 %v1593_v6, %v1553_v52  ;;  %v2021_v13 = vsel %vm865_vm2, %v2018_v29, %v2020_v9 }
  0x61   : > { %v986_v12 = vadd.f32 %v888_v48, %v737_v54  ;;  %v5733_v60 = vmul.f32 %v5394_v34, %v5696_v23  ;;  %v1208_v36 = vsel %vm616_vm1, %v1206_v51, %v1207_v47  ;;  %v1594_v63 = vmul.f32 %v5404_v38, %v5694_v21 }
  0x62   : > { %v1774_v41 = vrot.slane %v1670_v37, 1  ;;  %v1775_v53 = vrot.slane %v1671_v17, 1  ;;  %v1873_v5 = vadd.f32 %v1773_v33, %v1625_v42  ;;  %v2022_v6 = vrot.slane %v1918_v26, 2 }
  0x63   : > { %v1058_v8 = vadd.f32 %v1026_v50, %v986_v12  ;;  %v2023_v57 = vrot.slane %v5733_v60, 2  ;;  %v1456_v29 = vsel %vm865_vm2, %v1454_v55, %v1455_v59  ;;  %v5741_v19 = vmax.f32 %v353_v28, 0.0 }
  0x64   : > { %v534_v7 = vmul.f32 %v5336_v2, %v5588_v4  ;;  %v783_v9 = vmul.f32 %v5341_v3, %v5588_v4  ;;  %v2121_v61 = vadd.f32 %v2021_v13, %v1873_v5  ;;  %v1776_v35 = vsel %vm616_vm1, %v1774_v41, %v1775_v53 }
  0x65   : > { %v1306_v62 = vadd.f32 %v1208_v36, %v1058_v8  ;;  %v457_v0 = vmul.f32 %v5331_v1, %v5542_v10  ;;  %v1104_v20 = vmul.f32 %v5351_v11, %v5663_v32  ;;  %v1352_v31 = vmul.f32 %v5360_v14, %v5663_v32 }
  0x66   : > { %v640_v24 = vrot.slane %v534_v7, 1  ;;  %v889_v16 = vrot.slane %v783_v9, 2  ;;  %5112 = vmatmul.mubr.msk.f32.gmra.mxu0 %vm2147_vm3, %v2121_v61  ;;  %v2024_v49 = vsel %vm865_vm2, %v2022_v6, %v2023_v57  ;;  %v1672_v33 = vmul.f32 %v5384_v25, %v5741_v19 }
  0x67   : > { %v1554_v4 = vadd.f32 %v1456_v29, %v1306_v62  ;;  %v1920_v10 = vmul.f32 %v5394_v34, %v5741_v19  ;;  %v1209_v43 = vrot.slane %v1104_v20, 1  ;;  %v1457_v45 = vrot.slane %v1352_v31, 2 }
  0x68   : > { %v641_v40 = vsel %vm616_vm1, %v638_v56, %v640_v24  ;;  %v890_v15 = vsel %vm865_vm2, %v887_v30, %v889_v16  ;;  %v1027_v48 = vmul.f32 %v5373_v22, %v5621_v39  ;;  %v1777_v50 = vrot.slane %v1672_v33, 1 }
  0x69   : > { %v1626_v44 = vadd.f32 %v1594_v63, %v1554_v4  ;;  %v738_v27 = vadd.f32 %v641_v40, %v457_v0  ;;  %v1210_v51 = vsel %vm616_vm1, %v1207_v47, %v1209_v43  ;;  %v1458_v52 = vsel %vm865_vm2, %v1455_v59, %v1457_v45  ;;  %v356_v43 = vld [vmem:[%s5326_s16 + $0xb8] sm:$0x3] }
  0x6a   : > { %v1595_v54 = vmul.f32 %v5404_v38, %v5696_v23  ;;  %v2025_v56 = vrot.slane %v1920_v10, 2  ;;  %v5772_v37 = vmax.f32 %v354_v18, 0.0  ;;  %v5774_v17 = vmax.f32 %v355_v46, 0.0 }
  0x6b   : > { %v1874_v55 = vadd.f32 %v1776_v35, %v1626_v44  ;;  %v987_v30 = vadd.f32 %v890_v15, %v738_v27  ;;  %v1778_v26 = vsel %vm616_vm1, %v1775_v53, %v1777_v50  ;;  %v535_v42 = vmul.f32 %v5336_v2, %v5617_v58 }
  0x6c   : > { %v536_v47 = vmul.f32 %v5336_v2, %v5621_v39  ;;  %v784_v59 = vmul.f32 %v5341_v3, %v5617_v58  ;;  %v458_v28 = vmul.f32 %v5331_v1, %v5617_v58  ;;  %v785_v36 = vmul.f32 %v5341_v3, %v5621_v39 }
  0x6d   : > { %v2122_v13 = vadd.f32 %v2024_v49, %v1874_v55  ;;  %v1059_v12 = vadd.f32 %v1027_v48, %v987_v30  ;;  %v642_v63 = vrot.slane %v535_v42, 1  ;;  %v1105_v5 = vmul.f32 %v5351_v11, %v5694_v21 }
  0x6e   : > { %v643_v41 = vrot.slane %v536_v47, 1  ;;  %v891_v53 = vrot.slane %v784_v59, 2  ;;  %v892_v6 = vrot.slane %v785_v36, 2  ;;  %v1106_v29 = vmul.f32 %v5351_v11, %v5696_v23 }
  0x6f   : > { %5114 = vmatprep.mubr.msk.f32.mxu0 %vm2147_vm3, %v2122_v13  ;;  %v1307_v8 = vadd.f32 %v1210_v51, %v1059_v12  ;;  %v1353_v7 = vmul.f32 %v5360_v14, %v5694_v21  ;;  %v1028_v9 = vmul.f32 %v5373_v22, %v5694_v21  ;;  %v1211_v61 = vrot.slane %v1105_v5, 1 }
  0x70   : > { %v644_v58 = vsel %vm616_vm1, %v642_v63, %v643_v41  ;;  %v1354_v62 = vmul.f32 %v5360_v14, %v5696_v23  ;;  %v893_v24 = vsel %vm865_vm2, %v891_v53, %v892_v6  ;;  %v1212_v16 = vrot.slane %v1106_v29, 1 }
  0x71   : > { %v1555_v35 = vadd.f32 %v1458_v52, %v1307_v8  ;;  %v739_v0 = vadd.f32 %v644_v58, %v458_v28  ;;  %v1459_v20 = vrot.slane %v1353_v7, 2  ;;  %v1673_v4 = vmul.f32 %v5384_v25, %v5772_v37  ;;  %v357_v8 = vld [vmem:[%s5326_s16 + $0xc0] sm:$0xff] }
  0x72   : > { %v1460_v31 = vrot.slane %v1354_v62, 2  ;;  %v5804_v49 = vmul.f32 %v5384_v25, %v5774_v17  ;;  %v2026_v10 = vsel %vm865_vm2, %v2023_v57, %v2025_v56  ;;  %v1921_v15 = vmul.f32 %v5394_v34, %v5772_v37 }
  0x73   : > { %v1627_v33 = vadd.f32 %v1595_v54, %v1555_v35  ;;  %v988_v40 = vadd.f32 %v893_v24, %v739_v0  ;;  %v1213_v45 = vsel %vm616_vm1, %v1211_v61, %v1212_v16  ;;  %v1779_v18 = vrot.slane %v1673_v4, 1  ;;  %v358_v61 = vld [vmem:[%s5326_s16 + $0xc8] sm:$0xff] }
  0x74   : > { %v1780_v46 = vrot.slane %v5804_v49, 1  ;;  %v5816_v44 = vmul.f32 %v5394_v34, %v5774_v17  ;;  %v1461_v60 = vsel %vm865_vm2, %v1459_v20, %v1460_v31  ;;  %v1596_v57 = vmul.f32 %v5404_v38, %v5772_v37 }
  0x75   : > { %v1875_v27 = vadd.f32 %v1778_v26, %v1627_v33  ;;  %v1060_v48 = vadd.f32 %v1028_v9, %v988_v40  ;;  %v2027_v50 = vrot.slane %v1921_v15, 2  ;;  %v5822_v52 = vmax.f32 %v356_v43, 0.0 }
  0x76   : > { %v2028_v51 = vrot.slane %v5816_v44, 2  ;;  %v537_v54 = vmul.f32 %v5336_v2, %v5663_v32  ;;  %v459_v30 = vmul.f32 %v5331_v1, %v5621_v39  ;;  %v786_v26 = vmul.f32 %v5341_v3, %v5663_v32 }
  0x77   : > { %v2123_v56 = vadd.f32 %v2026_v10, %v1875_v27  ;;  %v1308_v55 = vadd.f32 %v1213_v45, %v1060_v48  ;;  %v1781_v42 = vsel %vm616_vm1, %v1779_v18, %v1780_v46  ;;  %v1107_v59 = vmul.f32 %v5351_v11, %v5741_v19 }
  0x78   : > { %v645_v47 = vrot.slane %v537_v54, 1  ;;  %v1355_v13 = vmul.f32 %v5360_v14, %v5741_v19  ;;  %v894_v28 = vrot.slane %v786_v26, 2  ;;  %v1029_v39 = vmul.f32 %v5373_v22, %v5696_v23 }
  0x79   : > { %5115 = vmatmul.mubr.msk.f32.gmra.mxu0 %vm2147_vm3, %v2123_v56  ;;  %v1556_v12 = vadd.f32 %v1461_v60, %v1308_v55  ;;  %v1675_v32 = vmul.f32 %v5384_v25, %v5822_v52  ;;  %v1214_v63 = vrot.slane %v1107_v59, 1  ;;  %v1923_v5 = vmul.f32 %v5394_v34, %v5822_v52 }
  0x7a   : > { %v646_v36 = vsel %vm616_vm1, %v643_v41, %v645_v47  ;;  %v1462_v53 = vrot.slane %v1355_v13, 2  ;;  %v2029_v7 = vsel %vm865_vm2, %v2027_v50, %v2028_v51  ;;  %v895_v9 = vsel %vm865_vm2, %v892_v6, %v894_v28 }
  0x7b   : > { %v1628_v29 = vadd.f32 %v1596_v57, %v1556_v12  ;;  %v740_v58 = vadd.f32 %v646_v36, %v459_v30  ;;  %v1215_v62 = vsel %vm616_vm1, %v1212_v16, %v1214_v63  ;;  %v1597_v41 = vmul.f32 %v5404_v38, %v5774_v17 }
  0x7c   : > { %v1463_v35 = vsel %vm865_vm2, %v1460_v31, %v1462_v53  ;;  %v1782_v0 = vrot.slane %v1675_v32, 1  ;;  %v2030_v4 = vrot.slane %v1923_v5, 2  ;;  %v5855_v33 = vmax.f32 %v357_v8, 0.0 }
  0x7d   : > { %v1876_v24 = vadd.f32 %v1781_v42, %v1628_v29  ;;  %v989_v20 = vadd.f32 %v895_v9, %v740_v58  ;;  %v5857_v10 = vmax.f32 %v358_v61, 0.0  ;;  %v460_v40 = vmul.f32 %v5331_v1, %v5694_v21  ;;  %v5920_v29 = vld [vmem:[%s8594_s1 + $0x1] ss:$0 sm:$0xff] }
  0x7e   : > { %v538_v6 = vmul.f32 %v5336_v2, %v5694_v21  ;;  %v5865_v16 = vmul.f32 %v5336_v2, %v5696_v23  ;;  %v787_v43 = vmul.f32 %v5341_v3, %v5694_v21  ;;  %v5871_v45 = vmul.f32 %v5341_v3, %v5696_v23 }
  0x7f   : > { %v2124_v31 = vadd.f32 %v2029_v7, %v1876_v24  ;;  %v1061_v15 = vadd.f32 %v1029_v39, %v989_v20  ;;  %v1030_v1 = vmul.f32 %v5373_v22, %v5772_v37  ;;  %v1108_v48 = vmul.f32 %v5351_v11, %v5772_v37  ;;  %v359_v39 = vld [vmem:[%s5326_s16 + $0xd0] sm:$0x3]  ;;  %v5943_v20 = vld [vmem:[%s8594_s1 + $0x4] ss:$0 sm:$0xff] }
  0x80   : > { %v647_v18 = vrot.slane %v538_v6, 1  ;;  %v648_v27 = vrot.slane %v5865_v16, 1  ;;  %v896_v60 = vrot.slane %v787_v43, 2  ;;  %v897_v57 = vrot.slane %v5871_v45, 2  ;;  %v5958_v16 = vld [vmem:[%s8594_s1 + $0x5] ss:$0 sm:$0xff] }
  0x81   : > { %5117 = vmatprep.mubr.msk.f32.mxu0 %vm2147_vm3, %v2124_v31  ;;  %v1309_v2 = vadd.f32 %v1215_v62, %v1061_v15  ;;  %v5882_v21 = vmul.f32 %v5351_v11, %v5774_v17  ;;  %v1216_v50 = vrot.slane %v1108_v48, 1  ;;  %v1356_v22 = vmul.f32 %v5360_v14, %v5772_v37  ;;  %v5934_v62 = vld [vmem:[%s8594_s1 + $0x2] ss:$0 sm:$0xff]  ;;  %v5966_v45 = vld [vmem:[%s8594_s1 + $0x7] ss:$0 sm:$0xff]  ;;  %v360_v48 = vld [vmem:[%s5326_s16 + $0xd8] sm:$0xff] }
  0x82   : > { %v649_v3 = vsel %vm616_vm1, %v647_v18, %v648_v27  ;;  %v5889_v54 = vmul.f32 %v5360_v14, %v5774_v17  ;;  %v898_v30 = vsel %vm865_vm2, %v896_v60, %v897_v57  ;;  %v1783_v11 = vsel %vm616_vm1, %v1780_v46, %v1782_v0 }
  0x83   : > { %v1557_v56 = vadd.f32 %v1463_v35, %v1309_v2  ;;  %v741_v55 = vadd.f32 %v649_v3, %v460_v40  ;;  %v1217_v26 = vrot.slane %v5882_v21, 1  ;;  %v1464_v42 = vrot.slane %v1356_v22, 2 }
  0x84   : > { %v1465_v47 = vrot.slane %v5889_v54, 2  ;;  %v1676_v59 = vmul.f32 %v5384_v25, %v5855_v33  ;;  %v2031_v14 = vsel %vm865_vm2, %v2028_v51, %v2030_v4  ;;  %v1677_v28 = vmul.f32 %v5384_v25, %v5857_v10  ;;  %v5980_v54 = vld [vmem:[%s8594_s1 + $0x6] ss:$0 sm:$0xff] }
  0x85   : > { %v1629_v13 = vadd.f32 %v1597_v41, %v1557_v56  ;;  %v990_v12 = vadd.f32 %v898_v30, %v741_v55  ;;  %v1218_v49 = vsel %vm616_vm1, %v1216_v50, %v1217_v26  ;;  %v1924_v46 = vmul.f32 %v5394_v34, %v5855_v33  ;;  %v361_v50 = vld [vmem:[%s5326_s16 + $0xe0] sm:$0xff] }
  0x86   : > { %v1784_v32 = vrot.slane %v1676_v59, 1  ;;  %v5910_v36 = vmul.f32 %v5394_v34, %v5857_v10  ;;  %v1598_v44 = vmul.f32 %v5404_v38, %v5855_v33  ;;  %v1785_v51 = vrot.slane %v1677_v28, 1  ;;  %v5927_v38 = vld [vmem:[%s8594_s1] ss:$0 sm:$0xff] }
  0x87   : > { %v1877_v63 = vadd.f32 %v1783_v11, %v1629_v13  ;;  %v1062_v53 = vadd.f32 %v1030_v1, %v990_v12  ;;  %v1466_v5 = vsel %vm865_vm2, %v1464_v42, %v1465_v47  ;;  %v2032_v25 = vrot.slane %v1924_v46, 2 }
  0x88   : > { %v5915_v8 = vmax.f32 %v359_v39, 0.0  ;;  %v540_v7 = vmul.f32 %v5920_v29, %v5741_v19  ;;  %v461_v61 = vmul.f32 %v5927_v38, %v5696_v23  ;;  %v789_v35 = vmul.f32 %v5934_v62, %v5741_v19  ;;  %v5951_v19 = vld [vmem:[%s8594_s1 + $0x3] ss:$0 sm:$0xff] }
  0x89   : > { %v2125_v58 = vadd.f32 %v2031_v14, %v1877_v63  ;;  %v1310_v9 = vadd.f32 %v1218_v49, %v1062_v53  ;;  %v1786_v41 = vsel %vm616_vm1, %v1784_v32, %v1785_v51  ;;  %v2033_v0 = vrot.slane %v5910_v36, 2 }
  0x8a   : > { %v650_v24 = vrot.slane %v540_v7, 1  ;;  %v1110_v23 = vmul.f32 %v5943_v20, %v5822_v52  ;;  %v899_v40 = vrot.slane %v789_v35, 2  ;;  %v1031_v6 = vmul.f32 %v5951_v19, %v5774_v17 }
  0x8b   : > { %5118 = vmatmul.mubr.msk.f32.gmra.mxu0 %vm2147_vm3, %v2125_v58  ;;  %v1558_v4 = vadd.f32 %v1466_v5, %v1310_v9  ;;  %v1358_v31 = vmul.f32 %v5958_v16, %v5822_v52  ;;  %v1678_v18 = vmul.f32 %v5966_v45, %v5915_v8  ;;  %v1926_v1 = vmul.f32 %v5394_v34, %v5915_v8 }
  0x8c   : > { %v651_v15 = vsel %vm616_vm1, %v648_v27, %v650_v24  ;;  %v1219_v43 = vrot.slane %v1110_v23, 1  ;;  %v900_v21 = vsel %vm865_vm2, %v897_v57, %v899_v40  ;;  %v2034_v27 = vsel %vm865_vm2, %v2032_v25, %v2033_v0 }
  0x8d   : > { %v1630_v2 = vadd.f32 %v1598_v44, %v1558_v4  ;;  %v742_v60 = vadd.f32 %v651_v15, %v461_v61  ;;  %v1467_v3 = vrot.slane %v1358_v31, 2  ;;  %v1599_v56 = vmul.f32 %v5980_v54, %v5857_v10 }
  0x8e   : > { %v1220_v22 = vsel %vm616_vm1, %v1217_v26, %v1219_v43  ;;  %v1787_v34 = vrot.slane %v1678_v18, 1  ;;  %v2035_v11 = vrot.slane %v1926_v1, 2  ;;  %v5984_v42 = vmax.f32 %v360_v48, 0.0  ;;  %v6023_v18 = vld [vmem:[%s8594_s1 + $0x8] ss:$0 sm:$0xff] }
  0x8f   : > { %v1878_v55 = vadd.f32 %v1786_v41, %v1630_v2  ;;  %v991_v30 = vadd.f32 %v900_v21, %v742_v60  ;;  %v1468_v57 = vsel %vm865_vm2, %v1465_v47, %v1467_v3  ;;  %v5988_v13 = vmax.f32 %v361_v50, 0.0  ;;  %v362_v48 = vld [vmem:[%s5326_s16 + $0xe8] sm:$0x3] }
  0x90   : > { %v1788_v59 = vsel %vm616_vm1, %v1785_v51, %v1787_v34  ;;  %v541_v26 = vmul.f32 %v5920_v29, %v5772_v37  ;;  %v542_v28 = vmul.f32 %v5920_v29, %v5774_v17  ;;  %v790_v39 = vmul.f32 %v5934_v62, %v5772_v37 }
  0x91   : > { %v2126_v14 = vadd.f32 %v2034_v27, %v1878_v55  ;;  %v1063_v12 = vadd.f32 %v1031_v6, %v991_v30  ;;  %v462_v49 = vmul.f32 %v5927_v38, %v5772_v37  ;;  %v791_v47 = vmul.f32 %v5934_v62, %v5774_v17 }
  0x92   : > { %v652_v32 = vrot.slane %v541_v26, 1  ;;  %v1111_v46 = vmul.f32 %v5943_v20, %v5855_v33  ;;  %v653_v63 = vrot.slane %v542_v28, 1  ;;  %v901_v53 = vrot.slane %v790_v39, 2 }
  0x93   : > { %5120 = vmatprep.mubr.msk.f32.mxu0 %vm2147_vm3, %v2126_v14  ;;  %v1311_v36 = vadd.f32 %v1220_v22, %v1063_v12  ;;  %v1112_v44 = vmul.f32 %v5943_v20, %v5857_v10  ;;  %v902_v51 = vrot.slane %v791_v47, 2  ;;  %v1032_v5 = vmul.f32 %v5951_v19, %v5855_v33 }
  0x94   : > { %v1359_v37 = vmul.f32 %v5958_v16, %v5855_v33  ;;  %v1360_v25 = vmul.f32 %v5958_v16, %v5857_v10  ;;  %v654_v58 = vsel %vm616_vm1, %v652_v32, %v653_v63  ;;  %v1221_v9 = vrot.slane %v1111_v46, 1  ;;  %v363_v46 = vld [vmem:[%s5326_s16 + $0xf0] sm:$0xff] }
  0x95   : > { %v1559_v7 = vadd.f32 %v1468_v57, %v1311_v36  ;;  %v1222_v61 = vrot.slane %v1112_v44, 1  ;;  %v743_v35 = vadd.f32 %v654_v58, %v462_v49  ;;  %v903_v41 = vsel %vm865_vm2, %v901_v53, %v902_v51 }
  0x96   : > { %v1469_v24 = vrot.slane %v1359_v37, 2  ;;  %v1470_v23 = vrot.slane %v1360_v25, 2  ;;  %v2036_v40 = vsel %vm865_vm2, %v2033_v0, %v2035_v11  ;;  %v1679_v6 = vmul.f32 %v5966_v45, %v5984_v42  ;;  %v364_v37 = vld [vmem:[%s5326_s16 + $0xf8] sm:$0xff] }
  0x97   : > { %v1631_v4 = vadd.f32 %v1599_v56, %v1559_v7  ;;  %v1680_v31 = vmul.f32 %v5966_v45, %v5988_v13  ;;  %v992_v15 = vadd.f32 %v903_v41, %v743_v35  ;;  %v1600_v43 = vmul.f32 %v5980_v54, %v5984_v42 }
  0x98   : > { %v1927_v1 = vmul.f32 %v6023_v18, %v5984_v42  ;;  %v6029_v0 = vmul.f32 %v6023_v18, %v5988_v13  ;;  %v1223_v60 = vsel %vm616_vm1, %v1221_v9, %v1222_v61  ;;  %v1789_v21 = vrot.slane %v1679_v6, 1 }
  0x99   : > { %v1879_v2 = vadd.f32 %v1788_v59, %v1631_v4  ;;  %v1790_v3 = vrot.slane %v1680_v31, 1  ;;  %v1064_v50 = vadd.f32 %v1032_v5, %v992_v15  ;;  %v1471_v27 = vsel %vm865_vm2, %v1469_v24, %v1470_v23 }
  0x9a   : > { %v2037_v22 = vrot.slane %v1927_v1, 2  ;;  %v2038_v56 = vrot.slane %v6029_v0, 2  ;;  %v6035_v55 = vmax.f32 %v362_v48, 0.0  ;;  %v543_v30 = vmul.f32 %v5920_v29, %v5822_v52 }
  0x9b   : > { %v2127_v34 = vadd.f32 %v2036_v40, %v1879_v2  ;;  %v792_v11 = vmul.f32 %v5934_v62, %v5822_v52  ;;  %v1312_v57 = vadd.f32 %v1223_v60, %v1064_v50  ;;  %v1791_v59 = vsel %vm616_vm1, %v1789_v21, %v1790_v3 }
  0x9c   : > { %v463_v26 = vmul.f32 %v5927_v38, %v5774_v17  ;;  %v1113_v14 = vmul.f32 %v5943_v20, %v5915_v8  ;;  %v2039_v12 = vsel %vm865_vm2, %v2037_v22, %v2038_v56  ;;  %v655_v28 = vrot.slane %v543_v30, 1 }
  0x9d   : > { %5121 = vmatmul.mubr.msk.f32.gmra.mxu0 %vm2147_vm3, %v2127_v34  ;;  %v904_v39 = vrot.slane %v792_v11, 2  ;;  %v1361_v52 = vmul.f32 %v5958_v16, %v5915_v8  ;;  %v1560_v49 = vadd.f32 %v1471_v27, %v1312_v57  ;;  %v1681_v17 = vmul.f32 %v5966_v45, %v6035_v55 }
  0x9e   : > { %v1224_v32 = vrot.slane %v1113_v14, 1  ;;  %v1929_v47 = vmul.f32 %v6023_v18, %v6035_v55  ;;  %v656_v36 = vsel %vm616_vm1, %v653_v63, %v655_v28  ;;  %v1033_v44 = vmul.f32 %v5951_v19, %v5857_v10 }
  0x9f   : > { %v905_v53 = vsel %vm865_vm2, %v902_v51, %v904_v39  ;;  %v1472_v5 = vrot.slane %v1361_v52, 2  ;;  %v1632_v25 = vadd.f32 %v1600_v43, %v1560_v49  ;;  %v744_v7 = vadd.f32 %v656_v36, %v463_v26 }
  0xa0   : > { %v1601_v58 = vmul.f32 %v5980_v54, %v5988_v13  ;;  %v1792_v9 = vrot.slane %v1681_v17, 1  ;;  %v1225_v35 = vsel %vm616_vm1, %v1222_v61, %v1224_v32  ;;  %v2040_v24 = vrot.slane %v1929_v47, 2 }
  0xa1   : > { %v1473_v41 = vsel %vm865_vm2, %v1470_v23, %v1472_v5  ;;  %v6066_v4 = vmax.f32 %v363_v46, 0.0  ;;  %v1880_v63 = vadd.f32 %v1791_v59, %v1632_v25  ;;  %v993_v51 = vadd.f32 %v905_v53, %v744_v7  ;;  %v365_v53 = vld [vmem:[%s5326_s16 + $0x100] sm:$0x3] }
  0xa2   : > { %v6068_v40 = vmax.f32 %v364_v37, 0.0  ;;  %v544_v6 = vmul.f32 %v5920_v29, %v5855_v33  ;;  %v464_v31 = vmul.f32 %v5927_v38, %v5855_v33  ;;  %v545_v15 = vmul.f32 %v5920_v29, %v5857_v10 }
  0xa3   : > { %v793_v61 = vmul.f32 %v5934_v62, %v5855_v33  ;;  %v794_v23 = vmul.f32 %v5934_v62, %v5857_v10  ;;  %v2128_v43 = vadd.f32 %v2039_v12, %v1880_v63  ;;  %v1065_v1 = vadd.f32 %v1033_v44, %v993_v51 }
  0xa4   : > { %v1793_v48 = vsel %vm616_vm1, %v1790_v3, %v1792_v9  ;;  %v657_v2 = vrot.slane %v544_v6, 1  ;;  %v658_v60 = vrot.slane %v545_v15, 1  ;;  %v1114_v27 = vmul.f32 %v5943_v20, %v5984_v42 }
  0xa5   : > { %v906_v21 = vrot.slane %v793_v61, 2  ;;  %v907_v50 = vrot.slane %v794_v23, 2  ;;  %5123 = vmatprep.mubr.msk.f32.mxu0 %vm2147_vm3, %v2128_v43  ;;  %v1313_v22 = vadd.f32 %v1225_v35, %v1065_v1  ;;  %v1115_v33 = vmul.f32 %v5943_v20, %v5988_v13 }
  0xa6   : > { %v1362_v34 = vmul.f32 %v5958_v16, %v5984_v42  ;;  %v1363_v30 = vmul.f32 %v5958_v16, %v5988_v13  ;;  %v659_v3 = vsel %vm616_vm1, %v657_v2, %v658_v60  ;;  %v1034_v57 = vmul.f32 %v5951_v19, %v5984_v42 }
  0xa7   : > { %v908_v11 = vsel %vm865_vm2, %v906_v21, %v907_v50  ;;  %v1226_v59 = vrot.slane %v1114_v27, 1  ;;  %v1561_v26 = vadd.f32 %v1473_v41, %v1313_v22  ;;  %v745_v14 = vadd.f32 %v659_v3, %v464_v31 }
  0xa8   : > { %v1227_v12 = vrot.slane %v1115_v33, 1  ;;  %v1474_v28 = vrot.slane %v1362_v34, 2  ;;  %v1475_v39 = vrot.slane %v1363_v30, 2  ;;  %v1682_v52 = vmul.f32 %v5966_v45, %v6066_v4  ;;  %v366_v33 = vld [vmem:[%s5326_s16 + $0x108] sm:$0xff]  ;;  %v367_v34 = vld [vmem:[%s5326_s16 + $0x110] sm:$0xff] }
  0xa9   : > { %v1683_v49 = vmul.f32 %v5966_v45, %v6068_v40  ;;  %v1930_v32 = vmul.f32 %v6023_v18, %v6066_v4  ;;  %v1633_v17 = vadd.f32 %v1601_v58, %v1561_v26  ;;  %v2041_v47 = vsel %vm865_vm2, %v2038_v56, %v2040_v24 }
  0xaa   : > { %v994_v46 = vadd.f32 %v908_v11, %v745_v14  ;;  %v6105_v36 = vmul.f32 %v6023_v18, %v6068_v40  ;;  %v1228_v44 = vsel %vm616_vm1, %v1226_v59, %v1227_v12  ;;  %v1602_v5 = vmul.f32 %v5980_v54, %v6066_v4 }
  0xab   : > { %v1794_v37 = vrot.slane %v1682_v52, 1  ;;  %v1795_v25 = vrot.slane %v1683_v49, 1  ;;  %v1881_v7 = vadd.f32 %v1793_v48, %v1633_v17  ;;  %v2042_v58 = vrot.slane %v1930_v32, 2 }
  0xac   : > { %v1066_v9 = vadd.f32 %v1034_v57, %v994_v46  ;;  %v2043_v0 = vrot.slane %v6105_v36, 2  ;;  %v1476_v56 = vsel %vm865_vm2, %v1474_v28, %v1475_v39  ;;  %v6113_v35 = vmax.f32 %v365_v53, 0.0 }
  0xad   : > { %v546_v41 = vmul.f32 %v5920_v29, %v5915_v8  ;;  %v795_v24 = vmul.f32 %v5934_v62, %v5915_v8  ;;  %v2129_v63 = vadd.f32 %v2041_v47, %v1881_v7  ;;  %v1796_v6 = vsel %vm616_vm1, %v1794_v37, %v1795_v25 }
  0xae   : > { %v1314_v51 = vadd.f32 %v1228_v44, %v1066_v9  ;;  %v465_v31 = vmul.f32 %v5927_v38, %v5857_v10  ;;  %v1116_v23 = vmul.f32 %v5943_v20, %v6035_v55  ;;  %v1364_v43 = vmul.f32 %v5958_v16, %v6035_v55 }
  0xaf   : > { %v660_v15 = vrot.slane %v546_v41, 1  ;;  %v909_v61 = vrot.slane %v795_v24, 2  ;;  %5124 = vmatmul.mubr.msk.f32.gmra.mxu0 %vm2147_vm3, %v2129_v63  ;;  %v2044_v1 = vsel %vm865_vm2, %v2042_v58, %v2043_v0  ;;  %v1684_v48 = vmul.f32 %v5966_v45, %v6113_v35 }
  0xb0   : > { %v1562_v8 = vadd.f32 %v1476_v56, %v1314_v51  ;;  %v1932_v10 = vmul.f32 %v6023_v18, %v6113_v35  ;;  %v1229_v27 = vrot.slane %v1116_v23, 1  ;;  %v1477_v22 = vrot.slane %v1364_v43, 2 }
  0xb1   : > { %v661_v2 = vsel %vm616_vm1, %v658_v60, %v660_v15  ;;  %v910_v21 = vsel %vm865_vm2, %v907_v50, %v909_v61  ;;  %v1035_v11 = vmul.f32 %v5951_v19, %v5988_v13  ;;  %v1797_v57 = vrot.slane %v1684_v48, 1 }
  0xb2   : > { %v1634_v30 = vadd.f32 %v1602_v5, %v1562_v8  ;;  %v746_v3 = vadd.f32 %v661_v2, %v465_v31  ;;  %v1230_v59 = vsel %vm616_vm1, %v1227_v12, %v1229_v27  ;;  %v1478_v26 = vsel %vm865_vm2, %v1475_v39, %v1477_v22  ;;  %v368_v27 = vld [vmem:[%s5326_s16 + $0x118] sm:$0x3] }
  0xb3   : > { %v1603_v14 = vmul.f32 %v5980_v54, %v6068_v40  ;;  %v2045_v60 = vrot.slane %v1932_v10, 2  ;;  %v6144_v52 = vmax.f32 %v366_v33, 0.0  ;;  %v6146_v49 = vmax.f32 %v367_v34, 0.0 }
  0xb4   : > { %v1882_v28 = vadd.f32 %v1796_v6, %v1634_v30  ;;  %v995_v50 = vadd.f32 %v910_v21, %v746_v3  ;;  %v1798_v32 = vsel %vm616_vm1, %v1795_v25, %v1797_v57  ;;  %v547_v17 = vmul.f32 %v5920_v29, %v5984_v42 }
  0xb5   : > { %v548_v12 = vmul.f32 %v5920_v29, %v5988_v13  ;;  %v796_v39 = vmul.f32 %v5934_v62, %v5984_v42  ;;  %v466_v53 = vmul.f32 %v5927_v38, %v5984_v42  ;;  %v797_v44 = vmul.f32 %v5934_v62, %v5988_v13 }
  0xb6   : > { %v2130_v47 = vadd.f32 %v2044_v1, %v1882_v28  ;;  %v1067_v46 = vadd.f32 %v1035_v11, %v995_v50  ;;  %v662_v5 = vrot.slane %v547_v17, 1  ;;  %v1117_v7 = vmul.f32 %v5943_v20, %v6066_v4 }
  0xb7   : > { %v663_v37 = vrot.slane %v548_v12, 1  ;;  %v911_v25 = vrot.slane %v796_v39, 2  ;;  %v912_v58 = vrot.slane %v797_v44, 2  ;;  %v1118_v56 = vmul.f32 %v5943_v20, %v6068_v40 }
  0xb8   : > { %5126 = vmatprep.mubr.msk.f32.mxu0 %vm2147_vm3, %v2130_v47  ;;  %v1315_v9 = vadd.f32 %v1230_v59, %v1067_v46  ;;  %v1365_v41 = vmul.f32 %v5958_v16, %v6066_v4  ;;  %v1036_v24 = vmul.f32 %v5951_v19, %v6066_v4  ;;  %v1231_v63 = vrot.slane %v1117_v7, 1 }
  0xb9   : > { %v664_v42 = vsel %vm616_vm1, %v662_v5, %v663_v37  ;;  %v1366_v51 = vmul.f32 %v5958_v16, %v6068_v40  ;;  %v913_v15 = vsel %vm865_vm2, %v911_v25, %v912_v58  ;;  %v1232_v61 = vrot.slane %v1118_v56, 1 }
  0xba   : > { %v1563_v6 = vadd.f32 %v1478_v26, %v1315_v9  ;;  %v747_v31 = vadd.f32 %v664_v42, %v466_v53  ;;  %v1479_v23 = vrot.slane %v1365_v41, 2  ;;  %v1685_v8 = vmul.f32 %v5966_v45, %v6144_v52  ;;  %v369_v9 = vld [vmem:[%s5326_s16 + $0x120] sm:$0xff] }
  0xbb   : > { %v1480_v43 = vrot.slane %v1366_v51, 2  ;;  %v6176_v1 = vmul.f32 %v5966_v45, %v6146_v49  ;;  %v2046_v10 = vsel %vm865_vm2, %v2043_v0, %v2045_v60  ;;  %v1933_v21 = vmul.f32 %v6023_v18, %v6144_v52 }
  0xbc   : > { %v1635_v48 = vadd.f32 %v1603_v14, %v1563_v6  ;;  %v996_v2 = vadd.f32 %v913_v15, %v747_v31  ;;  %v1233_v22 = vsel %vm616_vm1, %v1231_v63, %v1232_v61  ;;  %v1799_v33 = vrot.slane %v1685_v8, 1  ;;  %v370_v63 = vld [vmem:[%s5326_s16 + $0x128] sm:$0xff] }
  0xbd   : > { %v1800_v34 = vrot.slane %v6176_v1, 1  ;;  %v6188_v30 = vmul.f32 %v6023_v18, %v6146_v49  ;;  %v1481_v36 = vsel %vm865_vm2, %v1479_v23, %v1480_v43  ;;  %v1604_v0 = vmul.f32 %v5980_v54, %v6144_v52 }
  0xbe   : > { %v1883_v3 = vadd.f32 %v1798_v32, %v1635_v48  ;;  %v1068_v11 = vadd.f32 %v1036_v24, %v996_v2  ;;  %v2047_v57 = vrot.slane %v1933_v21, 2  ;;  %v6194_v26 = vmax.f32 %v368_v27, 0.0 }
  0xbf   : > { %v2048_v59 = vrot.slane %v6188_v30, 2  ;;  %v549_v14 = vmul.f32 %v5920_v29, %v6035_v55  ;;  %v467_v50 = vmul.f32 %v5927_v38, %v5988_v13  ;;  %v798_v32 = vmul.f32 %v5934_v62, %v6035_v55 }
  0xc0   : > { %v2131_v60 = vadd.f32 %v2046_v10, %v1883_v3  ;;  %v1316_v28 = vadd.f32 %v1233_v22, %v1068_v11  ;;  %v1801_v17 = vsel %vm616_vm1, %v1799_v33, %v1800_v34  ;;  %v1119_v39 = vmul.f32 %v5943_v20, %v6113_v35 }
  0xc1   : > { %v665_v12 = vrot.slane %v549_v14, 1  ;;  %v1367_v47 = vmul.f32 %v5958_v16, %v6113_v35  ;;  %v914_v53 = vrot.slane %v798_v32, 2  ;;  %v1037_v13 = vmul.f32 %v5951_v19, %v6068_v40 }
  0xc2   : > { %5127 = vmatmul.mubr.msk.f32.gmra.mxu0 %vm2147_vm3, %v2131_v60  ;;  %v1564_v46 = vadd.f32 %v1481_v36, %v1316_v28  ;;  %v1687_v55 = vmul.f32 %v5966_v45, %v6194_v26  ;;  %v1234_v5 = vrot.slane %v1119_v39, 1  ;;  %v1935_v7 = vmul.f32 %v6023_v18, %v6194_v26 }
  0xc3   : > { %v666_v44 = vsel %vm616_vm1, %v663_v37, %v665_v12  ;;  %v1482_v25 = vrot.slane %v1367_v47, 2  ;;  %v2049_v41 = vsel %vm865_vm2, %v2047_v57, %v2048_v59  ;;  %v915_v24 = vsel %vm865_vm2, %v912_v58, %v914_v53 }
  0xc4   : > { %v1636_v56 = vadd.f32 %v1604_v0, %v1564_v46  ;;  %v748_v42 = vadd.f32 %v666_v44, %v467_v50  ;;  %v1235_v51 = vsel %vm616_vm1, %v1232_v61, %v1234_v5  ;;  %v1605_v37 = vmul.f32 %v5980_v54, %v6146_v49 }
  0xc5   : > { %v1483_v6 = vsel %vm865_vm2, %v1480_v43, %v1482_v25  ;;  %v1802_v31 = vrot.slane %v1687_v55, 1  ;;  %v2050_v8 = vrot.slane %v1935_v7, 2  ;;  %v6227_v48 = vmax.f32 %v369_v9, 0.0  ;;  %v371_v9 = vld [vmem:[%s5326_s16 + $0x130] sm:$0x3] }
  0xc6   : > { %v1884_v15 = vadd.f32 %v1801_v17, %v1636_v56  ;;  %v997_v23 = vadd.f32 %v915_v24, %v748_v42  ;;  %v6229_v10 = vmax.f32 %v370_v63, 0.0  ;;  %v468_v2 = vmul.f32 %v5927_v38, %v6066_v4 }
  0xc7   : > { %v550_v58 = vmul.f32 %v5920_v29, %v6066_v4  ;;  %v551_v61 = vmul.f32 %v5920_v29, %v6068_v40  ;;  %v799_v27 = vmul.f32 %v5934_v62, %v6066_v4  ;;  %v800_v22 = vmul.f32 %v5934_v62, %v6068_v40 }
  0xc8   : > { %v2132_v43 = vadd.f32 %v2049_v41, %v1884_v15  ;;  %v1069_v21 = vadd.f32 %v1037_v13, %v997_v23  ;;  %v1038_v11 = vmul.f32 %v5951_v19, %v6144_v52  ;;  %v1120_v36 = vmul.f32 %v5943_v20, %v6144_v52 }
  0xc9   : > { %v667_v33 = vrot.slane %v550_v58, 1  ;;  %v668_v3 = vrot.slane %v551_v61, 1  ;;  %v916_v57 = vrot.slane %v799_v27, 2  ;;  %v917_v14 = vrot.slane %v800_v22, 2 }
  0xca   : > { %5129 = vmatprep.mubr.msk.f32.mxu0 %vm2147_vm3, %v2132_v43  ;;  %v1317_v0 = vadd.f32 %v1235_v51, %v1069_v21  ;;  %v1121_v60 = vmul.f32 %v5943_v20, %v6146_v49  ;;  %v1236_v28 = vrot.slane %v1120_v36, 1  ;;  %v1368_v50 = vmul.f32 %v5958_v16, %v6144_v52 }
  0xcb   : > { %v669_v4 = vsel %vm616_vm1, %v667_v33, %v668_v3  ;;  %v1369_v32 = vmul.f32 %v5958_v16, %v6146_v49  ;;  %v918_v39 = vsel %vm865_vm2, %v916_v57, %v917_v14  ;;  %v1803_v46 = vsel %vm616_vm1, %v1800_v34, %v1802_v31 }
  0xcc   : > { %v1565_v17 = vadd.f32 %v1483_v6, %v1317_v0  ;;  %v749_v12 = vadd.f32 %v669_v4, %v468_v2  ;;  %v1237_v47 = vrot.slane %v1121_v60, 1  ;;  %v1484_v53 = vrot.slane %v1368_v50, 2  ;;  %v372_v0 = vld [vmem:[%s5326_s16 + $0x138] sm:$0xff]  ;;  %v373_v50 = vld [vmem:[%s5326_s16 + $0x140] sm:$0xff] }
  0xcd   : > { %v1485_v13 = vrot.slane %v1369_v32, 2  ;;  %v1688_v55 = vmul.f32 %v5966_v45, %v6227_v48  ;;  %v2051_v5 = vsel %vm865_vm2, %v2048_v59, %v2050_v8  ;;  %v1689_v7 = vmul.f32 %v5966_v45, %v6229_v10 }
  0xce   : > { %v1637_v44 = vadd.f32 %v1605_v37, %v1565_v17  ;;  %v998_v25 = vadd.f32 %v918_v39, %v749_v12  ;;  %v1238_v56 = vsel %vm616_vm1, %v1236_v28, %v1237_v47  ;;  %v1936_v34 = vmul.f32 %v6023_v18, %v6227_v48 }
  0xcf   : > { %v1804_v1 = vrot.slane %v1688_v55, 1  ;;  %v6270_v41 = vmul.f32 %v6023_v18, %v6229_v10  ;;  %v1606_v30 = vmul.f32 %v5980_v54, %v6227_v48  ;;  %v1805_v59 = vrot.slane %v1689_v7, 1 }
  0xd0   : > { %v1885_v42 = vadd.f32 %v1803_v46, %v1637_v44  ;;  %v1070_v24 = vadd.f32 %v1038_v11, %v998_v25  ;;  %v1486_v63 = vsel %vm865_vm2, %v1484_v53, %v1485_v13  ;;  %v2052_v51 = vrot.slane %v1936_v34, 2 }
  0xd1   : > { %v6275_v6 = vmax.f32 %v371_v9, 0.0  ;;  %v552_v37 = vmul.f32 %v5920_v29, %v6113_v35  ;;  %v469_v23 = vmul.f32 %v5927_v38, %v6068_v40  ;;  %v801_v8 = vmul.f32 %v5934_v62, %v6113_v35 }
  0xd2   : > { %v2133_v31 = vadd.f32 %v2051_v5, %v1885_v42  ;;  %v1318_v15 = vadd.f32 %v1238_v56, %v1070_v24  ;;  %v1806_v2 = vsel %vm616_vm1, %v1804_v1, %v1805_v59  ;;  %v2053_v58 = vrot.slane %v6270_v41, 2 }
  0xd3   : > { %v670_v61 = vrot.slane %v552_v37, 1  ;;  %v1122_v43 = vmul.f32 %v5943_v20, %v6194_v26  ;;  %v919_v27 = vrot.slane %v801_v8, 2  ;;  %v1039_v22 = vmul.f32 %v5951_v19, %v6146_v49 }
  0xd4   : > { %5130 = vmatmul.mubr.msk.f32.gmra.mxu0 %vm2147_vm3, %v2133_v31  ;;  %v1566_v21 = vadd.f32 %v1486_v63, %v1318_v15  ;;  %v1370_v40 = vmul.f32 %v5958_v16, %v6194_v26  ;;  %v1690_v11 = vmul.f32 %v5966_v45, %v6275_v6  ;;  %v1938_v36 = vmul.f32 %v6023_v18, %v6275_v6 }
  0xd5   : > { %v671_v35 = vsel %vm616_vm1, %v668_v3, %v670_v61  ;;  %v1239_v33 = vrot.slane %v1122_v43, 1  ;;  %v920_v4 = vsel %vm865_vm2, %v917_v14, %v919_v27  ;;  %v2054_v32 = vsel %vm865_vm2, %v2052_v51, %v2053_v58 }
  0xd6   : > { %v1638_v57 = vadd.f32 %v1606_v30, %v1566_v21  ;;  %v750_v60 = vadd.f32 %v671_v35, %v469_v23  ;;  %v1487_v28 = vrot.slane %v1370_v40, 2  ;;  %v1607_v3 = vmul.f32 %v5980_v54, %v6229_v10 }
  0xd7   : > { %v1240_v17 = vsel %vm616_vm1, %v1237_v47, %v1239_v33  ;;  %v1807_v12 = vrot.slane %v1690_v11, 1  ;;  %v2055_v53 = vrot.slane %v1938_v36, 2  ;;  %v6304_v55 = vmax.f32 %v372_v0, 0.0 }
  0xd8   : > { %v1886_v39 = vadd.f32 %v1806_v2, %v1638_v57  ;;  %v999_v46 = vadd.f32 %v920_v4, %v750_v60  ;;  %v1488_v44 = vsel %vm865_vm2, %v1485_v13, %v1487_v28  ;;  %v6308_v14 = vmax.f32 %v373_v50, 0.0  ;;  %v374_v57 = vld [vmem:[%s5326_s16 + $0x148] sm:$0x3] }
  0xd9   : > { %v1808_v5 = vsel %vm616_vm1, %v1805_v59, %v1807_v12  ;;  %v553_v25 = vmul.f32 %v5920_v29, %v6144_v52  ;;  %v554_v9 = vmul.f32 %v5920_v29, %v6146_v49  ;;  %v802_v56 = vmul.f32 %v5934_v62, %v6144_v52 }
  0xda   : > { %v2134_v7 = vadd.f32 %v2054_v32, %v1886_v39  ;;  %v1071_v47 = vadd.f32 %v1039_v22, %v999_v46  ;;  %v470_v1 = vmul.f32 %v5927_v38, %v6144_v52  ;;  %v803_v13 = vmul.f32 %v5934_v62, %v6146_v49 }
  0xdb   : > { %v672_v34 = vrot.slane %v553_v25, 1  ;;  %v1123_v41 = vmul.f32 %v5943_v20, %v6227_v48  ;;  %v673_v24 = vrot.slane %v554_v9, 1  ;;  %v921_v30 = vrot.slane %v802_v56, 2 }
  0xdc   : > { %5132 = vmatprep.mubr.msk.f32.mxu0 %vm2147_vm3, %v2134_v7  ;;  %v1319_v42 = vadd.f32 %v1240_v17, %v1071_v47  ;;  %v1124_v59 = vmul.f32 %v5943_v20, %v6229_v10  ;;  %v922_v63 = vrot.slane %v803_v13, 2  ;;  %v1040_v51 = vmul.f32 %v5951_v19, %v6227_v48 }
  0xdd   : > { %v1371_v52 = vmul.f32 %v5958_v16, %v6227_v48  ;;  %v1372_v37 = vmul.f32 %v5958_v16, %v6229_v10  ;;  %v674_v15 = vsel %vm616_vm1, %v672_v34, %v673_v24  ;;  %v1241_v23 = vrot.slane %v1123_v41, 1  ;;  %v375_v41 = vld [vmem:[%s5326_s16 + $0x150] sm:$0xff] }
  0xde   : > { %v1567_v31 = vadd.f32 %v1488_v44, %v1319_v42  ;;  %v1242_v8 = vrot.slane %v1124_v59, 1  ;;  %v751_v2 = vadd.f32 %v674_v15, %v470_v1  ;;  %v923_v61 = vsel %vm865_vm2, %v921_v30, %v922_v63 }
  0xdf   : > { %v1489_v43 = vrot.slane %v1371_v52, 2  ;;  %v1490_v21 = vrot.slane %v1372_v37, 2  ;;  %v2056_v22 = vsel %vm865_vm2, %v2053_v58, %v2055_v53  ;;  %v1691_v40 = vmul.f32 %v5966_v45, %v6304_v55  ;;  %v376_v52 = vld [vmem:[%s5326_s16 + $0x158] sm:$0xff] }
  0xe0   : > { %v1639_v27 = vadd.f32 %v1607_v3, %v1567_v31  ;;  %v1692_v35 = vmul.f32 %v5966_v45, %v6308_v14  ;;  %v1000_v33 = vadd.f32 %v923_v61, %v751_v2  ;;  %v1608_v11 = vmul.f32 %v5980_v54, %v6304_v55 }
  0xe1   : > { %v1939_v36 = vmul.f32 %v6023_v18, %v6304_v55  ;;  %v6344_v0 = vmul.f32 %v6023_v18, %v6308_v14  ;;  %v1243_v58 = vsel %vm616_vm1, %v1241_v23, %v1242_v8  ;;  %v1809_v4 = vrot.slane %v1691_v40, 1 }
  0xe2   : > { %v1887_v60 = vadd.f32 %v1808_v5, %v1639_v27  ;;  %v1810_v28 = vrot.slane %v1692_v35, 1  ;;  %v1072_v50 = vadd.f32 %v1040_v51, %v1000_v33  ;;  %v1491_v32 = vsel %vm865_vm2, %v1489_v43, %v1490_v21 }
  0xe3   : > { %v2057_v17 = vrot.slane %v1939_v36, 2  ;;  %v2058_v3 = vrot.slane %v6344_v0, 2  ;;  %v6350_v39 = vmax.f32 %v374_v57, 0.0  ;;  %v555_v46 = vmul.f32 %v5920_v29, %v6194_v26 }
  0xe4   : > { %v2135_v12 = vadd.f32 %v2056_v22, %v1887_v60  ;;  %v804_v53 = vmul.f32 %v5934_v62, %v6194_v26  ;;  %v1320_v44 = vadd.f32 %v1243_v58, %v1072_v50  ;;  %v1811_v5 = vsel %vm616_vm1, %v1809_v4, %v1810_v28 }
  0xe5   : > { %v471_v25 = vmul.f32 %v5927_v38, %v6146_v49  ;;  %v1125_v7 = vmul.f32 %v5943_v20, %v6275_v6  ;;  %v2059_v47 = vsel %vm865_vm2, %v2057_v17, %v2058_v3  ;;  %v675_v9 = vrot.slane %v555_v46, 1 }
  0xe6   : > { %5133 = vmatmul.mubr.msk.f32.gmra.mxu0 %vm2147_vm3, %v2135_v12  ;;  %v924_v56 = vrot.slane %v804_v53, 2  ;;  %v1373_v26 = vmul.f32 %v5958_v16, %v6275_v6  ;;  %v1568_v1 = vadd.f32 %v1491_v32, %v1320_v44  ;;  %v1693_v49 = vmul.f32 %v5966_v45, %v6350_v39 }
  0xe7   : > { %v1244_v34 = vrot.slane %v1125_v7, 1  ;;  %v1941_v13 = vmul.f32 %v6023_v18, %v6350_v39  ;;  %v676_v42 = vsel %vm616_vm1, %v673_v24, %v675_v9  ;;  %v1041_v59 = vmul.f32 %v5951_v19, %v6229_v10 }
  0xe8   : > { %v925_v30 = vsel %vm865_vm2, %v922_v63, %v924_v56  ;;  %v1492_v51 = vrot.slane %v1373_v26, 2  ;;  %v1640_v37 = vadd.f32 %v1608_v11, %v1568_v1  ;;  %v752_v31 = vadd.f32 %v676_v42, %v471_v25 }
  0xe9   : > { %v1609_v15 = vmul.f32 %v5980_v54, %v6308_v14  ;;  %v1812_v23 = vrot.slane %v1693_v49, 1  ;;  %v1245_v2 = vsel %vm616_vm1, %v1242_v8, %v1244_v34  ;;  %v2060_v43 = vrot.slane %v1941_v13, 2 }
  0xea   : > { %v1493_v61 = vsel %vm865_vm2, %v1490_v21, %v1492_v51  ;;  %v6381_v27 = vmax.f32 %v375_v41, 0.0  ;;  %v1888_v24 = vadd.f32 %v1811_v5, %v1640_v37  ;;  %v1001_v63 = vadd.f32 %v925_v30, %v752_v31  ;;  %v377_v30 = vld [vmem:[%s5326_s16 + $0x160] sm:$0x3] }
  0xeb   : > { %v6383_v22 = vmax.f32 %v376_v52, 0.0  ;;  %v556_v40 = vmul.f32 %v5920_v29, %v6227_v48  ;;  %v472_v35 = vmul.f32 %v5927_v38, %v6227_v48  ;;  %v557_v33 = vmul.f32 %v5920_v29, %v6229_v10 }
  0xec   : > { %v805_v8 = vmul.f32 %v5934_v62, %v6227_v48  ;;  %v806_v21 = vmul.f32 %v5934_v62, %v6229_v10  ;;  %v2136_v11 = vadd.f32 %v2059_v47, %v1888_v24  ;;  %v1073_v36 = vadd.f32 %v1041_v59, %v1001_v63 }
  0xed   : > { %v1813_v57 = vsel %vm616_vm1, %v1810_v28, %v1812_v23  ;;  %v677_v60 = vrot.slane %v556_v40, 1  ;;  %v678_v58 = vrot.slane %v557_v33, 1  ;;  %v1126_v32 = vmul.f32 %v5943_v20, %v6304_v55 }
  0xee   : > { %v926_v4 = vrot.slane %v805_v8, 2  ;;  %v927_v50 = vrot.slane %v806_v21, 2  ;;  %5135 = vmatprep.mubr.msk.f32.mxu0 %vm2147_vm3, %v2136_v11  ;;  %v1321_v17 = vadd.f32 %v1245_v2, %v1073_v36  ;;  %v1127_v48 = vmul.f32 %v5943_v20, %v6308_v14 }
  0xef   : > { %v1374_v12 = vmul.f32 %v5958_v16, %v6304_v55  ;;  %v1375_v46 = vmul.f32 %v5958_v16, %v6308_v14  ;;  %v679_v28 = vsel %vm616_vm1, %v677_v60, %v678_v58  ;;  %v1042_v44 = vmul.f32 %v5951_v19, %v6304_v55  ;;  %v4428_v60 = vld [vmem:[%s8599_s6] sm:$0xf] }
  0xf0   : > { %v928_v53 = vsel %vm865_vm2, %v926_v4, %v927_v50  ;;  %v1246_v5 = vrot.slane %v1126_v32, 1  ;;  %v1569_v25 = vadd.f32 %v1493_v61, %v1321_v17  ;;  %v753_v7 = vadd.f32 %v679_v28, %v472_v35  ;;  %5150 = vmatprep.subr.msk.mxu1 %vm2244_vm0, %v4428_v60 }
  0xf1   : > { %v1247_v47 = vrot.slane %v1127_v48, 1  ;;  %v1494_v9 = vrot.slane %v1374_v12, 2  ;;  %v1495_v56 = vrot.slane %v1375_v46, 2  ;;  %v1694_v26 = vmul.f32 %v5966_v45, %v6381_v27  ;;  %v378_v12 = vld [vmem:[%s5326_s16 + $0x168] sm:$0xff]  ;;  %v379_v46 = vld [vmem:[%s5326_s16 + $0x170] sm:$0xff]  ;;  %5151 = vmatpush3.msk.msra.mxu1 %vm2244_vm0, %v4428_v60 }
  0xf2   : > { %v1695_v1 = vmul.f32 %v5966_v45, %v6383_v22  ;;  %v1942_v34 = vmul.f32 %v6023_v18, %v6381_v27  ;;  %v1641_v49 = vadd.f32 %v1609_v15, %v1569_v25  ;;  %v2061_v13 = vsel %vm865_vm2, %v2058_v3, %v2060_v43 }
  0xf3   : > { %v1002_v41 = vadd.f32 %v928_v53, %v753_v7  ;;  %v6420_v42 = vmul.f32 %v6023_v18, %v6383_v22  ;;  %v1248_v59 = vsel %vm616_vm1, %v1246_v5, %v1247_v47  ;;  %v1610_v51 = vmul.f32 %v5980_v54, %v6381_v27 }
  0xf4   : > { %v1814_v52 = vrot.slane %v1694_v26, 1  ;;  %v1815_v37 = vrot.slane %v1695_v1, 1  ;;  %v1889_v31 = vadd.f32 %v1813_v57, %v1641_v49  ;;  %v2062_v15 = vrot.slane %v1942_v34, 2 }
  0xf5   : > { %v1074_v23 = vadd.f32 %v1042_v44, %v1002_v41  ;;  %v2063_v0 = vrot.slane %v6420_v42, 2  ;;  %v1496_v3 = vsel %vm865_vm2, %v1494_v9, %v1495_v56  ;;  %v6428_v2 = vmax.f32 %v377_v30, 0.0 }
  0xf6   : > { %v558_v61 = vmul.f32 %v5920_v29, %v6275_v6  ;;  %v807_v43 = vmul.f32 %v5934_v62, %v6275_v6  ;;  %v2137_v24 = vadd.f32 %v2061_v13, %v1889_v31  ;;  %v1816_v40 = vsel %vm616_vm1, %v1814_v52, %v1815_v37 }
  0xf7   : > { %v1322_v63 = vadd.f32 %v1248_v59, %v1074_v23  ;;  %v473_v35 = vmul.f32 %v5927_v38, %v6229_v10  ;;  %v1128_v21 = vmul.f32 %v5943_v20, %v6350_v39  ;;  %v1376_v11 = vmul.f32 %v5958_v16, %v6350_v39 }
  0xf8   : > { %v680_v33 = vrot.slane %v558_v61, 1  ;;  %v929_v8 = vrot.slane %v807_v43, 2  ;;  %5136 = vmatmul.mubr.msk.f32.gmra.mxu0 %vm2147_vm3, %v2137_v24  ;;  %v2064_v36 = vsel %vm865_vm2, %v2062_v15, %v2063_v0  ;;  %v1696_v57 = vmul.f32 %v5966_v45, %v6428_v2 }
  0xf9   : > { %v1570_v6 = vadd.f32 %v1496_v3, %v1322_v63  ;;  %v1944_v10 = vmul.f32 %v6023_v18, %v6428_v2  ;;  %v1249_v17 = vrot.slane %v1128_v21, 1  ;;  %v1497_v48 = vrot.slane %v1376_v11, 2  ;;  %v6505_v3 = vld [vmem:[%s8594_s1 + $0x5] ss:$0 sm:$0xff] }
  0xfa   : > { %v681_v4 = vsel %vm616_vm1, %v678_v58, %v680_v33  ;;  %v930_v32 = vsel %vm865_vm2, %v927_v50, %v929_v8  ;;  %v1043_v45 = vmul.f32 %v5951_v19, %v6308_v14  ;;  %v1817_v44 = vrot.slane %v1696_v57, 1  ;;  %v380_v57 = vld [vmem:[%s5326_s16 + $0x178] sm:$0x3] }
  0xfb   : > { %v1642_v28 = vadd.f32 %v1610_v51, %v1570_v6  ;;  %v754_v53 = vadd.f32 %v681_v4, %v473_v35  ;;  %v1250_v5 = vsel %vm616_vm1, %v1247_v47, %v1249_v17  ;;  %v1498_v58 = vsel %vm865_vm2, %v1495_v56, %v1497_v48 }
  0xfc   : > { %v1611_v50 = vmul.f32 %v5980_v54, %v6383_v22  ;;  %v2065_v25 = vrot.slane %v1944_v10, 2  ;;  %v6464_v26 = vmax.f32 %v378_v12, 0.0  ;;  %v6466_v1 = vmax.f32 %v379_v46, 0.0 }
  0xfd   : > { %v1890_v7 = vadd.f32 %v1816_v40, %v1642_v28  ;;  %v1003_v9 = vadd.f32 %v930_v32, %v754_v53  ;;  %v1818_v34 = vsel %vm616_vm1, %v1815_v37, %v1817_v44  ;;  %v559_v49 = vmul.f32 %v5920_v29, %v6304_v55 }
  0xfe   : > { %v6473_v47 = vmul.f32 %v5920_v29, %v6308_v14  ;;  %v808_v56 = vmul.f32 %v5934_v62, %v6304_v55  ;;  %v474_v41 = vmul.f32 %v5927_v38, %v6304_v55  ;;  %v6481_v30 = vmul.f32 %v5934_v62, %v6308_v14  ;;  %v6491_v38 = vld [vmem:[%s8594_s1 + $0x4] ss:$0 sm:$0xff] }
  0xff   : > { %v2138_v54 = vadd.f32 %v2064_v36, %v1890_v7  ;;  %v1075_v13 = vadd.f32 %v1043_v45, %v1003_v9  ;;  %v682_v59 = vrot.slane %v559_v49, 1  ;;  %v1129_v29 = vmul.f32 %v5943_v20, %v6381_v27  ;;  %v6548_v45 = vld [vmem:[%s8594_s1 + $0x1] ss:$0 sm:$0xff]  ;;  %v6562_v7 = vld [vmem:[%s8594_s1 + $0x2] ss:$0 sm:$0xff] }
 0x100   : > { %v683_v51 = vrot.slane %v6473_v47, 1  ;;  %v931_v52 = vrot.slane %v808_v56, 2  ;;  %v932_v31 = vrot.slane %v6481_v30, 2  ;;  %v6495_v62 = vmul.f32 %v6491_v38, %v6383_v22 }
 0x101   : > { %5138 = vmatprep.mubr.msk.f32.mxu0 %vm2147_vm3, %v2138_v54  ;;  %v1323_v37 = vadd.f32 %v1250_v5, %v1075_v13  ;;  %v1377_v55 = vmul.f32 %v5958_v16, %v6381_v27  ;;  %v1044_v20 = vmul.f32 %v5951_v19, %v6381_v27  ;;  %v1251_v15 = vrot.slane %v1129_v29, 1  ;;  %v6514_v19 = vld [vmem:[%s8594_s1 + $0x7] ss:$0 sm:$0xff] }
 0x102   : > { %v684_v23 = vsel %vm616_vm1, %v682_v59, %v683_v51  ;;  %v1378_v61 = vmul.f32 %v6505_v3, %v6383_v22  ;;  %v933_v63 = vsel %vm865_vm2, %v931_v52, %v932_v31  ;;  %v1252_v16 = vrot.slane %v6495_v62, 1 }
 0x103   : > { %v1571_v43 = vadd.f32 %v1498_v58, %v1323_v37  ;;  %v755_v24 = vadd.f32 %v684_v23, %v474_v41  ;;  %v1499_v40 = vrot.slane %v1377_v55, 2  ;;  %v1697_v33 = vmul.f32 %v6514_v19, %v6464_v26  ;;  %v381_v37 = vld [vmem:[%s5326_s16 + $0x180] sm:$0xff] }
 0x104   : > { %v1500_v35 = vrot.slane %v1378_v61, 2  ;;  %v6520_v8 = vmul.f32 %v6514_v19, %v6466_v1  ;;  %v2066_v11 = vsel %vm865_vm2, %v2063_v0, %v2065_v25  ;;  %v1945_v36 = vmul.f32 %v6023_v18, %v6464_v26  ;;  %v6538_v0 = vld [vmem:[%s8594_s1 + $0x6] ss:$0 sm:$0xff] }
 0x105   : > { %v1643_v21 = vadd.f32 %v1611_v50, %v1571_v43  ;;  %v1004_v6 = vadd.f32 %v933_v63, %v755_v24  ;;  %v1253_v10 = vsel %vm616_vm1, %v1251_v15, %v1252_v16  ;;  %v1819_v60 = vrot.slane %v1697_v33, 1  ;;  %v6555_v50 = vld [vmem:[%s8594_s1] ss:$0 sm:$0xff]  ;;  %v382_v15 = vld [vmem:[%s5326_s16 + $0x188] sm:$0xff] }
 0x106   : > { %v1820_v4 = vrot.slane %v6520_v8, 1  ;;  %v6532_v32 = vmul.f32 %v6023_v18, %v6466_v1  ;;  %v1501_v42 = vsel %vm865_vm2, %v1499_v40, %v1500_v35  ;;  %v1612_v12 = vmul.f32 %v6538_v0, %v6464_v26 }
 0x107   : > { %v1891_v17 = vadd.f32 %v1818_v34, %v1643_v21  ;;  %v1076_v48 = vadd.f32 %v1044_v20, %v1004_v6  ;;  %v2067_v46 = vrot.slane %v1945_v36, 2  ;;  %v6543_v53 = vmax.f32 %v380_v57, 0.0 }
 0x108   : > { %v2068_v28 = vrot.slane %v6532_v32, 2  ;;  %v561_v44 = vmul.f32 %v6548_v45, %v6350_v39  ;;  %v475_v25 = vmul.f32 %v6555_v50, %v6308_v14  ;;  %v810_v9 = vmul.f32 %v6562_v7, %v6350_v39  ;;  %v6577_v39 = vld [vmem:[%s8594_s1 + $0x3] ss:$0 sm:$0xff] }
 0x109   : > { %v2139_v5 = vadd.f32 %v2066_v11, %v1891_v17  ;;  %v1324_v58 = vadd.f32 %v1253_v10, %v1076_v48  ;;  %v1821_v34 = vsel %vm616_vm1, %v1819_v60, %v1820_v4  ;;  %v1131_v47 = vmul.f32 %v6491_v38, %v6428_v2 }
 0x10a   : > { %v685_v49 = vrot.slane %v561_v44, 1  ;;  %v1379_v14 = vmul.f32 %v6505_v3, %v6428_v2  ;;  %v934_v54 = vrot.slane %v810_v9, 2  ;;  %v1045_v13 = vmul.f32 %v6577_v39, %v6383_v22 }
 0x10b   : > { %5139 = vmatmul.mubr.msk.f32.gmra.mxu0 %vm2147_vm3, %v2139_v5  ;;  %v1572_v56 = vadd.f32 %v1501_v42, %v1324_v58  ;;  %v1699_v41 = vmul.f32 %v6514_v19, %v6543_v53  ;;  %v1254_v59 = vrot.slane %v1131_v47, 1  ;;  %v1947_v29 = vmul.f32 %v6023_v18, %v6543_v53 }
 0x10c   : > { %v686_v30 = vsel %vm616_vm1, %v683_v51, %v685_v49  ;;  %v1502_v52 = vrot.slane %v1379_v14, 2  ;;  %v2069_v55 = vsel %vm865_vm2, %v2067_v46, %v2068_v28  ;;  %v935_v20 = vsel %vm865_vm2, %v932_v31, %v934_v54 }
 0x10d   : > { %v1644_v62 = vadd.f32 %v1612_v12, %v1572_v56  ;;  %v756_v23 = vadd.f32 %v686_v30, %v475_v25  ;;  %v1255_v61 = vsel %vm616_vm1, %v1252_v16, %v1254_v59  ;;  %v1613_v51 = vmul.f32 %v6538_v0, %v6466_v1 }
 0x10e   : > { %v1503_v43 = vsel %vm865_vm2, %v1500_v35, %v1502_v52  ;;  %v1822_v24 = vrot.slane %v1699_v41, 1  ;;  %v2070_v40 = vrot.slane %v1947_v29, 2  ;;  %v6596_v33 = vmax.f32 %v381_v37, 0.0  ;;  %v383_v29 = vld [vmem:[%s5326_s16 + $0x190] sm:$0x3] }
 0x10f   : > { %v1892_v63 = vadd.f32 %v1821_v34, %v1644_v62  ;;  %v1005_v18 = vadd.f32 %v935_v20, %v756_v23  ;;  %v6598_v21 = vmax.f32 %v382_v15, 0.0  ;;  %v476_v11 = vmul.f32 %v6555_v50, %v6381_v27  ;;  %v6654_v15 = vpop.f32.mrf.mxu0 }
 0x110   : > { %v562_v31 = vmul.f32 %v6548_v45, %v6381_v27  ;;  %v563_v16 = vmul.f32 %v6548_v45, %v6383_v22  ;;  %v811_v36 = vmul.f32 %v6562_v7, %v6381_v27  ;;  %v6610_v57 = vmul.f32 %v6562_v7, %v6383_v22 }
 0x111   : > { %v2140_v35 = vadd.f32 %v2069_v55, %v1892_v63  ;;  %v1077_v6 = vadd.f32 %v1045_v13, %v1005_v18  ;;  %v1046_v17 = vmul.f32 %v6577_v39, %v6464_v26  ;;  %v1132_v48 = vmul.f32 %v6491_v38, %v6464_v26 }
 0x112   : > { %v687_v10 = vrot.slane %v562_v31, 1  ;;  %v688_v60 = vrot.slane %v563_v16, 1  ;;  %v936_v12 = vrot.slane %v811_v36, 2  ;;  %v937_v46 = vrot.slane %v6610_v57, 2 }
 0x113   : > { %5141 = vmatprep.mubr.msk.f32.mxu0 %vm2147_vm3, %v2140_v35  ;;  %v1325_v42 = vadd.f32 %v1255_v61, %v1077_v6  ;;  %v1133_v27 = vmul.f32 %v6491_v38, %v6466_v1  ;;  %v1256_v5 = vrot.slane %v1132_v48, 1  ;;  %v1380_v58 = vmul.f32 %v6505_v3, %v6464_v26 }
 0x114   : > { %v689_v44 = vsel %vm616_vm1, %v687_v10, %v688_v60  ;;  %v6625_v25 = vmul.f32 %v6505_v3, %v6466_v1  ;;  %v938_v49 = vsel %vm865_vm2, %v936_v12, %v937_v46  ;;  %v1823_v14 = vsel %vm616_vm1, %v1820_v4, %v1822_v24  ;;  %v6644_v4 = vld [vmem:[%s8594_s1 + $0x8] ss:$0 sm:$0xff] }
 0x115   : > { %v1573_v9 = vadd.f32 %v1503_v43, %v1325_v42  ;;  %v757_v34 = vadd.f32 %v689_v44, %v476_v11  ;;  %v1257_v47 = vrot.slane %v1133_v27, 1  ;;  %v1504_v56 = vrot.slane %v1380_v58, 2  ;;  %v384_v27 = vld [vmem:[%s5326_s16 + $0x198] sm:$0xff] }
 0x116   : > { %v1505_v54 = vrot.slane %v6625_v25, 2  ;;  %v1700_v13 = vmul.f32 %v6514_v19, %v6596_v33  ;;  %v2071_v30 = vsel %vm865_vm2, %v2068_v28, %v2070_v40  ;;  %v1701_v52 = vmul.f32 %v6514_v19, %v6598_v21 }
 0x117   : > { %v1645_v41 = vadd.f32 %v1613_v51, %v1573_v9  ;;  %v1006_v59 = vadd.f32 %v938_v49, %v757_v34  ;;  %v1258_v8 = vsel %vm616_vm1, %v1256_v5, %v1257_v47  ;;  %v1948_v62 = vmul.f32 %v6644_v4, %v6596_v33  ;;  %v385_v9 = vld [vmem:[%s5326_s16 + $0x1a0] sm:$0xff] }
 0x118   : > { %v1824_v37 = vrot.slane %v1700_v13, 1  ;;  %v6650_v32 = vmul.f32 %v6644_v4, %v6598_v21  ;;  %v1614_v23 = vmul.f32 %v6538_v0, %v6596_v33  ;;  %v1825_v20 = vrot.slane %v1701_v52, 1 }
 0x119   : > { %v1893_v28 = vadd.f32 %v1823_v14, %v1645_v41  ;;  %v1078_v55 = vadd.f32 %v1046_v17, %v1006_v59  ;;  %v1506_v61 = vsel %vm865_vm2, %v1504_v56, %v1505_v54  ;;  %v2072_v43 = vrot.slane %v1948_v62, 2 }
 0x11a   : > { %v6657_v51 = vmax.f32 %v383_v29, 0.0  ;;  %v564_v24 = vmul.f32 %v6548_v45, %v6428_v2  ;;  %v477_v40 = vmul.f32 %v6555_v50, %v6383_v22  ;;  %v813_v11 = vmul.f32 %v6562_v7, %v6428_v2  ;;  %v6674_v2 = vpop.f32.mrf.mxu0 }
 0x11b   : > { %v2141_v63 = vadd.f32 %v2071_v30, %v1893_v28  ;;  %v1326_v18 = vadd.f32 %v1258_v8, %v1078_v55  ;;  %v1826_v31 = vsel %vm616_vm1, %v1824_v37, %v1825_v20  ;;  %v2073_v16 = vrot.slane %v6650_v32, 2 }
 0x11c   : > { %v690_v35 = vrot.slane %v564_v24, 1  ;;  %v1134_v6 = vmul.f32 %v6491_v38, %v6543_v53  ;;  %v939_v57 = vrot.slane %v813_v11, 2  ;;  %v1047_v22 = vmul.f32 %v6577_v39, %v6466_v1  ;;  %v6688_v59 = vpop.f32.mrf.mxu0 }
 0x11d   : > { %5142 = vmatmul.mubr.msk.f32.gmra.mxu0 %vm2147_vm3, %v2141_v63  ;;  %v1574_v36 = vadd.f32 %v1506_v61, %v1326_v18  ;;  %v1382_v10 = vmul.f32 %v6505_v3, %v6543_v53  ;;  %v1702_v42 = vmul.f32 %v6514_v19, %v6657_v51  ;;  %v1950_v12 = vmul.f32 %v6644_v4, %v6657_v51 }
 0x11e   : > { %v691_v17 = vsel %vm616_vm1, %v688_v60, %v690_v35  ;;  %v1259_v48 = vrot.slane %v1134_v6, 1  ;;  %v940_v58 = vsel %vm865_vm2, %v937_v46, %v939_v57  ;;  %v2074_v34 = vsel %vm865_vm2, %v2072_v43, %v2073_v16  ;;  %v6714_v63 = vpop.f32.mrf.mxu0 }
 0x11f   : > { %v1646_v44 = vadd.f32 %v1614_v23, %v1574_v36  ;;  %v758_v5 = vadd.f32 %v691_v17, %v477_v40  ;;  %v1507_v25 = vrot.slane %v1382_v10, 2  ;;  %v1615_v60 = vmul.f32 %v6538_v0, %v6598_v21 }
 0x120   : > { %v1260_v49 = vsel %vm616_vm1, %v1257_v47, %v1259_v48  ;;  %v1827_v14 = vrot.slane %v1702_v42, 1  ;;  %v2075_v41 = vrot.slane %v1950_v12, 2  ;;  %v438_v30 = vmax.f32 %v384_v27, 0.0  ;;  %v386_v27 = vld [vmem:[%s5326_s16 + $0x1a8] sm:$0x3] }
 0x121   : > { %v1894_v56 = vadd.f32 %v1826_v31, %v1646_v44  ;;  %v1007_v13 = vadd.f32 %v940_v58, %v758_v5  ;;  %v1508_v52 = vsel %vm865_vm2, %v1505_v54, %v1507_v25  ;;  %v6692_v29 = vmax.f32 %v385_v9, 0.0  ;;  %v6735_v44 = vpop.f32.mrf.mxu0 }
 0x122   : > { %v1828_v46 = vsel %vm616_vm1, %v1825_v20, %v1827_v14  ;;  %v565_v8 = vmul.f32 %v6548_v45, %v6464_v26  ;;  %v6698_v62 = vmul.f32 %v6548_v45, %v6466_v1  ;;  %v814_v32 = vmul.f32 %v6562_v7, %v6464_v26 }
 0x123   : > { %v2142_v47 = vadd.f32 %v2074_v34, %v1894_v56  ;;  %v1079_v37 = vadd.f32 %v1047_v22, %v1007_v13  ;;  %v478_v28 = vmul.f32 %v6555_v50, %v6464_v26  ;;  %v815_v55 = vmul.f32 %v6562_v7, %v6466_v1 }
 0x124   : > { %v692_v54 = vrot.slane %v565_v8, 1  ;;  %v1135_v23 = vmul.f32 %v6491_v38, %v6596_v33  ;;  %v693_v61 = vrot.slane %v6698_v62, 1  ;;  %v941_v43 = vrot.slane %v814_v32, 2 }
 0x125   : > { %5144 = vmatprep.mubr.msk.f32.mxu0 %vm2147_vm3, %v2142_v47  ;;  %v1327_v20 = vadd.f32 %v1260_v49, %v1079_v37  ;;  %v6712_v24 = vmul.f32 %v6491_v38, %v6598_v21  ;;  %v2076_v26 = vsel %vm865_vm2, %v2073_v16, %v2075_v41  ;;  %v942_v18 = vrot.slane %v815_v55, 2 }
 0x126   : > { %v1383_v40 = vmul.f32 %v6505_v3, %v6596_v33  ;;  %v6721_v11 = vmul.f32 %v6505_v3, %v6598_v21  ;;  %v694_v35 = vsel %vm616_vm1, %v692_v54, %v693_v61  ;;  %v1261_v6 = vrot.slane %v1135_v23, 1 }
 0x127   : > { %v1575_v31 = vadd.f32 %v1508_v52, %v1327_v20  ;;  %v1262_v36 = vrot.slane %v6712_v24, 1  ;;  %v759_v57 = vadd.f32 %v694_v35, %v478_v28  ;;  %v943_v22 = vsel %vm865_vm2, %v941_v43, %v942_v18  ;;  %v6782_v20 = vld [vmem:[%s8597_s4] ss:$0 sm:$0xff] }
 0x128   : > { %v1048_v16 = vmul.f32 %v6577_v39, %v6596_v33  ;;  %v1509_v10 = vrot.slane %v1383_v40, 2  ;;  %v1510_v48 = vrot.slane %v6721_v11, 2  ;;  %v1703_v42 = vmul.f32 %v6514_v19, %v438_v30 }
 0x129   : > { %v1647_v17 = vadd.f32 %v1615_v60, %v1575_v31  ;;  %v6732_v12 = vmul.f32 %v6514_v19, %v6692_v29  ;;  %v1008_v5 = vadd.f32 %v943_v22, %v759_v57  ;;  %v1616_v58 = vmul.f32 %v6538_v0, %v438_v30 }
 0x12a   : > { %v1951_v25 = vmul.f32 %v6644_v4, %v438_v30  ;;  %v6741_v33 = vmul.f32 %v6644_v4, %v6692_v29  ;;  %v1263_v34 = vsel %vm616_vm1, %v1261_v6, %v1262_v36  ;;  %v1829_v49 = vrot.slane %v1703_v42, 1 }
 0x12b   : > { %v1895_v9 = vadd.f32 %v1828_v46, %v1647_v17  ;;  %v1830_v60 = vrot.slane %v6732_v12, 1  ;;  %v1080_v14 = vadd.f32 %v1048_v16, %v1008_v5  ;;  %v440_v41 = vmax.f32 %v386_v27, 0.0  ;;  %v6751_v46 = vpop.f32.mrf.mxu0 }
 0x12c   : > { %v2077_v56 = vrot.slane %v1951_v25, 2  ;;  %v2078_v13 = vrot.slane %v6741_v33, 2  ;;  %v1511_v8 = vsel %vm865_vm2, %v1509_v10, %v1510_v48  ;;  %v567_v30 = vmul.f32 %v6548_v45, %v6543_v53  ;;  %v6763_v45 = vld [vmem:[%s8596_s3] ss:$0 sm:$0xff] }
 0x12d   : > { %v2143_v52 = vadd.f32 %v2076_v26, %v1895_v9  ;;  %v816_v47 = vmul.f32 %v6562_v7, %v6543_v53  ;;  %v1328_v37 = vadd.f32 %v1263_v34, %v1080_v14  ;;  %v1831_v62 = vsel %vm616_vm1, %v1829_v49, %v1830_v60 }
 0x12e   : > { %v479_v32 = vmul.f32 %v6555_v50, %v6466_v1  ;;  %v1137_v28 = vmul.f32 %v6491_v38, %v6657_v51  ;;  %v6769_v53 = vsel %vm865_vm2, %v2077_v56, %v2078_v13  ;;  %v695_v7 = vrot.slane %v567_v30, 1  ;;  %v6904_v30 = vld [vmem:[%s8598_s5 + $0x2] ss:$0 sm:$0xff] }
 0x12f   : > { %5145 = vmatmul.mubr.msk.f32.gmra.mxu0 %vm2147_vm3, %v2143_v52  ;;  %v944_v54 = vrot.slane %v816_v47, 2  ;;  %v1385_v1 = vmul.f32 %v6505_v3, %v6657_v51  ;;  %v1576_v50 = vadd.f32 %v1511_v8, %v1328_v37  ;;  %v6774_v38 = vmul.f32 %v6514_v19, %v440_v41  ;;  %v6788_v51 = vpop.f32.mrf.mxu0  ;;  %v6899_v8 = vld [vmem:[%s8598_s5 + $0x1] ss:$0 sm:$0xff] }
 0x130   : > { %v1264_v55 = vrot.slane %v1137_v28, 1  ;;  %v6777_v23 = vmul.f32 %v6644_v4, %v440_v41  ;;  %v696_v43 = vsel %vm616_vm1, %v693_v61, %v695_v7  ;;  %v2481_v3 = vmul.f32 %v6654_v15, %v6763_v45  ;;  %v6917_v7 = vld [vmem:[%s8598_s5] ss:$0 sm:$0xff] }
 0x131   : > { %v945_v24 = vsel %vm865_vm2, %v942_v18, %v944_v54  ;;  %v1512_v26 = vrot.slane %v1385_v1, 2  ;;  %v1648_v19 = vadd.f32 %v1616_v58, %v1576_v50  ;;  %v760_v40 = vadd.f32 %v696_v43, %v479_v32  ;;  %v2344_v57 = vpop.f32.mrf.mxu0 }
 0x132   : > { %v6792_v4 = vmul.f32 %v6577_v39, %v6598_v21  ;;  %v6796_v11 = vmul.f32 %v6538_v0, %v6692_v29  ;;  %v6799_v61 = vsel %vm616_vm1, %v1262_v36, %v1264_v55  ;;  %v1832_v18 = vrot.slane %v6774_v38, 1 }
 0x133   : > { %v6803_v31 = vadd.f32 %v6782_v20, %v2481_v3  ;;  %v6805_v15 = vadd.f32 %v1831_v62, %v1648_v19  ;;  %v6807_v35 = vadd.f32 %v945_v24, %v760_v40  ;;  %v6810_v6 = vsel %vm865_vm2, %v1510_v48, %v1512_v26  ;;  %v6941_v3 = vld [vmem:[%s8598_s5 + $0x4] ss:$0 sm:$0xff] }
 0x134   : > { %v5256_v39 = vmov 0.0   ;;  %v2080_v0 = vrot.slane %v6777_v23, 2  ;;  %v2480_v29 = vmul.f32 %v6763_v45, %v6674_v2  ;;  %v2483_v36 = vmul.f32 %v6688_v59, %v6763_v45 }
 0x135   : > { %2588 = vst.msk [vmem:[#allocation2 + $0x20] sm:$0xff] %vm2147_vm3, %v5256_v39  ;;  %2583 = vst.msk [vmem:[#allocation2] sm:$0xff] %vm2147_vm3, %v5256_v39  ;;  %v2552_v21 = vmax.f32 %v6803_v31, 0.0  ;;  %v2144_v22 = vadd.f32 %v6769_v53, %v6805_v15  ;;  %v1081_v16 = vadd.f32 %v6792_v4, %v6807_v35  ;;  %v2482_v10 = vmul.f32 %v6763_v45, %v6714_v63  ;;  %v6949_v15 = vld [vmem:[%s8598_s5 + $0x3] ss:$0 sm:$0xff] }
 0x136   : > { %2584 = vst.msk [vmem:[#allocation2 + $0x8] sm:$0xff] %vm2147_vm3, %v5256_v39  ;;  %2587 = vst.msk [vmem:[#allocation2 + $0x18] sm:$0xff] %vm2147_vm3, %v5256_v39  ;;  %v2485_v17 = vmul.f32 %v6735_v44, %v6763_v45  ;;  %v2519_v2 = vadd.f32 %v6782_v20, %v2480_v29  ;;  %v2522_v48 = vadd.f32 %v6782_v20, %v2483_v36 }
 0x137   : > { %2590 = vst.msk [vmem:[#allocation2 + $0x30] sm:$0xff] %vm2147_vm3, %v5256_v39  ;;  %2591 = vst.msk [vmem:[#allocation2 + $0x38] sm:$0xff] %vm2147_vm3, %v5256_v39  ;;  %v2484_v59 = vmul.f32 %v6763_v45, %v6751_v46  ;;  %v2487_v42 = vmul.f32 %v6788_v51, %v6763_v45  ;;  %5147 = vmatprep.mubr.msk.f32.mxu0 %vm2147_vm3, %v2144_v22  ;;  %v1329_v27 = vadd.f32 %v6799_v61, %v1081_v16 }
 0x138   : > { %2593 = vst.msk [vmem:[#allocation2 + $0x48] sm:$0xff] %vm2147_vm3, %v5256_v39  ;;  %2594 = vst.msk [vmem:[#allocation2 + $0x50] sm:$0xff] %vm2147_vm3, %v5256_v39  ;;  %v2521_v63 = vadd.f32 %v6782_v20, %v2482_v10  ;;  %v2524_v44 = vadd.f32 %v6782_v20, %v2485_v17  ;;  %v2486_v5 = vmul.f32 %v6763_v45, %v2344_v57  ;;  %v2551_v58 = vmax.f32 %v2519_v2, 0.0 }
 0x139   : > { %2596 = vst.msk [vmem:[#allocation2 + $0x60] sm:$0xff] %vm2147_vm3, %v5256_v39  ;;  %2597 = vst.msk [vmem:[#allocation2 + $0x68] sm:$0xff] %vm2147_vm3, %v5256_v39  ;;  %v2554_v25 = vmax.f32 %v2522_v48, 0.0  ;;  %v2523_v9 = vadd.f32 %v6782_v20, %v2484_v59  ;;  %v2526_v34 = vadd.f32 %v6782_v20, %v2487_v42  ;;  %v5116_v49 = vpop.f32.mrf.mxu0  ;;  %v1577_v14 = vadd.f32 %v6810_v6, %v1329_v27 }
 0x13a   : > { %2599 = vst.msk [vmem:[#allocation2 + $0x78] sm:$0xff] %vm2147_vm3, %v5256_v39  ;;  %2600 = vst.msk [vmem:[#allocation2 + $0x80] sm:$0xff] %vm2147_vm3, %v5256_v39  ;;  %v2553_v56 = vmax.f32 %v2521_v63, 0.0  ;;  %v2556_v41 = vmax.f32 %v2524_v44, 0.0  ;;  %v2525_v52 = vadd.f32 %v6782_v20, %v2486_v5  ;;  %v1833_v47 = vsel %vm616_vm1, %v1830_v60, %v1832_v18  ;;  %v6985_v63 = vld [vmem:[%s8598_s5 + $0x7] ss:$0 sm:$0xff] }
 0x13b   : > { %2602 = vst.msk [vmem:[#allocation2 + $0x90] sm:$0xff] %vm2147_vm3, %v5256_v39  ;;  %2603 = vst.msk [vmem:[#allocation2 + $0x98] sm:$0xff] %vm2147_vm3, %v5256_v39  ;;  %v2555_v46 = vmax.f32 %v2523_v9, 0.0  ;;  %v2558_v37 = vmax.f32 %v2526_v34, 0.0  ;;  %v2489_v62 = vmul.f32 %v5116_v49, %v6763_v45  ;;  %v2354_v32 = vpop.f32.mrf.mxu0  ;;  %v1649_v12 = vadd.f32 %v6796_v11, %v1577_v14 }
 0x13c   : > { %2605 = vst.msk [vmem:[#allocation2 + $0xa8] sm:$0xff] %vm2147_vm3, %v5256_v39  ;;  %2606 = vst.msk [vmem:[#allocation2 + $0xb0] sm:$0xff] %vm2147_vm3, %v5256_v39  ;;  %v2671_v28 = vld [vmem:[#allocation2] sm:$0xff]  ;;  %v2081_v60 = vsel %vm865_vm2, %v2078_v13, %v2080_v0  ;;  %v2557_v54 = vmax.f32 %v2525_v52, 0.0  ;;  %v2488_v1 = vmul.f32 %v6763_v45, %v2354_v32 }
 0x13d   : > { %2608 = vst.msk [vmem:[#allocation2 + $0xc0] sm:$0xff] %vm2147_vm3, %v5256_v39  ;;  %2609 = vst.msk [vmem:[#allocation2 + $0xc8] sm:$0xff] %vm2147_vm3, %v5256_v39  ;;  %v2672_v53 = vld [vmem:[#allocation2 + $0x8] sm:$0xff]  ;;  %v2528_v50 = vadd.f32 %v6782_v20, %v2489_v62  ;;  %v2804_v55 = vmul.f32 %v6899_v8, %v2671_v28  ;;  %v3052_v33 = vmul.f32 %v6904_v30, %v2671_v28 }
 0x13e   : > { %2611 = vst.msk [vmem:[#allocation2 + $0xd8] sm:$0xff] %vm2147_vm3, %v5256_v39  ;;  %2612 = vst.msk [vmem:[#allocation2 + $0xe0] sm:$0xff] %vm2147_vm3, %v5256_v39  ;;  %v2805_v38 = vmul.f32 %v6899_v8, %v2672_v53  ;;  %v1897_v23 = vadd.f32 %v1833_v47, %v1649_v12  ;;  %v2527_v43 = vadd.f32 %v6782_v20, %v2488_v1 }
 0x13f   : > { %2614 = vst.msk [vmem:[#allocation2 + $0xf0] sm:$0xff] %vm2147_vm3, %v5256_v39  ;;  %2615 = vst.msk [vmem:[#allocation2 + $0xf8] sm:$0xff] %vm2147_vm3, %v5256_v39  ;;  %v2732_v24 = vmul.f32 %v6917_v7, %v2671_v28  ;;  %v6936_v26 = vmul.f32 %v6904_v30, %v2672_v53  ;;  %v2560_v51 = vmax.f32 %v2528_v50, 0.0  ;;  %v2900_v19 = vrot.slane %v2804_v55, 1 }
 0x140   : > { %2617 = vst.msk [vmem:[#allocation2 + $0x108] sm:$0xff] %vm2147_vm3, %v5256_v39  ;;  %2618 = vst.msk [vmem:[#allocation2 + $0x110] sm:$0xff] %vm2147_vm3, %v5256_v39  ;;  %v2901_v40 = vrot.slane %v2805_v38, 1  ;;  %v3148_v4 = vrot.slane %v3052_v33, 2  ;;  %v2145_v61 = vadd.f32 %v2081_v60, %v1897_v23  ;;  %v2559_v18 = vmax.f32 %v2527_v43, 0.0 }
 0x141   : > { %2620 = vst.msk [vmem:[#allocation2 + $0x120] sm:$0xff] %vm2147_vm3, %v5256_v39  ;;  %2621 = vst.msk [vmem:[#allocation2 + $0x128] sm:$0xff] %vm2147_vm3, %v5256_v39  ;;  %v3149_v31 = vrot.slane %v6936_v26, 2  ;;  %v2733_v0 = vmul.f32 %v6917_v7, %v2672_v53 }
 0x142   : > { %2623 = vst.msk [vmem:[#allocation2 + $0x138] sm:$0xff] %vm2147_vm3, %v5256_v39  ;;  %2624 = vst.msk [vmem:[#allocation2 + $0x140] sm:$0xff] %vm2147_vm3, %v5256_v39  ;;  %v2902_v6 = vsel %vm616_vm1, %v2900_v19, %v2901_v40  ;;  %5148 = vmatmul.mubr.msk.f32.gmra.mxu0 %vm2147_vm3, %v2145_v61 }
 0x143   : > { %2626 = vst.msk [vmem:[#allocation2 + $0x150] sm:$0xff] %vm2147_vm3, %v5256_v39  ;;  %2627 = vst.msk [vmem:[#allocation2 + $0x158] sm:$0xff] %vm2147_vm3, %v5256_v39  ;;  %v3012_v57 = vadd.f32 %v2902_v6, %v2732_v24  ;;  %v3150_v22 = vsel %vm865_vm2, %v3148_v4, %v3149_v31 }
 0x144   : > { %2629 = vst.msk [vmem:[#allocation2 + $0x168] sm:$0xff] %vm2147_vm3, %v5256_v39  ;;  %2630 = vst.msk [vmem:[#allocation2 + $0x170] sm:$0xff] %vm2147_vm3, %v5256_v39 }
 0x145   : > { %2632 = vst.msk [vmem:[#allocation2 + $0x180] sm:$0xff] %vm2147_vm3, %v5256_v39  ;;  %2633 = vst.msk [vmem:[#allocation2 + $0x188] sm:$0xff] %vm2147_vm3, %v5256_v39  ;;  %v3260_v44 = vadd.f32 %v3150_v22, %v3012_v57 }
 0x146   : > { %2635 = vst.msk [vmem:[#allocation2 + $0x198] sm:$0xff] %vm2147_vm3, %v5256_v39  ;;  %2636 = vst.msk [vmem:[#allocation2 + $0x1a0] sm:$0xff] %vm2147_vm3, %v5256_v39 }
 0x147   : > { %2589 = vst.msk [vmem:[#allocation2 + $0x28] sm:$0x3] %vm2585_vm4, %v5256_v39  ;;  %2586 = vst.msk [vmem:[#allocation2 + $0x10] sm:$0x3] %vm2585_vm4, %v5256_v39 }
 0x148   : > { %2592 = vst.msk [vmem:[#allocation2 + $0x40] sm:$0x3] %vm2585_vm4, %v5256_v39  ;;  %2595 = vst.msk [vmem:[#allocation2 + $0x58] sm:$0x3] %vm2585_vm4, %v5256_v39 }
 0x149   : > { %2598 = vst.msk [vmem:[#allocation2 + $0x70] sm:$0x3] %vm2585_vm4, %v5256_v39  ;;  %2601 = vst.msk [vmem:[#allocation2 + $0x88] sm:$0x3] %vm2585_vm4, %v5256_v39 }
 0x14a   : > { %2604 = vst.msk [vmem:[#allocation2 + $0xa0] sm:$0x3] %vm2585_vm4, %v5256_v39  ;;  %2607 = vst.msk [vmem:[#allocation2 + $0xb8] sm:$0x3] %vm2585_vm4, %v5256_v39 }
 0x14b   : > { %2610 = vst.msk [vmem:[#allocation2 + $0xd0] sm:$0x3] %vm2585_vm4, %v5256_v39  ;;  %2613 = vst.msk [vmem:[#allocation2 + $0xe8] sm:$0x3] %vm2585_vm4, %v5256_v39 }
 0x14c   : > { %2616 = vst.msk [vmem:[#allocation2 + $0x100] sm:$0x3] %vm2585_vm4, %v5256_v39  ;;  %2619 = vst.msk [vmem:[#allocation2 + $0x118] sm:$0x3] %vm2585_vm4, %v5256_v39 }
 0x14d   : > { %2622 = vst.msk [vmem:[#allocation2 + $0x130] sm:$0x3] %vm2585_vm4, %v5256_v39  ;;  %2625 = vst.msk [vmem:[#allocation2 + $0x148] sm:$0x3] %vm2585_vm4, %v5256_v39 }
 0x14e   : > { %2628 = vst.msk [vmem:[#allocation2 + $0x160] sm:$0x3] %vm2585_vm4, %v5256_v39  ;;  %2631 = vst.msk [vmem:[#allocation2 + $0x178] sm:$0x3] %vm2585_vm4, %v5256_v39  ;;  %v2673_v13 = vld [vmem:[#allocation2 + $0x10] sm:$0x3] }
 0x14f   : > { %2634 = vst.msk [vmem:[#allocation2 + $0x190] sm:$0x3] %vm2585_vm4, %v5256_v39  ;;  %2637 = vst.msk [vmem:[#allocation2 + $0x1a8] sm:$0x3] %vm2585_vm4, %v5256_v39  ;;  %v2806_v35 = vmul.f32 %v6899_v8, %v2673_v13  ;;  %v6957_v39 = vld [vmem:[%s8598_s5 + $0x5] ss:$0 sm:$0xff] }
 0x150   : > { %2640 = vst.msk [vmem:[#allocation2 + $0x21] sm:$0xff] %vm2147_vm3, %v2552_v21  ;;  %2639 = vst.msk [vmem:[#allocation2 + $0x19] sm:$0xff] %vm2147_vm3, %v2551_v58  ;;  %v3054_v21 = vmul.f32 %v6904_v30, %v2673_v13  ;;  %v6992_v58 = vld [vmem:[%s8598_s5 + $0x6] ss:$0 sm:$0xff] }
 0x151   : > { %2642 = vst.msk [vmem:[#allocation2 + $0x39] sm:$0xff] %vm2147_vm3, %v2554_v25  ;;  %2641 = vst.msk [vmem:[#allocation2 + $0x31] sm:$0xff] %vm2147_vm3, %v2553_v56  ;;  %v2903_v16 = vrot.slane %v2806_v35, 1 }
 0x152   : > { %2644 = vst.msk [vmem:[#allocation2 + $0x51] sm:$0xff] %vm2147_vm3, %v2556_v41  ;;  %2643 = vst.msk [vmem:[#allocation2 + $0x49] sm:$0xff] %vm2147_vm3, %v2555_v46  ;;  %v7003_v41 = vld [vmem:[%s8598_s5 + $0x8] ss:$0 sm:$0xff]  ;;  %v3151_v13 = vrot.slane %v3054_v21, 2 }
 0x153   : > { %2646 = vst.msk [vmem:[#allocation2 + $0x69] sm:$0xff] %vm2147_vm3, %v2558_v37  ;;  %2645 = vst.msk [vmem:[#allocation2 + $0x61] sm:$0xff] %vm2147_vm3, %v2557_v54  ;;  %v2904_v53 = vsel %vm616_vm1, %v2901_v40, %v2903_v16 }
 0x154   : > { %2648 = vst.msk [vmem:[#allocation2 + $0x81] sm:$0xff] %vm2147_vm3, %v2560_v51  ;;  %2647 = vst.msk [vmem:[#allocation2 + $0x79] sm:$0xff] %vm2147_vm3, %v2559_v18  ;;  %v3013_v1 = vadd.f32 %v2904_v53, %v2733_v0  ;;  %v5119_v51 = vpop.f32.mrf.mxu0  ;;  %v3152_v19 = vsel %vm865_vm2, %v3149_v31, %v3151_v13 }
 0x155   : > { %v2491_v18 = vmul.f32 %v5119_v51, %v6763_v45 }
 0x156   : > { %v3261_v6 = vadd.f32 %v3152_v19, %v3013_v1  ;;  %v2364_v21 = vpop.f32.mrf.mxu0 }
 0x157   : > { %v6943_v11 = vld [vmem:[#allocation2 + $0x28] sm:$0x3]  ;;  %v6963_v29 = vld [vmem:[#allocation2 + $0x18] sm:$0xff]  ;;  %v6965_v36 = vld [vmem:[#allocation2 + $0x20] sm:$0xff] }
 0x158   : > { %v3374_v10 = vmul.f32 %v6941_v3, %v6943_v11  ;;  %v6970_v17 = vld [vmem:[#allocation2 + $0x30] sm:$0xff]  ;;  %v6972_v2 = vld [vmem:[#allocation2 + $0x38] sm:$0xff]  ;;  %v3300_v48 = vmul.f32 %v6949_v15, %v6963_v29  ;;  %v3372_v59 = vmul.f32 %v6941_v3, %v6963_v29  ;;  %v3373_v42 = vmul.f32 %v6941_v3, %v6965_v36  ;;  %v7013_v54 = vld [vmem:[#allocation2 + $0x40] sm:$0x3] }
 0x159   : > { %v3620_v27 = vmul.f32 %v6957_v39, %v6963_v29  ;;  %v3621_v5 = vmul.f32 %v6957_v39, %v6965_v36  ;;  %v3940_v25 = vmul.f32 %v6985_v63, %v6970_v17  ;;  %v3622_v9 = vmul.f32 %v6957_v39, %v6943_v11 }
 0x15a   : > { %v3468_v34 = vrot.slane %v3372_v59, 1  ;;  %v3469_v49 = vrot.slane %v3373_v42, 1  ;;  %v3941_v56 = vmul.f32 %v6985_v63, %v6972_v2  ;;  %v3332_v52 = vadd.f32 %v3300_v48, %v3260_v44 }
 0x15b   : > { %v3716_v14 = vrot.slane %v3620_v27, 2  ;;  %v3717_v47 = vrot.slane %v3621_v5, 2  ;;  %v4036_v46 = vrot.slane %v3940_v25, 1  ;;  %v4188_v37 = vmul.f32 %v7003_v41, %v6970_v17 }
 0x15c   : > { %v3470_v62 = vsel %vm616_vm1, %v3468_v34, %v3469_v49  ;;  %v4037_v32 = vrot.slane %v3941_v56, 1  ;;  %v4189_v28 = vmul.f32 %v7003_v41, %v6972_v2  ;;  %v3868_v60 = vmul.f32 %v6992_v58, %v6970_v17 }
 0x15d   : > { %v3580_v12 = vadd.f32 %v3470_v62, %v3332_v52  ;;  %v7017_v50 = vmul.f32 %v6899_v8, %v6943_v11  ;;  %v3718_v55 = vsel %vm865_vm2, %v3716_v14, %v3717_v47  ;;  %v4284_v38 = vrot.slane %v4188_v37, 2 }
 0x15e   : > { %v4285_v33 = vrot.slane %v4189_v28, 2  ;;  %v4038_v43 = vsel %vm616_vm1, %v4036_v46, %v4037_v32  ;;  %v3301_v24 = vmul.f32 %v6949_v15, %v6965_v36  ;;  %v3471_v26 = vrot.slane %v3374_v10, 1 }
 0x15f   : > { %v3828_v23 = vadd.f32 %v3718_v55, %v3580_v12  ;;  %v3719_v40 = vrot.slane %v3622_v9, 2  ;;  %v3942_v4 = vmul.f32 %v6985_v63, %v7013_v54  ;;  %v4190_v61 = vmul.f32 %v7003_v41, %v7013_v54  ;;  %v7052_v12 = vld [vmem:[#allocation2 + $0x48] sm:$0xff] }
 0x160   : > { %v3869_v0 = vmul.f32 %v6992_v58, %v6972_v2  ;;  %v4286_v57 = vsel %vm865_vm2, %v4284_v38, %v4285_v33  ;;  %v3472_v22 = vsel %vm616_vm1, %v3469_v49, %v3471_v26  ;;  %v2530_v10 = vadd.f32 %v6782_v20, %v2491_v18 }
 0x161   : > { %v3900_v35 = vadd.f32 %v3868_v60, %v3828_v23  ;;  %v3720_v31 = vsel %vm865_vm2, %v3717_v47, %v3719_v40  ;;  %v4039_v16 = vrot.slane %v3942_v4, 1  ;;  %v2490_v48 = vmul.f32 %v6763_v45, %v2364_v21  ;;  %v7059_v23 = vld [vmem:[#allocation2 + $0x50] sm:$0xff] }
 0x162   : > { %v3333_v42 = vadd.f32 %v3301_v24, %v3261_v6  ;;  %v4287_v27 = vrot.slane %v4190_v61, 2  ;;  %v2734_v44 = vmul.f32 %v6917_v7, %v6963_v29  ;;  %v2807_v5 = vmul.f32 %v6899_v8, %v6963_v29 }
 0x163   : > { %v4148_v59 = vadd.f32 %v4038_v43, %v3900_v35  ;;  %v2808_v25 = vmul.f32 %v6899_v8, %v6965_v36  ;;  %v2562_v9 = vmax.f32 %v2530_v10, 0.0  ;;  %v2529_v34 = vadd.f32 %v6782_v20, %v2490_v48 }
 0x164   : > { %v3581_v14 = vadd.f32 %v3472_v22, %v3333_v42  ;;  %v2905_v56 = vrot.slane %v2807_v5, 1  ;;  %v3055_v47 = vmul.f32 %v6904_v30, %v6963_v29  ;;  %v3056_v46 = vmul.f32 %v6904_v30, %v6965_v36 }
 0x165   : > { %v4396_v49 = vadd.f32 %v4286_v57, %v4148_v59  ;;  %v2906_v52 = vrot.slane %v2808_v25, 1  ;;  %2650 = vst.msk [vmem:[#allocation2 + $0x99] sm:$0xff] %vm2147_vm3, %v2562_v9  ;;  %v2561_v37 = vmax.f32 %v2529_v34, 0.0  ;;  %v4040_v28 = vsel %vm616_vm1, %v4037_v32, %v4039_v16  ;;  %v7087_v9 = vld [vmem:[#allocation2 + $0x58] sm:$0x3] }
 0x166   : > { %v3829_v62 = vadd.f32 %v3720_v31, %v3581_v14  ;;  %v3375_v53 = vmul.f32 %v6941_v3, %v6970_v17  ;;  %v3153_v1 = vrot.slane %v3055_v47, 2  ;;  %v3154_v29 = vrot.slane %v3056_v46, 2 }
 0x167   : > { %5152 = vmatprep.mubr.msk.f32.mxu1 %vm2147_vm3, %v4396_v49  ;;  %v2907_v60 = vsel %vm616_vm1, %v2905_v56, %v2906_v52  ;;  %v3376_v55 = vmul.f32 %v6941_v3, %v6972_v2  ;;  %2649 = vst.msk [vmem:[#allocation2 + $0x91] sm:$0xff] %vm2147_vm3, %v2561_v37  ;;  %v4288_v13 = vsel %vm865_vm2, %v4285_v33, %v4287_v27 }
 0x168   : > { %v3901_v38 = vadd.f32 %v3869_v0, %v3829_v62  ;;  %v3014_v32 = vadd.f32 %v2907_v60, %v2734_v44  ;;  %v3623_v43 = vmul.f32 %v6957_v39, %v6970_v17  ;;  %v3155_v24 = vsel %vm865_vm2, %v3153_v1, %v3154_v29 }
 0x169   : > { %v3473_v26 = vrot.slane %v3375_v53, 1  ;;  %v3474_v51 = vrot.slane %v3376_v55, 1  ;;  %v3624_v19 = vmul.f32 %v6957_v39, %v6972_v2  ;;  %v3302_v61 = vmul.f32 %v6949_v15, %v6970_v17 }
 0x16a   : > { %v4149_v40 = vadd.f32 %v4040_v28, %v3901_v38  ;;  %v3262_v4 = vadd.f32 %v3155_v24, %v3014_v32  ;;  %v3943_v33 = vmul.f32 %v6985_v63, %v7052_v12  ;;  %v3721_v18 = vrot.slane %v3623_v43, 2 }
 0x16b   : > { %v3722_v35 = vrot.slane %v3624_v19, 2  ;;  %v3944_v6 = vmul.f32 %v6985_v63, %v7059_v23  ;;  %v4191_v0 = vmul.f32 %v7003_v41, %v7052_v12  ;;  %v7076_v31 = vmul.f32 %v7003_v41, %v7059_v23 }
 0x16c   : > { %v4397_v21 = vadd.f32 %v4288_v13, %v4149_v40  ;;  %v3334_v57 = vadd.f32 %v3302_v61, %v3262_v4  ;;  %v4041_v22 = vrot.slane %v3943_v33, 1  ;;  %v3475_v16 = vsel %vm616_vm1, %v3473_v26, %v3474_v51 }
 0x16d   : > { %v3870_v10 = vmul.f32 %v6992_v58, %v7052_v12  ;;  %v4042_v48 = vrot.slane %v3944_v6, 1  ;;  %v4289_v59 = vrot.slane %v4191_v0, 2  ;;  %v4290_v27 = vrot.slane %v7076_v31, 2 }
 0x16e   : > { %5153 = vmatmul.mubr.msk.f32.vlgmr.msra.gmra.mxu1 %vm2147_vm3, %v4397_v21  ;;  %v3582_v42 = vadd.f32 %v3475_v16, %v3334_v57  ;;  %v2908_v44 = vrot.slane %v7017_v50, 1  ;;  %v3057_v5 = vmul.f32 %v6904_v30, %v6943_v11  ;;  %v3723_v25 = vsel %vm865_vm2, %v3721_v18, %v3722_v35  ;;  %v5122_v11 = vpop.f32.mrf.mxu0 }
 0x16f   : > { %v2735_v34 = vmul.f32 %v6917_v7, %v6965_v36  ;;  %v3377_v49 = vmul.f32 %v6941_v3, %v7013_v54  ;;  %v3625_v14 = vmul.f32 %v6957_v39, %v7013_v54  ;;  %v4043_v47 = vsel %vm616_vm1, %v4041_v22, %v4042_v48 }
 0x170   : > { %v3830_v56 = vadd.f32 %v3723_v25, %v3582_v42  ;;  %v2909_v50 = vsel %vm616_vm1, %v2906_v52, %v2908_v44  ;;  %v3156_v46 = vrot.slane %v3057_v5, 2  ;;  %v4291_v37 = vsel %vm865_vm2, %v4289_v59, %v4290_v27  ;;  %v2374_v52 = vpop.f32.mrf.mxu0 }
 0x171   : > { %v3015_v62 = vadd.f32 %v2909_v50, %v2735_v34  ;;  %v3303_v36 = vmul.f32 %v6949_v15, %v6972_v2  ;;  %v3476_v28 = vrot.slane %v3377_v49, 1  ;;  %v2493_v53 = vmul.f32 %v5122_v11, %v6763_v45  ;;  %v7135_v49 = vld [vmem:[#allocation2 + $0x60] sm:$0xff]  ;;  %v7142_v50 = vld [vmem:[#allocation2 + $0x68] sm:$0xff] }
 0x172   : > { %v3902_v60 = vadd.f32 %v3870_v10, %v3830_v56  ;;  %v3157_v1 = vsel %vm865_vm2, %v3154_v29, %v3156_v46  ;;  %v3945_v55 = vmul.f32 %v6985_v63, %v7087_v9  ;;  %v3724_v13 = vrot.slane %v3625_v14, 2 }
 0x173   : > { %v3263_v38 = vadd.f32 %v3157_v1, %v3015_v62  ;;  %v3871_v32 = vmul.f32 %v6992_v58, %v7059_v23  ;;  %v4193_v43 = vmul.f32 %v7003_v41, %v7087_v9  ;;  %v2532_v24 = vadd.f32 %v6782_v20, %v2493_v53 }
 0x174   : > { %v2492_v26 = vmul.f32 %v6763_v45, %v2374_v52  ;;  %v4150_v19 = vadd.f32 %v4043_v47, %v3902_v60  ;;  %v3477_v40 = vsel %vm616_vm1, %v3474_v51, %v3476_v28  ;;  %v3725_v4 = vsel %vm865_vm2, %v3722_v35, %v3724_v13 }
 0x175   : > { %v3335_v29 = vadd.f32 %v3303_v36, %v3263_v38  ;;  %v4044_v61 = vrot.slane %v3945_v55, 1  ;;  %v2810_v33 = vmul.f32 %v6899_v8, %v6970_v17  ;;  %v2564_v18 = vmax.f32 %v2532_v24, 0.0 }
 0x176   : > { %v2531_v6 = vadd.f32 %v6782_v20, %v2492_v26  ;;  %v4398_v0 = vadd.f32 %v4291_v37, %v4150_v19  ;;  %v4292_v21 = vrot.slane %v4193_v43, 2  ;;  %v2736_v22 = vmul.f32 %v6917_v7, %v6970_v17 }
 0x177   : > { %v3583_v57 = vadd.f32 %v3477_v40, %v3335_v29  ;;  %v2811_v16 = vmul.f32 %v6899_v8, %v6972_v2  ;;  %v2910_v51 = vrot.slane %v2810_v33, 1  ;;  %2652 = vst.msk [vmem:[#allocation2 + $0xb1] sm:$0xff] %vm2147_vm3, %v2564_v18  ;;  %v4045_v10 = vsel %vm616_vm1, %v4042_v48, %v4044_v61  ;;  %v7169_v18 = vld [vmem:[#allocation2 + $0x70] sm:$0x3] }
 0x178   : > { %v2563_v35 = vmax.f32 %v2531_v6, 0.0  ;;  %5155 = vmatprep.mubr.msk.f32.mxu1 %vm2147_vm3, %v4398_v0  ;;  %v3058_v59 = vmul.f32 %v6904_v30, %v6970_v17  ;;  %v7128_v42 = vmul.f32 %v6904_v30, %v6972_v2  ;;  %v3378_v25 = vmul.f32 %v6941_v3, %v7052_v12 }
 0x179   : > { %v3831_v44 = vadd.f32 %v3725_v4, %v3583_v57  ;;  %v2911_v5 = vrot.slane %v2811_v16, 1  ;;  %v3379_v34 = vmul.f32 %v6941_v3, %v7059_v23  ;;  %v3626_v17 = vmul.f32 %v6957_v39, %v7052_v12 }
 0x17a   : > { %2651 = vst.msk [vmem:[#allocation2 + $0xa9] sm:$0xff] %vm2147_vm3, %v2563_v35  ;;  %v3158_v48 = vrot.slane %v3058_v59, 2  ;;  %v3159_v14 = vrot.slane %v7128_v42, 2  ;;  %v3627_v56 = vmul.f32 %v6957_v39, %v7059_v23  ;;  %v3478_v11 = vrot.slane %v3378_v25, 1  ;;  %v5125_v42 = vpop.f32.mrf.mxu0 }
 0x17b   : > { %v3903_v47 = vadd.f32 %v3871_v32, %v3831_v44  ;;  %v2912_v46 = vsel %vm616_vm1, %v2910_v51, %v2911_v5  ;;  %v3479_v37 = vrot.slane %v3379_v34, 1  ;;  %v4293_v62 = vsel %vm865_vm2, %v4290_v27, %v4292_v21 }
 0x17c   : > { %v3016_v36 = vadd.f32 %v2912_v46, %v2736_v22  ;;  %v3726_v28 = vrot.slane %v3626_v17, 2  ;;  %v3727_v53 = vrot.slane %v3627_v56, 2  ;;  %v3160_v1 = vsel %vm865_vm2, %v3158_v48, %v3159_v14 }
 0x17d   : > { %v4151_v60 = vadd.f32 %v4045_v10, %v3903_v47  ;;  %v3304_v55 = vmul.f32 %v6949_v15, %v7052_v12  ;;  %v3946_v52 = vmul.f32 %v6985_v63, %v7135_v49  ;;  %v3480_v13 = vsel %vm616_vm1, %v3478_v11, %v3479_v37  ;;  %v2384_v47 = vpop.f32.mrf.mxu0 }
 0x17e   : > { %v3264_v38 = vadd.f32 %v3160_v1, %v3016_v36  ;;  %v3947_v31 = vmul.f32 %v6985_v63, %v7142_v50  ;;  %v4194_v27 = vmul.f32 %v7003_v41, %v7135_v49  ;;  %v3872_v43 = vmul.f32 %v6992_v58, %v7135_v49 }
 0x17f   : > { %v4399_v32 = vadd.f32 %v4293_v62, %v4151_v60  ;;  %v4046_v24 = vrot.slane %v3946_v52, 1  ;;  %v7162_v26 = vmul.f32 %v7003_v41, %v7142_v50  ;;  %v3728_v40 = vsel %vm865_vm2, %v3726_v28, %v3727_v53 }
 0x180   : > { %v3336_v19 = vadd.f32 %v3304_v55, %v3264_v38  ;;  %v4047_v29 = vrot.slane %v3947_v31, 1  ;;  %v2812_v4 = vmul.f32 %v6899_v8, %v7013_v54  ;;  %v4294_v61 = vrot.slane %v4194_v27, 2 }
 0x181   : > { %5156 = vmatmul.mubr.msk.f32.gmra.mxu1 %vm2147_vm3, %v4399_v32  ;;  %v4295_v33 = vrot.slane %v7162_v26, 2  ;;  %v3060_v6 = vmul.f32 %v6904_v30, %v7013_v54  ;;  %v3380_v0 = vmul.f32 %v6941_v3, %v7087_v9  ;;  %v2737_v57 = vmul.f32 %v6917_v7, %v6972_v2 }
 0x182   : > { %v3584_v21 = vadd.f32 %v3480_v13, %v3336_v19  ;;  %v2913_v22 = vrot.slane %v2812_v4, 1  ;;  %v3628_v16 = vmul.f32 %v6957_v39, %v7087_v9  ;;  %v4048_v51 = vsel %vm616_vm1, %v4046_v24, %v4047_v29 }
 0x183   : > { %v3161_v35 = vrot.slane %v3060_v6, 2  ;;  %v3305_v10 = vmul.f32 %v6949_v15, %v7059_v23  ;;  %v3481_v59 = vrot.slane %v3380_v0, 1  ;;  %v3948_v34 = vmul.f32 %v6985_v63, %v7169_v18 }
 0x184   : > { %v3832_v54 = vadd.f32 %v3728_v40, %v3584_v21  ;;  %v2914_v44 = vsel %vm616_vm1, %v2911_v5, %v2913_v22  ;;  %v3729_v25 = vrot.slane %v3628_v16, 2  ;;  %v2495_v2 = vmul.f32 %v5125_v42, %v6763_v45 }
 0x185   : > { %v4296_v48 = vsel %vm865_vm2, %v4294_v61, %v4295_v33  ;;  %v3017_v17 = vadd.f32 %v2914_v44, %v2737_v57  ;;  %v3873_v56 = vmul.f32 %v6992_v58, %v7142_v50  ;;  %v3162_v11 = vsel %vm865_vm2, %v3159_v14, %v3161_v35  ;;  %v7224_v57 = vld [vmem:[#allocation2 + $0x78] sm:$0xff]  ;;  %v7230_v35 = vld [vmem:[#allocation2 + $0x80] sm:$0xff] }
 0x186   : > { %v3904_v46 = vadd.f32 %v3872_v43, %v3832_v54  ;;  %v3482_v5 = vsel %vm616_vm1, %v3479_v37, %v3481_v59  ;;  %v3730_v62 = vsel %vm865_vm2, %v3727_v53, %v3729_v25  ;;  %v2534_v36 = vadd.f32 %v6782_v20, %v2495_v2 }
 0x187   : > { %v2494_v28 = vmul.f32 %v6763_v45, %v2384_v47  ;;  %v3265_v60 = vadd.f32 %v3162_v11, %v3017_v17  ;;  %v4049_v1 = vrot.slane %v3948_v34, 1  ;;  %v4196_v52 = vmul.f32 %v7003_v41, %v7169_v18 }
 0x188   : > { %v4152_v55 = vadd.f32 %v4048_v51, %v3904_v46  ;;  %v2738_v38 = vmul.f32 %v6917_v7, %v7052_v12  ;;  %v2813_v14 = vmul.f32 %v6899_v8, %v7052_v12  ;;  %v2566_v13 = vmax.f32 %v2534_v36, 0.0 }
 0x189   : > { %v2533_v37 = vadd.f32 %v6782_v20, %v2494_v28  ;;  %v3337_v53 = vadd.f32 %v3305_v10, %v3265_v60  ;;  %v7205_v31 = vmul.f32 %v6899_v8, %v7059_v23  ;;  %v4050_v32 = vsel %vm616_vm1, %v4047_v29, %v4049_v1 }
 0x18a   : > { %v4400_v27 = vadd.f32 %v4296_v48, %v4152_v55  ;;  %v2915_v43 = vrot.slane %v2813_v14, 1  ;;  %v3061_v24 = vmul.f32 %v6904_v30, %v7052_v12  ;;  %2654 = vst.msk [vmem:[#allocation2 + $0xc9] sm:$0xff] %vm2147_vm3, %v2566_v13  ;;  %v7214_v61 = vmul.f32 %v6904_v30, %v7059_v23  ;;  %v7256_v13 = vld [vmem:[#allocation2 + $0x88] sm:$0x3] }
 0x18b   : > { %v2565_v19 = vmax.f32 %v2533_v37, 0.0  ;;  %v3585_v40 = vadd.f32 %v3482_v5, %v3337_v53  ;;  %v2916_v4 = vrot.slane %v7205_v31, 1  ;;  %v4297_v6 = vrot.slane %v4196_v52, 2 }
 0x18c   : > { %5158 = vmatprep.mubr.msk.f32.mxu1 %vm2147_vm3, %v4400_v27  ;;  %v3163_v0 = vrot.slane %v3061_v24, 2  ;;  %v3381_v29 = vmul.f32 %v6941_v3, %v7135_v49  ;;  %v7221_v12 = vmul.f32 %v6941_v3, %v7142_v50  ;;  %v3164_v16 = vrot.slane %v7214_v61, 2  ;;  %v5128_v24 = vpop.f32.mrf.mxu0 }
 0x18d   : > { %2653 = vst.msk [vmem:[#allocation2 + $0xc1] sm:$0xff] %vm2147_vm3, %v2565_v19  ;;  %v3833_v21 = vadd.f32 %v3730_v62, %v3585_v40  ;;  %v2917_v22 = vsel %vm616_vm1, %v2915_v43, %v2916_v4  ;;  %v3629_v51 = vmul.f32 %v6957_v39, %v7135_v49  ;;  %v3630_v54 = vmul.f32 %v6957_v39, %v7142_v50 }
 0x18e   : > { %v3018_v10 = vadd.f32 %v2917_v22, %v2738_v38  ;;  %v3483_v59 = vrot.slane %v3381_v29, 1  ;;  %v3484_v42 = vrot.slane %v7221_v12, 1  ;;  %v4298_v25 = vsel %vm865_vm2, %v4295_v33, %v4297_v6  ;;  %v2394_v12 = vpop.f32.mrf.mxu0 }
 0x18f   : > { %v3905_v44 = vadd.f32 %v3873_v56, %v3833_v21  ;;  %v3165_v34 = vsel %vm865_vm2, %v3163_v0, %v3164_v16  ;;  %v3306_v2 = vmul.f32 %v6949_v15, %v7135_v49  ;;  %v3731_v17 = vrot.slane %v3629_v51, 2 }
 0x190   : > { %v3266_v48 = vadd.f32 %v3165_v34, %v3018_v10  ;;  %v3732_v47 = vrot.slane %v3630_v54, 2  ;;  %v3949_v46 = vmul.f32 %v6985_v63, %v7224_v57  ;;  %v3950_v5 = vmul.f32 %v6985_v63, %v7230_v35 }
 0x191   : > { %v4153_v11 = vadd.f32 %v4050_v32, %v3905_v44  ;;  %v4197_v26 = vmul.f32 %v7003_v41, %v7224_v57  ;;  %v7249_v33 = vmul.f32 %v7003_v41, %v7230_v35  ;;  %v3485_v62 = vsel %vm616_vm1, %v3483_v59, %v3484_v42 }
 0x192   : > { %v3338_v56 = vadd.f32 %v3306_v2, %v3266_v48  ;;  %v3874_v36 = vmul.f32 %v6992_v58, %v7224_v57  ;;  %v4051_v28 = vrot.slane %v3949_v46, 1  ;;  %v4052_v1 = vrot.slane %v3950_v5, 1 }
 0x193   : > { %v4401_v60 = vadd.f32 %v4298_v25, %v4153_v11  ;;  %v4299_v55 = vrot.slane %v4197_v26, 2  ;;  %v4300_v52 = vrot.slane %v7249_v33, 2  ;;  %v3733_v14 = vsel %vm865_vm2, %v3731_v17, %v3732_v47 }
 0x194   : > { %v3586_v38 = vadd.f32 %v3485_v62, %v3338_v56  ;;  %v2815_v37 = vmul.f32 %v6899_v8, %v7087_v9  ;;  %v3063_v53 = vmul.f32 %v6904_v30, %v7087_v9  ;;  %v2739_v31 = vmul.f32 %v6917_v7, %v7059_v23 }
 0x195   : > { %5159 = vmatmul.mubr.msk.f32.gmra.mxu1 %vm2147_vm3, %v4401_v60  ;;  %v3307_v27 = vmul.f32 %v6949_v15, %v7142_v50  ;;  %v3383_v32 = vmul.f32 %v6941_v3, %v7169_v18  ;;  %v3631_v43 = vmul.f32 %v6957_v39, %v7169_v18  ;;  %v4053_v40 = vsel %vm616_vm1, %v4051_v28, %v4052_v1 }
 0x196   : > { %v3834_v19 = vadd.f32 %v3733_v14, %v3586_v38  ;;  %v4301_v9 = vsel %vm865_vm2, %v4299_v55, %v4300_v52  ;;  %v2918_v61 = vrot.slane %v2815_v37, 1  ;;  %v2497_v6 = vmul.f32 %v5128_v24, %v6763_v45 }
 0x197   : > { %v3166_v0 = vrot.slane %v3063_v53, 2  ;;  %v3486_v23 = vrot.slane %v3383_v32, 1  ;;  %v3951_v29 = vmul.f32 %v6985_v63, %v7256_v13  ;;  %v3734_v51 = vrot.slane %v3631_v43, 2  ;;  %v7312_v53 = vld [vmem:[#allocation2 + $0x98] sm:$0xff] }
 0x198   : > { %v3906_v21 = vadd.f32 %v3874_v36, %v3834_v19  ;;  %v2919_v22 = vsel %vm616_vm1, %v2916_v4, %v2918_v61  ;;  %v4199_v10 = vmul.f32 %v7003_v41, %v7256_v13  ;;  %v2536_v59 = vadd.f32 %v6782_v20, %v2497_v6 }
 0x199   : > { %v2496_v54 = vmul.f32 %v6763_v45, %v2394_v12  ;;  %v3019_v44 = vadd.f32 %v2919_v22, %v2739_v31  ;;  %v3875_v25 = vmul.f32 %v6992_v58, %v7230_v35  ;;  %v3167_v2 = vsel %vm865_vm2, %v3164_v16, %v3166_v0 }
 0x19a   : > { %v4154_v34 = vadd.f32 %v4053_v40, %v3906_v21  ;;  %v3487_v48 = vsel %vm616_vm1, %v3484_v42, %v3486_v23  ;;  %v3735_v17 = vsel %vm865_vm2, %v3732_v47, %v3734_v51  ;;  %v2568_v4 = vmax.f32 %v2536_v59, 0.0 }
 0x19b   : > { %v2535_v46 = vadd.f32 %v6782_v20, %v2496_v54  ;;  %v3267_v11 = vadd.f32 %v3167_v2, %v3019_v44  ;;  %v4054_v5 = vrot.slane %v3951_v29, 1  ;;  %v4302_v33 = vrot.slane %v4199_v10, 2 }
 0x19c   : > { %v4402_v26 = vadd.f32 %v4301_v9, %v4154_v34  ;;  %v2740_v45 = vmul.f32 %v6917_v7, %v7135_v49  ;;  %v2816_v56 = vmul.f32 %v6899_v8, %v7135_v49  ;;  %2656 = vst.msk [vmem:[#allocation2 + $0xe1] sm:$0xff] %vm2147_vm3, %v2568_v4  ;;  %v2817_v42 = vmul.f32 %v6899_v8, %v7142_v50 }
 0x19d   : > { %v2567_v16 = vmax.f32 %v2535_v46, 0.0  ;;  %v3339_v62 = vadd.f32 %v3307_v27, %v3267_v11  ;;  %v3064_v20 = vmul.f32 %v6904_v30, %v7135_v49  ;;  %v4055_v47 = vsel %vm616_vm1, %v4052_v1, %v4054_v5  ;;  %v7310_v1 = vld [vmem:[#allocation2 + $0x90] sm:$0xff]  ;;  %v7344_v11 = vld [vmem:[#allocation2 + $0xa0] sm:$0x3] }
 0x19e   : > { %5161 = vmatprep.mubr.msk.f32.mxu1 %vm2147_vm3, %v4402_v26  ;;  %v2920_v36 = vrot.slane %v2816_v56, 1  ;;  %v7300_v28 = vmul.f32 %v6904_v30, %v7142_v50  ;;  %v3384_v60 = vmul.f32 %v6941_v3, %v7224_v57  ;;  %v2921_v38 = vrot.slane %v2817_v42, 1  ;;  %v7356_v42 = vld [vmem:[%s8596_s3] ss:$0 sm:$0xff] }
 0x19f   : > { %2655 = vst.msk [vmem:[#allocation2 + $0xd9] sm:$0xff] %vm2147_vm3, %v2567_v16  ;;  %v3587_v55 = vadd.f32 %v3487_v48, %v3339_v62  ;;  %v3168_v14 = vrot.slane %v3064_v20, 2  ;;  %v7307_v49 = vmul.f32 %v6941_v3, %v7230_v35  ;;  %v4303_v37 = vsel %vm865_vm2, %v4300_v52, %v4302_v33  ;;  %v5131_v33 = vpop.f32.mrf.mxu0 }
 0x1a0   : > { %v3169_v31 = vrot.slane %v7300_v28, 2  ;;  %v3632_v27 = vmul.f32 %v6957_v39, %v7224_v57  ;;  %v7319_v32 = vmul.f32 %v6957_v39, %v7230_v35  ;;  %v2922_v24 = vsel %vm616_vm1, %v2920_v36, %v2921_v38 }
 0x1a1   : > { %v3835_v43 = vadd.f32 %v3735_v17, %v3587_v55  ;;  %v3488_v19 = vrot.slane %v3384_v60, 1  ;;  %v3489_v40 = vrot.slane %v7307_v49, 1  ;;  %v3020_v52 = vadd.f32 %v2922_v24, %v2740_v45  ;;  %v2404_v36 = vpop.f32.mrf.mxu0  ;;  %v7373_v49 = vld [vmem:[%s8597_s4] ss:$0 sm:$0xff] }
 0x1a2   : > { %v3170_v9 = vsel %vm865_vm2, %v3168_v14, %v3169_v31  ;;  %v3308_v61 = vmul.f32 %v6949_v15, %v7224_v57  ;;  %v3736_v6 = vrot.slane %v3632_v27, 2  ;;  %v3737_v23 = vrot.slane %v7319_v32, 2 }
 0x1a3   : > { %v3907_v0 = vadd.f32 %v3875_v25, %v3835_v43  ;;  %v3952_v29 = vmul.f32 %v6985_v63, %v7310_v1  ;;  %v3953_v12 = vmul.f32 %v6985_v63, %v7312_v53  ;;  %v3268_v21 = vadd.f32 %v3170_v9, %v3020_v52 }
 0x1a4   : > { %v3876_v22 = vmul.f32 %v6992_v58, %v7310_v1  ;;  %v4200_v51 = vmul.f32 %v7003_v41, %v7310_v1  ;;  %v7337_v10 = vmul.f32 %v7003_v41, %v7312_v53  ;;  %v3490_v54 = vsel %vm616_vm1, %v3488_v19, %v3489_v40 }
 0x1a5   : > { %v4155_v59 = vadd.f32 %v4055_v47, %v3907_v0  ;;  %v4056_v44 = vrot.slane %v3952_v29, 1  ;;  %v4057_v25 = vrot.slane %v3953_v12, 1  ;;  %v3340_v34 = vadd.f32 %v3308_v61, %v3268_v21 }
 0x1a6   : > { %v4304_v2 = vrot.slane %v4200_v51, 2  ;;  %v4305_v48 = vrot.slane %v7337_v10, 2  ;;  %v2818_v17 = vmul.f32 %v6899_v8, %v7169_v18  ;;  %v3738_v46 = vsel %vm865_vm2, %v3736_v6, %v3737_v23 }
 0x1a7   : > { %v4403_v4 = vadd.f32 %v4303_v37, %v4155_v59  ;;  %v2741_v5 = vmul.f32 %v6917_v7, %v7142_v50  ;;  %v3066_v26 = vmul.f32 %v6904_v30, %v7169_v18  ;;  %v3588_v45 = vadd.f32 %v3490_v54, %v3340_v34 }
 0x1a8   : > { %v4058_v56 = vsel %vm616_vm1, %v4056_v44, %v4057_v25  ;;  %v2923_v16 = vrot.slane %v2818_v17, 1  ;;  %v3386_v62 = vmul.f32 %v6941_v3, %v7256_v13  ;;  %v2499_v20 = vmul.f32 %v7356_v42, %v5131_v33 }
 0x1a9   : > { %5162 = vmatmul.mubr.msk.f32.gmra.mxu1 %vm2147_vm3, %v4403_v4  ;;  %v4306_v50 = vsel %vm865_vm2, %v4304_v2, %v4305_v48  ;;  %v3309_v18 = vmul.f32 %v6949_v15, %v7230_v35  ;;  %v3634_v47 = vmul.f32 %v6957_v39, %v7256_v13  ;;  %v3836_v28 = vadd.f32 %v3738_v46, %v3588_v45 }
 0x1aa   : > { %v2924_v60 = vsel %vm616_vm1, %v2921_v38, %v2923_v16  ;;  %v3171_v55 = vrot.slane %v3066_v26, 2  ;;  %v3954_v14 = vmul.f32 %v6985_v63, %v7344_v11  ;;  %v2538_v37 = vadd.f32 %v7373_v49, %v2499_v20  ;;  %v7409_v16 = vld [vmem:[#allocation2 + $0xb0] sm:$0xff] }
 0x1ab   : > { %v2498_v27 = vmul.f32 %v7356_v42, %v2404_v36  ;;  %v3021_v32 = vadd.f32 %v2924_v60, %v2741_v5  ;;  %v3491_v43 = vrot.slane %v3386_v62, 1  ;;  %v3908_v24 = vadd.f32 %v3876_v22, %v3836_v28 }
 0x1ac   : > { %v3172_v19 = vsel %vm865_vm2, %v3169_v31, %v3171_v55  ;;  %v3739_v52 = vrot.slane %v3634_v47, 2  ;;  %v4059_v38 = vrot.slane %v3954_v14, 1  ;;  %v2570_v9 = vmax.f32 %v2538_v37, 0.0 }
 0x1ad   : > { %v2537_v61 = vadd.f32 %v7373_v49, %v2498_v27  ;;  %v3269_v6 = vadd.f32 %v3172_v19, %v3021_v32  ;;  %v4202_v0 = vmul.f32 %v7003_v41, %v7344_v11  ;;  %v4156_v29 = vadd.f32 %v4058_v56, %v3908_v24  ;;  %v7407_v56 = vld [vmem:[#allocation2 + $0xa8] sm:$0xff] }
 0x1ae   : > { %v3492_v12 = vsel %vm616_vm1, %v3489_v40, %v3491_v43  ;;  %v3740_v21 = vsel %vm865_vm2, %v3737_v23, %v3739_v52  ;;  %v3877_v51 = vmul.f32 %v6992_v58, %v7312_v53  ;;  %2658 = vst.msk [vmem:[#allocation2 + $0xf9] sm:$0xff] %vm2147_vm3, %v2570_v9  ;;  %v4060_v59 = vsel %vm616_vm1, %v4057_v25, %v4059_v38 }
 0x1af   : > { %v2569_v31 = vmax.f32 %v2537_v61, 0.0  ;;  %v3341_v22 = vadd.f32 %v3309_v18, %v3269_v6  ;;  %v2819_v54 = vmul.f32 %v6899_v8, %v7224_v57  ;;  %v4404_v44 = vadd.f32 %v4306_v50, %v4156_v29 }
 0x1b0   : > { %v7391_v34 = vmul.f32 %v6899_v8, %v7230_v35  ;;  %v3067_v40 = vmul.f32 %v6904_v30, %v7224_v57  ;;  %v7397_v23 = vmul.f32 %v6904_v30, %v7230_v35  ;;  %v4307_v17 = vrot.slane %v4202_v0, 2 }
 0x1b1   : > { %2657 = vst.msk [vmem:[#allocation2 + $0xf1] sm:$0xff] %vm2147_vm3, %v2569_v31  ;;  %v3589_v2 = vadd.f32 %v3492_v12, %v3341_v22  ;;  %v2742_v25 = vmul.f32 %v6917_v7, %v7224_v57  ;;  %v2925_v4 = vrot.slane %v2819_v54, 1  ;;  %5164 = vmatprep.mubr.msk.f32.mxu1 %vm2147_vm3, %v4404_v44  ;;  %v3387_v33 = vmul.f32 %v6941_v3, %v7310_v1 }
 0x1b2   : > { %v2926_v46 = vrot.slane %v7391_v34, 1  ;;  %v3173_v5 = vrot.slane %v3067_v40, 2  ;;  %v3174_v26 = vrot.slane %v7397_v23, 2  ;;  %v3388_v62 = vmul.f32 %v6941_v3, %v7312_v53  ;;  %v7454_v40 = vld [vmem:[#allocation2 + $0xb8] sm:$0x3] }
 0x1b3   : > { %v3837_v45 = vadd.f32 %v3740_v21, %v3589_v2  ;;  %v3635_v57 = vmul.f32 %v6957_v39, %v7310_v1  ;;  %v7417_v20 = vmul.f32 %v6957_v39, %v7312_v53  ;;  %v4308_v50 = vsel %vm865_vm2, %v4305_v48, %v4307_v17  ;;  %v5134_v21 = vpop.f32.mrf.mxu0 }
 0x1b4   : > { %v2927_v18 = vsel %vm616_vm1, %v2925_v4, %v2926_v46  ;;  %v3175_v47 = vsel %vm865_vm2, %v3173_v5, %v3174_v26  ;;  %v3493_v36 = vrot.slane %v3387_v33, 1  ;;  %v3494_v55 = vrot.slane %v3388_v62, 1 }
 0x1b5   : > { %v3909_v28 = vadd.f32 %v3877_v51, %v3837_v45  ;;  %v3022_v60 = vadd.f32 %v2927_v18, %v2742_v25  ;;  %v3741_v14 = vrot.slane %v3635_v57, 2  ;;  %v3742_v37 = vrot.slane %v7417_v20, 2  ;;  %v2414_v2 = vpop.f32.mrf.mxu0 }
 0x1b6   : > { %v3955_v27 = vmul.f32 %v6985_v63, %v7407_v56  ;;  %v7429_v32 = vmul.f32 %v6985_v63, %v7409_v16  ;;  %v4203_v10 = vmul.f32 %v7003_v41, %v7407_v56  ;;  %v3310_v24 = vmul.f32 %v6949_v15, %v7310_v1 }
 0x1b7   : > { %v4157_v48 = vadd.f32 %v4060_v59, %v3909_v28  ;;  %v3270_v43 = vadd.f32 %v3175_v47, %v3022_v60  ;;  %v7437_v19 = vmul.f32 %v7003_v41, %v7409_v16  ;;  %v3878_v52 = vmul.f32 %v6992_v58, %v7407_v56 }
 0x1b8   : > { %v4061_v38 = vrot.slane %v3955_v27, 1  ;;  %v4062_v9 = vrot.slane %v7429_v32, 1  ;;  %v4309_v61 = vrot.slane %v4203_v10, 2  ;;  %v3495_v29 = vsel %vm616_vm1, %v3493_v36, %v3494_v55  ;;  %v7489_v27 = vld [vmem:[%s8598_s5 + $0x1] ss:$0 sm:$0xff] }
 0x1b9   : > { %v4405_v6 = vadd.f32 %v4308_v50, %v4157_v48  ;;  %v3342_v0 = vadd.f32 %v3310_v24, %v3270_v43  ;;  %v4310_v12 = vrot.slane %v7437_v19, 2  ;;  %v3743_v51 = vsel %vm865_vm2, %v3741_v14, %v3742_v37  ;;  %v7501_v43 = vld [vmem:[%s8598_s5 + $0x2] ss:$0 sm:$0xff] }
 0x1ba   : > { %v2743_v31 = vmul.f32 %v6917_v7, %v7230_v35  ;;  %v2821_v22 = vmul.f32 %v6899_v8, %v7256_v13  ;;  %v3069_v59 = vmul.f32 %v6904_v30, %v7256_v13  ;;  %v2501_v54 = vmul.f32 %v7356_v42, %v5134_v21 }
 0x1bb   : > { %5165 = vmatmul.mubr.msk.f32.gmra.mxu1 %vm2147_vm3, %v4405_v6  ;;  %v3590_v44 = vadd.f32 %v3495_v29, %v3342_v0  ;;  %v4063_v34 = vsel %vm616_vm1, %v4061_v38, %v4062_v9  ;;  %v3389_v23 = vmul.f32 %v6941_v3, %v7344_v11  ;;  %v4311_v8 = vsel %vm865_vm2, %v4309_v61, %v4310_v12 }
 0x1bc   : > { %v2928_v7 = vrot.slane %v2821_v22, 1  ;;  %v3311_v30 = vmul.f32 %v6949_v15, %v7312_v53  ;;  %v3637_v35 = vmul.f32 %v6957_v39, %v7344_v11  ;;  %v2540_v13 = vadd.f32 %v7373_v49, %v2501_v54  ;;  %v7520_v22 = vld [vmem:[#allocation2 + $0xc0] sm:$0xff] }
 0x1bd   : > { %v2500_v17 = vmul.f32 %v7356_v42, %v2414_v2  ;;  %v3838_v25 = vadd.f32 %v3743_v51, %v3590_v44  ;;  %v3176_v4 = vrot.slane %v3069_v59, 2  ;;  %v3496_v5 = vrot.slane %v3389_v23, 1  ;;  %v7532_v44 = vld [vmem:[%s8598_s5 + $0x5] ss:$0 sm:$0xff] }
 0x1be   : > { %v2929_v3 = vsel %vm616_vm1, %v2926_v46, %v2928_v7  ;;  %v3744_v33 = vrot.slane %v3637_v35, 2  ;;  %v3957_v45 = vmul.f32 %v6985_v63, %v7454_v40  ;;  %v2572_v62 = vmax.f32 %v2540_v13, 0.0 }
 0x1bf   : > { %v2539_v57 = vadd.f32 %v7373_v49, %v2500_v17  ;;  %v3910_v15 = vadd.f32 %v3878_v52, %v3838_v25  ;;  %v3023_v20 = vadd.f32 %v2929_v3, %v2743_v31  ;;  %v3177_v39 = vsel %vm865_vm2, %v3174_v26, %v3176_v4  ;;  %v7482_v26 = vld [vmem:[%s8598_s5] ss:$0 sm:$0xff] }
 0x1c0   : > { %v3497_v50 = vsel %vm616_vm1, %v3494_v55, %v3496_v5  ;;  %v3879_v18 = vmul.f32 %v6992_v58, %v7409_v16  ;;  %v4205_v46 = vmul.f32 %v7003_v41, %v7454_v40  ;;  %2660 = vst.msk [vmem:[#allocation2 + $0x111] sm:$0xff] %vm2147_vm3, %v2572_v62  ;;  %v3745_v60 = vsel %vm865_vm2, %v3742_v37, %v3744_v33 }
 0x1c1   : > { %v2571_v47 = vmax.f32 %v2539_v57, 0.0  ;;  %v4158_v36 = vadd.f32 %v4063_v34, %v3910_v15  ;;  %v3271_v28 = vadd.f32 %v3177_v39, %v3023_v20  ;;  %v4064_v14 = vrot.slane %v3957_v45, 1 }
 0x1c2   : > { %v2744_v55 = vmul.f32 %v7482_v26, %v7310_v1  ;;  %v2822_v32 = vmul.f32 %v7489_v27, %v7310_v1  ;;  %v7495_v37 = vmul.f32 %v7489_v27, %v7312_v53  ;;  %v3070_v24 = vmul.f32 %v7501_v43, %v7310_v1  ;;  %v7516_v1 = vld [vmem:[%s8598_s5 + $0x4] ss:$0 sm:$0xff] }
 0x1c3   : > { %2659 = vst.msk [vmem:[#allocation2 + $0x109] sm:$0xff] %vm2147_vm3, %v2571_v47  ;;  %v4406_v10 = vadd.f32 %v4311_v8, %v4158_v36  ;;  %v3343_v48 = vadd.f32 %v3311_v30, %v3271_v28  ;;  %v7507_v52 = vmul.f32 %v7501_v43, %v7312_v53  ;;  %v4065_v38 = vsel %vm616_vm1, %v4062_v9, %v4064_v14  ;;  %v7522_v9 = vld [vmem:[#allocation2 + $0xc8] sm:$0xff]  ;;  %v7544_v30 = vld [vmem:[%s8598_s5 + $0x3] ss:$0 sm:$0xff]  ;;  %v5137_v47 = vpop.f32.mrf.mxu0 }
 0x1c4   : > { %v4312_v61 = vrot.slane %v4205_v46, 2  ;;  %v2930_v6 = vrot.slane %v2822_v32, 1  ;;  %v2931_v0 = vrot.slane %v7495_v37, 1  ;;  %v3178_v21 = vrot.slane %v3070_v24, 2  ;;  %v7580_v24 = vld [vmem:[#allocation2 + $0xd0] sm:$0x3] }
 0x1c5   : > { %5167 = vmatprep.mubr.msk.f32.mxu1 %vm2147_vm3, %v4406_v10  ;;  %v3591_v29 = vadd.f32 %v3497_v50, %v3343_v48  ;;  %v3179_v51 = vrot.slane %v7507_v52, 2  ;;  %v3390_v31 = vmul.f32 %v7516_v1, %v7407_v56  ;;  %v7527_v54 = vmul.f32 %v7516_v1, %v7409_v16  ;;  %v2424_v10 = vpop.f32.mrf.mxu0 }
 0x1c6   : > { %v2932_v59 = vsel %vm616_vm1, %v2930_v6, %v2931_v0  ;;  %v3638_v34 = vmul.f32 %v7532_v44, %v7407_v56  ;;  %v7538_v23 = vmul.f32 %v7532_v44, %v7409_v16  ;;  %v3312_v35 = vmul.f32 %v7544_v30, %v7407_v56 }
 0x1c7   : > { %v3839_v2 = vadd.f32 %v3745_v60, %v3591_v29  ;;  %v3024_v8 = vadd.f32 %v2932_v59, %v2744_v55  ;;  %v3180_v7 = vsel %vm865_vm2, %v3178_v21, %v3179_v51  ;;  %v3498_v13 = vrot.slane %v3390_v31, 1 }
 0x1c8   : > { %v3499_v17 = vrot.slane %v7527_v54, 1  ;;  %v3746_v25 = vrot.slane %v3638_v34, 2  ;;  %v3747_v4 = vrot.slane %v7538_v23, 2  ;;  %v3958_v33 = vmul.f32 %v6985_v63, %v7520_v22 }
 0x1c9   : > { %v3911_v3 = vadd.f32 %v3879_v18, %v3839_v2  ;;  %v3272_v5 = vadd.f32 %v3180_v7, %v3024_v8  ;;  %v7554_v45 = vmul.f32 %v6985_v63, %v7522_v9  ;;  %v4313_v62 = vsel %vm865_vm2, %v4310_v12, %v4312_v61  ;;  %v7597_v8 = vld [vmem:[%s8598_s5 + $0x7] ss:$0 sm:$0xff] }
 0x1ca   : > { %v3880_v57 = vmul.f32 %v6992_v58, %v7520_v22  ;;  %v4206_v15 = vmul.f32 %v7003_v41, %v7520_v22  ;;  %v7565_v20 = vmul.f32 %v7003_v41, %v7522_v9  ;;  %v4066_v18 = vrot.slane %v3958_v33, 1 }
 0x1cb   : > { %v4159_v39 = vadd.f32 %v4065_v38, %v3911_v3  ;;  %v3344_v50 = vadd.f32 %v3312_v35, %v3272_v5  ;;  %v4067_v63 = vrot.slane %v7554_v45, 1  ;;  %v3500_v46 = vsel %vm616_vm1, %v3498_v13, %v3499_v17  ;;  %v7616_v45 = vld [vmem:[%s8598_s5 + $0x6] ss:$0 sm:$0xff] }
 0x1cc   : > { %v4314_v19 = vrot.slane %v4206_v15, 2  ;;  %v4315_v12 = vrot.slane %v7565_v20, 2  ;;  %v2824_v58 = vmul.f32 %v7489_v27, %v7344_v11  ;;  %v3748_v60 = vsel %vm865_vm2, %v3746_v25, %v3747_v4 }
 0x1cd   : > { %v4407_v36 = vadd.f32 %v4313_v62, %v4159_v39  ;;  %v3592_v28 = vadd.f32 %v3500_v46, %v3344_v50  ;;  %v3072_v41 = vmul.f32 %v7501_v43, %v7344_v11  ;;  %v2503_v14 = vmul.f32 %v7356_v42, %v5137_v47 }
 0x1ce   : > { %v4068_v55 = vsel %vm616_vm1, %v4066_v18, %v4067_v63  ;;  %v2745_v32 = vmul.f32 %v7482_v26, %v7312_v53  ;;  %v2933_v37 = vrot.slane %v2824_v58, 1  ;;  %v3392_v38 = vmul.f32 %v7516_v1, %v7454_v40 }
 0x1cf   : > { %5168 = vmatmul.mubr.msk.f32.gmra.mxu1 %vm2147_vm3, %v4407_v36  ;;  %v3840_v48 = vadd.f32 %v3748_v60, %v3592_v28  ;;  %v3181_v52 = vrot.slane %v3072_v41, 2  ;;  %v3640_v11 = vmul.f32 %v7532_v44, %v7454_v40  ;;  %v2542_v61 = vadd.f32 %v7373_v49, %v2503_v14 }
 0x1d0   : > { %v2502_v6 = vmul.f32 %v7356_v42, %v2424_v10  ;;  %v4316_v53 = vsel %vm865_vm2, %v4314_v19, %v4315_v12  ;;  %v2934_v29 = vsel %vm616_vm1, %v2931_v0, %v2933_v37  ;;  %v3501_v54 = vrot.slane %v3392_v38, 1 }
 0x1d1   : > { %v3912_v21 = vadd.f32 %v3880_v57, %v3840_v48  ;;  %v3025_v31 = vadd.f32 %v2934_v29, %v2745_v32  ;;  %v3182_v59 = vsel %vm865_vm2, %v3179_v51, %v3181_v52  ;;  %v2574_v34 = vmax.f32 %v2542_v61, 0.0  ;;  %v7606_v51 = vld [vmem:[%s8598_s5 + $0x8] ss:$0 sm:$0xff]  ;;  %v7643_v32 = vld [vmem:[#allocation2 + $0xe0] sm:$0xff] }
 0x1d2   : > { %v2541_v23 = vadd.f32 %v7373_v49, %v2502_v6  ;;  %v3749_v2 = vrot.slane %v3640_v11, 2  ;;  %v3960_v7 = vmul.f32 %v7597_v8, %v7580_v24  ;;  %v3313_v0 = vmul.f32 %v7544_v30, %v7409_v16 }
 0x1d3   : > { %v4160_v35 = vadd.f32 %v4068_v55, %v3912_v21  ;;  %v3273_v13 = vadd.f32 %v3182_v59, %v3025_v31  ;;  %v4208_v25 = vmul.f32 %v7606_v51, %v7580_v24  ;;  %2662 = vst.msk [vmem:[#allocation2 + $0x129] sm:$0xff] %vm2147_vm3, %v2574_v34  ;;  %v3502_v5 = vsel %vm616_vm1, %v3499_v17, %v3501_v54  ;;  %v7641_v55 = vld [vmem:[#allocation2 + $0xd8] sm:$0xff] }
 0x1d4   : > { %v2573_v3 = vmax.f32 %v2541_v23, 0.0  ;;  %v3750_v33 = vsel %vm865_vm2, %v3747_v4, %v3749_v2  ;;  %v3881_v62 = vmul.f32 %v7616_v45, %v7522_v9  ;;  %v4069_v39 = vrot.slane %v3960_v7, 1 }
 0x1d5   : > { %v4408_v57 = vadd.f32 %v4316_v53, %v4160_v35  ;;  %v3345_v15 = vadd.f32 %v3313_v0, %v3273_v13  ;;  %v2825_v50 = vmul.f32 %v7489_v27, %v7407_v56  ;;  %v2746_v17 = vmul.f32 %v7482_v26, %v7407_v56  ;;  %v5140_v0 = vpop.f32.mrf.mxu0 }
 0x1d6   : > { %2661 = vst.msk [vmem:[#allocation2 + $0x121] sm:$0xff] %vm2147_vm3, %v2573_v3  ;;  %v7627_v4 = vmul.f32 %v7489_v27, %v7409_v16  ;;  %v3073_v18 = vmul.f32 %v7501_v43, %v7407_v56  ;;  %v7633_v46 = vmul.f32 %v7501_v43, %v7409_v16  ;;  %v4070_v58 = vsel %vm616_vm1, %v4067_v63, %v4069_v39 }
 0x1d7   : > { %5170 = vmatprep.mubr.msk.f32.mxu1 %vm2147_vm3, %v4408_v57  ;;  %v3593_v19 = vadd.f32 %v3502_v5, %v3345_v15  ;;  %v4317_v47 = vrot.slane %v4208_v25, 2  ;;  %v2935_v36 = vrot.slane %v2825_v50, 1  ;;  %v3393_v14 = vmul.f32 %v7516_v1, %v7520_v22  ;;  %v2434_v50 = vpop.f32.mrf.mxu0 }
 0x1d8   : > { %v2936_v28 = vrot.slane %v7627_v4, 1  ;;  %v3183_v60 = vrot.slane %v3073_v18, 2  ;;  %v3184_v41 = vrot.slane %v7633_v46, 2  ;;  %v3394_v37 = vmul.f32 %v7516_v1, %v7522_v9 }
 0x1d9   : > { %v3841_v56 = vadd.f32 %v3750_v33, %v3593_v19  ;;  %v3641_v63 = vmul.f32 %v7532_v44, %v7520_v22  ;;  %v7651_v10 = vmul.f32 %v7532_v44, %v7522_v9  ;;  %v4318_v48 = vsel %vm865_vm2, %v4315_v12, %v4317_v47 }
 0x1da   : > { %v2937_v52 = vsel %vm616_vm1, %v2935_v36, %v2936_v28  ;;  %v3185_v38 = vsel %vm865_vm2, %v3183_v60, %v3184_v41  ;;  %v3503_v11 = vrot.slane %v3393_v14, 1  ;;  %v3504_v53 = vrot.slane %v3394_v37, 1  ;;  %v7697_v60 = vld [vmem:[#allocation2 + $0xe8] sm:$0x3] }
 0x1db   : > { %v3913_v61 = vadd.f32 %v3881_v62, %v3841_v56  ;;  %v3026_v6 = vadd.f32 %v2937_v52, %v2746_v17  ;;  %v3751_v29 = vrot.slane %v3641_v63, 2  ;;  %v3752_v21 = vrot.slane %v7651_v10, 2 }
 0x1dc   : > { %v3961_v31 = vmul.f32 %v7597_v8, %v7641_v55  ;;  %v7663_v59 = vmul.f32 %v7597_v8, %v7643_v32  ;;  %v4209_v20 = vmul.f32 %v7606_v51, %v7641_v55  ;;  %v3314_v34 = vmul.f32 %v7544_v30, %v7520_v22 }
 0x1dd   : > { %v4161_v12 = vadd.f32 %v4070_v58, %v3913_v61  ;;  %v3274_v54 = vadd.f32 %v3185_v38, %v3026_v6  ;;  %v7671_v23 = vmul.f32 %v7606_v51, %v7643_v32  ;;  %v3882_v2 = vmul.f32 %v7616_v45, %v7641_v55 }
 0x1de   : > { %v4071_v7 = vrot.slane %v3961_v31, 1  ;;  %v4072_v35 = vrot.slane %v7663_v59, 1  ;;  %v4319_v13 = vrot.slane %v4209_v20, 2  ;;  %v3505_v5 = vsel %vm616_vm1, %v3503_v11, %v3504_v53 }
 0x1df   : > { %v4409_v25 = vadd.f32 %v4318_v48, %v4161_v12  ;;  %v3346_v3 = vadd.f32 %v3314_v34, %v3274_v54  ;;  %v4320_v33 = vrot.slane %v7671_v23, 2  ;;  %v2505_v62 = vmul.f32 %v7356_v42, %v5140_v0 }
 0x1e0   : > { %v3753_v57 = vsel %vm865_vm2, %v3751_v29, %v3752_v21  ;;  %v2827_v15 = vmul.f32 %v7489_v27, %v7454_v40  ;;  %v3075_v39 = vmul.f32 %v7501_v43, %v7454_v40  ;;  %v4073_v4 = vsel %vm616_vm1, %v4071_v7, %v4072_v35 }
 0x1e1   : > { %5171 = vmatmul.mubr.msk.f32.gmra.mxu1 %vm2147_vm3, %v4409_v25  ;;  %v3594_v17 = vadd.f32 %v3505_v5, %v3346_v3  ;;  %v2747_v18 = vmul.f32 %v7482_v26, %v7409_v16  ;;  %v3395_v46 = vmul.f32 %v7516_v1, %v7580_v24  ;;  %v2544_v19 = vadd.f32 %v7373_v49, %v2505_v62 }
 0x1e2   : > { %v2504_v58 = vmul.f32 %v7356_v42, %v2434_v50  ;;  %v4321_v40 = vsel %vm865_vm2, %v4319_v13, %v4320_v33  ;;  %v2938_v47 = vrot.slane %v2827_v15, 1  ;;  %v3186_v14 = vrot.slane %v3075_v39, 2 }
 0x1e3   : > { %v3842_v36 = vadd.f32 %v3753_v57, %v3594_v17  ;;  %v3315_v56 = vmul.f32 %v7544_v30, %v7522_v9  ;;  %v3643_v16 = vmul.f32 %v7532_v44, %v7580_v24  ;;  %v2576_v37 = vmax.f32 %v2544_v19, 0.0 }
 0x1e4   : > { %v2543_v63 = vadd.f32 %v7373_v49, %v2504_v58  ;;  %v2939_v48 = vsel %vm616_vm1, %v2936_v28, %v2938_v47  ;;  %v3506_v52 = vrot.slane %v3395_v46, 1  ;;  %v3187_v61 = vsel %vm865_vm2, %v3184_v41, %v3186_v14 }
 0x1e5   : > { %v3914_v38 = vadd.f32 %v3882_v2, %v3842_v36  ;;  %v3027_v11 = vadd.f32 %v2939_v48, %v2747_v18  ;;  %v3883_v6 = vmul.f32 %v7616_v45, %v7643_v32  ;;  %2664 = vst.msk [vmem:[#allocation2 + $0x141] sm:$0xff] %vm2147_vm3, %v2576_v37  ;;  %v3963_v59 = vmul.f32 %v7597_v8, %v7697_v60  ;;  %v7740_v18 = vld [vmem:[#allocation2 + $0xf8] sm:$0xff] }
 0x1e6   : > { %v2575_v29 = vmax.f32 %v2543_v63, 0.0  ;;  %v3507_v31 = vsel %vm616_vm1, %v3504_v53, %v3506_v52  ;;  %v4211_v20 = vmul.f32 %v7606_v51, %v7697_v60  ;;  %v3754_v54 = vrot.slane %v3643_v16, 2 }
 0x1e7   : > { %v4162_v28 = vadd.f32 %v4073_v4, %v3914_v38  ;;  %v3275_v12 = vadd.f32 %v3187_v61, %v3027_v11  ;;  %v2828_v41 = vmul.f32 %v7489_v27, %v7520_v22  ;;  %v4074_v34 = vrot.slane %v3963_v59, 1  ;;  %v7738_v4 = vld [vmem:[#allocation2 + $0xf0] sm:$0xff] }
 0x1e8   : > { %2663 = vst.msk [vmem:[#allocation2 + $0x139] sm:$0xff] %vm2147_vm3, %v2575_v29  ;;  %v2748_v2 = vmul.f32 %v7482_v26, %v7520_v22  ;;  %v7721_v53 = vmul.f32 %v7489_v27, %v7522_v9  ;;  %v3076_v7 = vmul.f32 %v7501_v43, %v7520_v22  ;;  %v7727_v3 = vmul.f32 %v7501_v43, %v7522_v9  ;;  %v5143_v29 = vpop.f32.mrf.mxu0 }
 0x1e9   : > { %v4410_v13 = vadd.f32 %v4321_v40, %v4162_v28  ;;  %v3347_v0 = vadd.f32 %v3315_v56, %v3275_v12  ;;  %v2940_v25 = vrot.slane %v2828_v41, 1  ;;  %v3755_v5 = vsel %vm865_vm2, %v3752_v21, %v3754_v54 }
 0x1ea   : > { %v4322_v62 = vrot.slane %v4211_v20, 2  ;;  %v2941_v57 = vrot.slane %v7721_v53, 1  ;;  %v3188_v15 = vrot.slane %v3076_v7, 2  ;;  %v4075_v22 = vsel %vm616_vm1, %v4072_v35, %v4074_v34  ;;  %v2444_v41 = vpop.f32.mrf.mxu0 }
 0x1eb   : > { %5173 = vmatprep.mubr.msk.f32.mxu1 %vm2147_vm3, %v4410_v13  ;;  %v3595_v39 = vadd.f32 %v3507_v31, %v3347_v0  ;;  %v3189_v50 = vrot.slane %v7727_v3, 2  ;;  %v3396_v17 = vmul.f32 %v7516_v1, %v7641_v55  ;;  %v7745_v21 = vmul.f32 %v7516_v1, %v7643_v32 }
 0x1ec   : > { %v2942_v10 = vsel %vm616_vm1, %v2940_v25, %v2941_v57  ;;  %v3644_v46 = vmul.f32 %v7532_v44, %v7641_v55  ;;  %v7751_v35 = vmul.f32 %v7532_v44, %v7643_v32  ;;  %v3316_v47 = vmul.f32 %v7544_v30, %v7641_v55 }
 0x1ed   : > { %v3843_v19 = vadd.f32 %v3755_v5, %v3595_v39  ;;  %v3028_v58 = vadd.f32 %v2942_v10, %v2748_v2  ;;  %v3190_v40 = vsel %vm865_vm2, %v3188_v15, %v3189_v50  ;;  %v3508_v36 = vrot.slane %v3396_v17, 1  ;;  %v7790_v10 = vld [vmem:[#allocation2 + $0x100] sm:$0x3] }
 0x1ee   : > { %v3509_v14 = vrot.slane %v7745_v21, 1  ;;  %v3756_v56 = vrot.slane %v3644_v46, 2  ;;  %v3757_v16 = vrot.slane %v7751_v35, 2  ;;  %v3964_v48 = vmul.f32 %v7597_v8, %v7738_v4 }
 0x1ef   : > { %v3915_v37 = vadd.f32 %v3883_v6, %v3843_v19  ;;  %v3276_v63 = vadd.f32 %v3190_v40, %v3028_v58  ;;  %v3965_v52 = vmul.f32 %v7597_v8, %v7740_v18  ;;  %v4323_v38 = vsel %vm865_vm2, %v4320_v33, %v4322_v62 }
 0x1f0   : > { %v3884_v11 = vmul.f32 %v7616_v45, %v7738_v4  ;;  %v4212_v61 = vmul.f32 %v7606_v51, %v7738_v4  ;;  %v7771_v6 = vmul.f32 %v7606_v51, %v7740_v18  ;;  %v4076_v20 = vrot.slane %v3964_v48, 1 }
 0x1f1   : > { %v4163_v31 = vadd.f32 %v4075_v22, %v3915_v37  ;;  %v3348_v59 = vadd.f32 %v3316_v47, %v3276_v63  ;;  %v4077_v28 = vrot.slane %v3965_v52, 1  ;;  %v2507_v12 = vmul.f32 %v7356_v42, %v5143_v29 }
 0x1f2   : > { %v3510_v23 = vsel %vm616_vm1, %v3508_v36, %v3509_v14  ;;  %v3758_v33 = vsel %vm865_vm2, %v3756_v56, %v3757_v16  ;;  %v4324_v54 = vrot.slane %v4212_v61, 2  ;;  %v4325_v53 = vrot.slane %v7771_v6, 2 }
 0x1f3   : > { %v4411_v34 = vadd.f32 %v4323_v38, %v4163_v31  ;;  %v3596_v2 = vadd.f32 %v3510_v23, %v3348_v59  ;;  %v2830_v7 = vmul.f32 %v7489_v27, %v7580_v24  ;;  %v2546_v13 = vadd.f32 %v7373_v49, %v2507_v12 }
 0x1f4   : > { %v2506_v0 = vmul.f32 %v7356_v42, %v2444_v41  ;;  %v2749_v25 = vmul.f32 %v7482_v26, %v7522_v9  ;;  %v3078_v3 = vmul.f32 %v7501_v43, %v7580_v24  ;;  %v4078_v62 = vsel %vm616_vm1, %v4076_v20, %v4077_v28 }
 0x1f5   : > { %5174 = vmatmul.mubr.msk.f32.gmra.mxu1 %vm2147_vm3, %v4411_v34  ;;  %v3844_v5 = vadd.f32 %v3758_v33, %v3596_v2  ;;  %v2943_v15 = vrot.slane %v2830_v7, 1  ;;  %v3398_v39 = vmul.f32 %v7516_v1, %v7697_v60  ;;  %v2578_v22 = vmax.f32 %v2546_v13, 0.0  ;;  %v7829_v7 = vld [vmem:[#allocation2 + $0x108] sm:$0xff]  ;;  %v7831_v13 = vld [vmem:[#allocation2 + $0x110] sm:$0xff] }
 0x1f6   : > { %v2545_v17 = vadd.f32 %v7373_v49, %v2506_v0  ;;  %v3191_v21 = vrot.slane %v3078_v3, 2  ;;  %v3646_v9 = vmul.f32 %v7532_v44, %v7697_v60  ;;  %v4326_v24 = vsel %vm865_vm2, %v4324_v54, %v4325_v53 }
 0x1f7   : > { %v3916_v46 = vadd.f32 %v3884_v11, %v3844_v5  ;;  %v2944_v35 = vsel %vm616_vm1, %v2941_v57, %v2943_v15  ;;  %v3317_v19 = vmul.f32 %v7544_v30, %v7643_v32  ;;  %2666 = vst.msk [vmem:[#allocation2 + $0x159] sm:$0xff] %vm2147_vm3, %v2578_v22  ;;  %v3511_v36 = vrot.slane %v3398_v39, 1 }
 0x1f8   : > { %v2577_v58 = vmax.f32 %v2545_v17, 0.0  ;;  %v3029_v40 = vadd.f32 %v2944_v35, %v2749_v25  ;;  %v3192_v47 = vsel %vm865_vm2, %v3189_v50, %v3191_v21  ;;  %v3759_v37 = vrot.slane %v3646_v9, 2  ;;  %v5146_v35 = vpop.f32.mrf.mxu0 }
 0x1f9   : > { %v4164_v56 = vadd.f32 %v4078_v62, %v3916_v46  ;;  %v3966_v63 = vmul.f32 %v7597_v8, %v7790_v10  ;;  %v4214_v48 = vmul.f32 %v7606_v51, %v7790_v10  ;;  %v3512_v52 = vsel %vm616_vm1, %v3509_v14, %v3511_v36 }
 0x1fa   : > { %2665 = vst.msk [vmem:[#allocation2 + $0x151] sm:$0xff] %vm2147_vm3, %v2577_v58  ;;  %v3277_v57 = vadd.f32 %v3192_v47, %v3029_v40  ;;  %v3885_v38 = vmul.f32 %v7616_v45, %v7740_v18  ;;  %v2831_v50 = vmul.f32 %v7489_v27, %v7641_v55  ;;  %v3760_v61 = vsel %vm865_vm2, %v3757_v16, %v3759_v37 }
 0x1fb   : > { %v4412_v11 = vadd.f32 %v4326_v24, %v4164_v56  ;;  %v4079_v6 = vrot.slane %v3966_v63, 1  ;;  %v7813_v29 = vmul.f32 %v7489_v27, %v7643_v32  ;;  %v3079_v20 = vmul.f32 %v7501_v43, %v7641_v55 }
 0x1fc   : > { %v3349_v31 = vadd.f32 %v3317_v19, %v3277_v57  ;;  %v2945_v59 = vrot.slane %v2831_v50, 1  ;;  %v7819_v14 = vmul.f32 %v7501_v43, %v7643_v32  ;;  %v4327_v23 = vrot.slane %v4214_v48, 2  ;;  %v2454_v48 = vpop.f32.mrf.mxu0 }
 0x1fd   : > { %5176 = vmatprep.mubr.msk.f32.mxu1 %vm2147_vm3, %v4412_v11  ;;  %v4080_v12 = vsel %vm616_vm1, %v4077_v28, %v4079_v6  ;;  %v2750_v16 = vmul.f32 %v7482_v26, %v7641_v55  ;;  %v2946_v33 = vrot.slane %v7813_v29, 1  ;;  %v3193_v41 = vrot.slane %v3079_v20, 2 }
 0x1fe   : > { %v3597_v54 = vadd.f32 %v3512_v52, %v3349_v31  ;;  %v3194_v34 = vrot.slane %v7819_v14, 2  ;;  %v3399_v2 = vmul.f32 %v7516_v1, %v7738_v4  ;;  %v7836_v28 = vmul.f32 %v7516_v1, %v7740_v18 }
 0x1ff   : > { %v2947_v0 = vsel %vm616_vm1, %v2945_v59, %v2946_v33  ;;  %v3647_v55 = vmul.f32 %v7532_v44, %v7738_v4  ;;  %v7842_v25 = vmul.f32 %v7532_v44, %v7740_v18  ;;  %v4328_v5 = vsel %vm865_vm2, %v4325_v53, %v4327_v23  ;;  %v7873_v59 = vld [vmem:[#allocation2 + $0x118] sm:$0x3] }
 0x200   : > { %v3845_v3 = vadd.f32 %v3760_v61, %v3597_v54  ;;  %v3030_v62 = vadd.f32 %v2947_v0, %v2750_v16  ;;  %v3318_v15 = vmul.f32 %v7544_v30, %v7738_v4  ;;  %v3195_v39 = vsel %vm865_vm2, %v3193_v41, %v3194_v34 }
 0x201   : > { %v3513_v22 = vrot.slane %v3399_v2, 1  ;;  %v3514_v17 = vrot.slane %v7836_v28, 1  ;;  %v3761_v21 = vrot.slane %v3647_v55, 2  ;;  %v3967_v24 = vmul.f32 %v7597_v8, %v7829_v7 }
 0x202   : > { %v3917_v9 = vadd.f32 %v3885_v38, %v3845_v3  ;;  %v3278_v46 = vadd.f32 %v3195_v39, %v3030_v62  ;;  %v7855_v53 = vmul.f32 %v7597_v8, %v7831_v13  ;;  %v3762_v19 = vrot.slane %v7842_v25, 2 }
 0x203   : > { %v3886_v58 = vmul.f32 %v7616_v45, %v7829_v7  ;;  %v4215_v40 = vmul.f32 %v7606_v51, %v7829_v7  ;;  %v7864_v47 = vmul.f32 %v7606_v51, %v7831_v13  ;;  %v2509_v36 = vmul.f32 %v7356_v42, %v5146_v35 }
 0x204   : > { %v4165_v56 = vadd.f32 %v4080_v12, %v3917_v9  ;;  %v3350_v37 = vadd.f32 %v3318_v15, %v3278_v46  ;;  %v4081_v63 = vrot.slane %v3967_v24, 1  ;;  %v3515_v57 = vsel %vm616_vm1, %v3513_v22, %v3514_v17 }
 0x205   : > { %v4082_v52 = vrot.slane %v7855_v53, 1  ;;  %v4329_v38 = vrot.slane %v4215_v40, 2  ;;  %v4330_v50 = vrot.slane %v7864_v47, 2  ;;  %v2548_v11 = vadd.f32 %v7373_v49, %v2509_v36 }
 0x206   : > { %v2508_v61 = vmul.f32 %v7356_v42, %v2454_v48  ;;  %v4413_v6 = vadd.f32 %v4328_v5, %v4165_v56  ;;  %v3598_v29 = vadd.f32 %v3515_v57, %v3350_v37  ;;  %v3763_v31 = vsel %vm865_vm2, %v3761_v21, %v3762_v19 }
 0x207   : > { %v2751_v20 = vmul.f32 %v7482_v26, %v7643_v32  ;;  %v2833_v12 = vmul.f32 %v7489_v27, %v7697_v60  ;;  %v3081_v23 = vmul.f32 %v7501_v43, %v7697_v60  ;;  %v2580_v16 = vmax.f32 %v2548_v11, 0.0 }
 0x208   : > { %v2547_v54 = vadd.f32 %v7373_v49, %v2508_v61  ;;  %5177 = vmatmul.mubr.msk.f32.gmra.mxu1 %vm2147_vm3, %v4413_v6  ;;  %v3846_v41 = vadd.f32 %v3763_v31, %v3598_v29  ;;  %v4083_v2 = vsel %vm616_vm1, %v4081_v63, %v4082_v52  ;;  %v4331_v0 = vsel %vm865_vm2, %v4329_v38, %v4330_v50  ;;  %v7930_v31 = vld [vmem:[#allocation2 + $0x120] sm:$0xff] }
 0x209   : > { %v2948_v28 = vrot.slane %v2833_v12, 1  ;;  %v3401_v32 = vmul.f32 %v7516_v1, %v7790_v10  ;;  %v3649_v55 = vmul.f32 %v7532_v44, %v7790_v10  ;;  %2668 = vst.msk [vmem:[#allocation2 + $0x171] sm:$0xff] %vm2147_vm3, %v2580_v16  ;;  %v3319_v3 = vmul.f32 %v7544_v30, %v7740_v18 }
 0x20a   : > { %v2579_v60 = vmax.f32 %v2547_v54, 0.0  ;;  %v3918_v25 = vadd.f32 %v3886_v58, %v3846_v41  ;;  %v3969_v5 = vmul.f32 %v7597_v8, %v7873_v59  ;;  %v3196_v15 = vrot.slane %v3081_v23, 2 }
 0x20b   : > { %v2949_v62 = vsel %vm616_vm1, %v2946_v33, %v2948_v28  ;;  %v3516_v39 = vrot.slane %v3401_v32, 1  ;;  %v3887_v22 = vmul.f32 %v7616_v45, %v7831_v13  ;;  %v3764_v46 = vrot.slane %v3649_v55, 2 }
 0x20c   : > { %2667 = vst.msk [vmem:[#allocation2 + $0x169] sm:$0xff] %vm2147_vm3, %v2579_v60  ;;  %v4166_v21 = vadd.f32 %v4083_v2, %v3918_v25  ;;  %v3031_v9 = vadd.f32 %v2949_v62, %v2751_v20  ;;  %v4217_v24 = vmul.f32 %v7606_v51, %v7873_v59  ;;  %v3197_v53 = vsel %vm865_vm2, %v3194_v34, %v3196_v15  ;;  %v7932_v20 = vld [vmem:[#allocation2 + $0x128] sm:$0xff] }
 0x20d   : > { %v3517_v35 = vsel %vm616_vm1, %v3514_v17, %v3516_v39  ;;  %v4084_v33 = vrot.slane %v3969_v5, 1  ;;  %v2834_v58 = vmul.f32 %v7489_v27, %v7738_v4  ;;  %v3765_v36 = vsel %vm865_vm2, %v3762_v19, %v3764_v46 }
 0x20e   : > { %v4414_v40 = vadd.f32 %v4331_v0, %v4166_v21  ;;  %v3279_v47 = vadd.f32 %v3197_v53, %v3031_v9  ;;  %v2752_v56 = vmul.f32 %v7482_v26, %v7738_v4  ;;  %v7911_v37 = vmul.f32 %v7489_v27, %v7740_v18 }
 0x20f   : > { %v2950_v14 = vrot.slane %v2834_v58, 1  ;;  %v3082_v34 = vmul.f32 %v7501_v43, %v7738_v4  ;;  %v7917_v17 = vmul.f32 %v7501_v43, %v7740_v18  ;;  %v4085_v19 = vsel %vm616_vm1, %v4082_v52, %v4084_v33 }
 0x210   : > { %5179 = vmatprep.mubr.msk.f32.mxu1 %vm2147_vm3, %v4414_v40  ;;  %v3351_v63 = vadd.f32 %v3319_v3, %v3279_v47  ;;  %v4332_v48 = vrot.slane %v4217_v24, 2  ;;  %v3402_v57 = vmul.f32 %v7516_v1, %v7829_v7  ;;  %v2951_v38 = vrot.slane %v7911_v37, 1  ;;  %v5149_v3 = vpop.f32.mrf.mxu0 }
 0x211   : > { %v3198_v11 = vrot.slane %v3082_v34, 2  ;;  %v3199_v61 = vrot.slane %v7917_v17, 2  ;;  %v7927_v4 = vmul.f32 %v7516_v1, %v7831_v13  ;;  %v3650_v52 = vmul.f32 %v7532_v44, %v7829_v7  ;;  %v7968_v34 = vld [vmem:[#allocation2 + $0x130] sm:$0x3] }
 0x212   : > { %v3599_v6 = vadd.f32 %v3517_v35, %v3351_v63  ;;  %v4333_v29 = vsel %vm865_vm2, %v4330_v50, %v4332_v48  ;;  %v7938_v12 = vmul.f32 %v7532_v44, %v7831_v13  ;;  %v2952_v23 = vsel %vm616_vm1, %v2950_v14, %v2951_v38  ;;  %v2464_v53 = vpop.f32.mrf.mxu0 }
 0x213   : > { %v3320_v16 = vmul.f32 %v7544_v30, %v7829_v7  ;;  %v3518_v54 = vrot.slane %v3402_v57, 1  ;;  %v3519_v41 = vrot.slane %v7927_v4, 1  ;;  %v3032_v2 = vadd.f32 %v2952_v23, %v2752_v56 }
 0x214   : > { %v3847_v50 = vadd.f32 %v3765_v36, %v3599_v6  ;;  %v3200_v0 = vsel %vm865_vm2, %v3198_v11, %v3199_v61  ;;  %v3766_v28 = vrot.slane %v3650_v52, 2  ;;  %v3767_v32 = vrot.slane %v7938_v12, 2 }
 0x215   : > { %v3970_v55 = vmul.f32 %v7597_v8, %v7930_v31  ;;  %v3971_v60 = vmul.f32 %v7597_v8, %v7932_v20  ;;  %v4218_v25 = vmul.f32 %v7606_v51, %v7930_v31  ;;  %v3280_v62 = vadd.f32 %v3200_v0, %v3032_v2 }
 0x216   : > { %v3919_v5 = vadd.f32 %v3887_v22, %v3847_v50  ;;  %v3888_v15 = vmul.f32 %v7616_v45, %v7930_v31  ;;  %v7958_v39 = vmul.f32 %v7606_v51, %v7932_v20  ;;  %v2511_v21 = vmul.f32 %v7356_v42, %v5149_v3 }
 0x217   : > { %v3520_v9 = vsel %vm616_vm1, %v3518_v54, %v3519_v41  ;;  %v4086_v46 = vrot.slane %v3970_v55, 1  ;;  %v4087_v24 = vrot.slane %v3971_v60, 1  ;;  %v3352_v33 = vadd.f32 %v3320_v16, %v3280_v62 }
 0x218   : > { %v4167_v35 = vadd.f32 %v4085_v19, %v3919_v5  ;;  %v4334_v58 = vrot.slane %v4218_v25, 2  ;;  %v4335_v22 = vrot.slane %v7958_v39, 2  ;;  %v2550_v40 = vadd.f32 %v7373_v49, %v2511_v21 }
 0x219   : > { %v2510_v47 = vmul.f32 %v7356_v42, %v2464_v53  ;;  %v3768_v36 = vsel %vm865_vm2, %v3766_v28, %v3767_v32  ;;  %v2836_v56 = vmul.f32 %v7489_v27, %v7790_v10  ;;  %v3600_v14 = vadd.f32 %v3520_v9, %v3352_v33 }
 0x21a   : > { %v4415_v37 = vadd.f32 %v4333_v29, %v4167_v35  ;;  %v2753_v63 = vmul.f32 %v7482_v26, %v7740_v18  ;;  %v3084_v19 = vmul.f32 %v7501_v43, %v7790_v10  ;;  %v2582_v48 = vmax.f32 %v2550_v40, 0.0 }
 0x21b   : > { %v2549_v57 = vadd.f32 %v7373_v49, %v2510_v47  ;;  %v4088_v42 = vsel %vm616_vm1, %v4086_v46, %v4087_v24  ;;  %v2953_v11 = vrot.slane %v2836_v56, 1  ;;  %v3848_v4 = vadd.f32 %v3768_v36, %v3600_v14  ;;  %v8016_v36 = vld [vmem:[#allocation2 + $0x138] sm:$0xff] }
 0x21c   : > { %5180 = vmatmul.mubr.msk.f32.gmra.mxu1 %vm2147_vm3, %v4415_v37  ;;  %v4336_v6 = vsel %vm865_vm2, %v4334_v58, %v4335_v22  ;;  %v3404_v29 = vmul.f32 %v7516_v1, %v7873_v59  ;;  %v3652_v18 = vmul.f32 %v7532_v44, %v7873_v59  ;;  %2670 = vst.msk [vmem:[#allocation2 + $0x189] sm:$0xff] %vm2147_vm3, %v2582_v48  ;;  %v3201_v52 = vrot.slane %v3084_v19, 2 }
 0x21d   : > { %v2581_v10 = vmax.f32 %v2549_v57, 0.0  ;;  %v2954_v49 = vsel %vm616_vm1, %v2951_v38, %v2953_v11  ;;  %v3972_v12 = vmul.f32 %v7597_v8, %v7968_v34  ;;  %v3920_v23 = vadd.f32 %v3888_v15, %v3848_v4 }
 0x21e   : > { %v3033_v16 = vadd.f32 %v2954_v49, %v2753_v63  ;;  %v3321_v54 = vmul.f32 %v7544_v30, %v7831_v13  ;;  %v3889_v50 = vmul.f32 %v7616_v45, %v7932_v20  ;;  %v3202_v2 = vsel %vm865_vm2, %v3199_v61, %v3201_v52  ;;  %v8023_v63 = vld [vmem:[#allocation2 + $0x140] sm:$0xff] }
 0x21f   : > { %2669 = vst.msk [vmem:[#allocation2 + $0x181] sm:$0xff] %vm2147_vm3, %v2581_v10  ;;  %v3521_v0 = vrot.slane %v3404_v29, 1  ;;  %v3769_v38 = vrot.slane %v3652_v18, 2  ;;  %v4220_v28 = vmul.f32 %v7606_v51, %v7968_v34  ;;  %v4168_v55 = vadd.f32 %v4088_v42, %v3920_v23 }
 0x220   : > { %v3281_v60 = vadd.f32 %v3202_v2, %v3033_v16  ;;  %v4089_v25 = vrot.slane %v3972_v12, 1  ;;  %v2837_v3 = vmul.f32 %v7489_v27, %v7829_v7  ;;  %v2754_v17 = vmul.f32 %v7482_v26, %v7829_v7 }
 0x221   : > { %v3522_v5 = vsel %vm616_vm1, %v3519_v41, %v3521_v0  ;;  %v3770_v62 = vsel %vm865_vm2, %v3767_v32, %v3769_v38  ;;  %v2838_v61 = vmul.f32 %v7489_v27, %v7831_v13  ;;  %v4416_v15 = vadd.f32 %v4336_v6, %v4168_v55 }
 0x222   : > { %v3353_v21 = vadd.f32 %v3321_v54, %v3281_v60  ;;  %v2955_v9 = vrot.slane %v2837_v3, 1  ;;  %v3085_v46 = vmul.f32 %v7501_v43, %v7829_v7  ;;  %v4090_v53 = vsel %vm616_vm1, %v4087_v24, %v4089_v25  ;;  %v8045_v3 = vld [vmem:[#allocation2 + $0x148] sm:$0x3] }
 0x223   : > { %v4337_v35 = vrot.slane %v4220_v28, 2  ;;  %v2956_v33 = vrot.slane %v2838_v61, 1  ;;  %v3086_v41 = vmul.f32 %v7501_v43, %v7831_v13  ;;  %5182 = vmatprep.mubr.msk.f32.mxu1 %vm2147_vm3, %v4416_v15  ;;  %v3405_v40 = vmul.f32 %v7516_v1, %v7930_v31 }
 0x224   : > { %v3601_v32 = vadd.f32 %v3522_v5, %v3353_v21  ;;  %v3203_v58 = vrot.slane %v3085_v46, 2  ;;  %v3406_v47 = vmul.f32 %v7516_v1, %v7932_v20  ;;  %v3653_v56 = vmul.f32 %v7532_v44, %v7930_v31 }
 0x225   : > { %v2957_v7 = vsel %vm616_vm1, %v2955_v9, %v2956_v33  ;;  %v3204_v24 = vrot.slane %v3086_v41, 2  ;;  %v3654_v37 = vmul.f32 %v7532_v44, %v7932_v20  ;;  %v3523_v48 = vrot.slane %v3405_v40, 1 }
 0x226   : > { %v3849_v14 = vadd.f32 %v3770_v62, %v3601_v32  ;;  %v3034_v19 = vadd.f32 %v2957_v7, %v2754_v17  ;;  %v3524_v57 = vrot.slane %v3406_v47, 1  ;;  %v4338_v42 = vsel %vm865_vm2, %v4335_v22, %v4337_v35 }
 0x227   : > { %v3205_v11 = vsel %vm865_vm2, %v3203_v58, %v3204_v24  ;;  %v3771_v4 = vrot.slane %v3653_v56, 2  ;;  %v3772_v6 = vrot.slane %v3654_v37, 2  ;;  %v3322_v10 = vmul.f32 %v7544_v30, %v7930_v31 }
 0x228   : > { %v3921_v29 = vadd.f32 %v3889_v50, %v3849_v14  ;;  %v3282_v18 = vadd.f32 %v3205_v11, %v3034_v19  ;;  %v3973_v49 = vmul.f32 %v7597_v8, %v8016_v36  ;;  %v3890_v52 = vmul.f32 %v7616_v45, %v8016_v36 }
 0x229   : > { %v3974_v39 = vmul.f32 %v7597_v8, %v8023_v63  ;;  %v4221_v22 = vmul.f32 %v7606_v51, %v8016_v36  ;;  %v4222_v12 = vmul.f32 %v7606_v51, %v8023_v63  ;;  %v3525_v54 = vsel %vm616_vm1, %v3523_v48, %v3524_v57 }
 0x22a   : > { %v4169_v23 = vadd.f32 %v4090_v53, %v3921_v29  ;;  %v3354_v16 = vadd.f32 %v3322_v10, %v3282_v18  ;;  %v4091_v50 = vrot.slane %v3973_v49, 1  ;;  %v3773_v2 = vsel %vm865_vm2, %v3771_v4, %v3772_v6 }
 0x22b   : > { %v4092_v0 = vrot.slane %v3974_v39, 1  ;;  %v4339_v38 = vrot.slane %v4221_v22, 2  ;;  %v2839_v28 = vmul.f32 %v7489_v27, %v7873_v59  ;;  %v4340_v25 = vrot.slane %v4222_v12, 2  ;;  %v8089_v22 = vld [vmem:[#allocation2 + $0x150] sm:$0xff] }
 0x22c   : > { %v4417_v55 = vadd.f32 %v4338_v42, %v4169_v23  ;;  %v3602_v60 = vadd.f32 %v3525_v54, %v3354_v16  ;;  %v3087_v5 = vmul.f32 %v7501_v43, %v7873_v59  ;;  %v2755_v62 = vmul.f32 %v7482_v26, %v7831_v13 }
 0x22d   : > { %v2958_v17 = vrot.slane %v2839_v28, 1  ;;  %v3323_v61 = vmul.f32 %v7544_v30, %v7932_v20  ;;  %v3407_v15 = vmul.f32 %v7516_v1, %v7968_v34  ;;  %v4093_v9 = vsel %vm616_vm1, %v4091_v50, %v4092_v0 }
 0x22e   : > { %5183 = vmatmul.mubr.msk.f32.gmra.mxu1 %vm2147_vm3, %v4417_v55  ;;  %v3850_v21 = vadd.f32 %v3773_v2, %v3602_v60  ;;  %v3206_v46 = vrot.slane %v3087_v5, 2  ;;  %v3655_v53 = vmul.f32 %v7532_v44, %v7968_v34  ;;  %v3975_v13 = vmul.f32 %v7597_v8, %v8045_v3 }
 0x22f   : > { %v2959_v59 = vsel %vm616_vm1, %v2956_v33, %v2958_v17  ;;  %v3526_v35 = vrot.slane %v3407_v15, 1  ;;  %v4223_v41 = vmul.f32 %v7606_v51, %v8045_v3  ;;  %v4341_v58 = vsel %vm865_vm2, %v4339_v38, %v4340_v25 }
 0x230   : > { %v3922_v32 = vadd.f32 %v3890_v52, %v3850_v21  ;;  %v3035_v40 = vadd.f32 %v2959_v59, %v2755_v62  ;;  %v3891_v47 = vmul.f32 %v7616_v45, %v8023_v63  ;;  %v3207_v7 = vsel %vm865_vm2, %v3204_v24, %v3206_v46 }
 0x231   : > { %v3527_v56 = vsel %vm616_vm1, %v3524_v57, %v3526_v35  ;;  %v3774_v37 = vrot.slane %v3655_v53, 2  ;;  %v4094_v33 = vrot.slane %v3975_v13, 1  ;;  %v4342_v48 = vrot.slane %v4223_v41, 2 }
 0x232   : > { %v4170_v14 = vadd.f32 %v4093_v9, %v3922_v32  ;;  %v3283_v19 = vadd.f32 %v3207_v7, %v3035_v40  ;;  %v2840_v42 = vmul.f32 %v7489_v27, %v7930_v31  ;;  %v2756_v4 = vmul.f32 %v7482_v26, %v7930_v31  ;;  %v8120_v32 = vld [vmem:[#allocation2 + $0x160] sm:$0x3] }
 0x233   : > { %v3775_v11 = vsel %vm865_vm2, %v3772_v6, %v3774_v37  ;;  %v8076_v29 = vmul.f32 %v7489_v27, %v7932_v20  ;;  %v3088_v24 = vmul.f32 %v7501_v43, %v7930_v31  ;;  %v8082_v49 = vmul.f32 %v7501_v43, %v7932_v20  ;;  %v8091_v31 = vld [vmem:[#allocation2 + $0x158] sm:$0xff] }
 0x234   : > { %v4418_v57 = vadd.f32 %v4341_v58, %v4170_v14  ;;  %v3355_v18 = vadd.f32 %v3323_v61, %v3283_v19  ;;  %v2960_v10 = vrot.slane %v2840_v42, 1  ;;  %v4095_v52 = vsel %vm616_vm1, %v4092_v0, %v4094_v33  ;;  %v8125_v58 = vld [vmem:[%s8598_s5 + $0x1] ss:$0 sm:$0xff]  ;;  %v8139_v33 = vld [vmem:[%s8598_s5] ss:$0 sm:$0xff] }
 0x235   : > { %v2961_v6 = vrot.slane %v8076_v29, 1  ;;  %v3208_v39 = vrot.slane %v3088_v24, 2  ;;  %v3408_v26 = vmul.f32 %v7516_v1, %v8016_v36  ;;  %v3209_v12 = vrot.slane %v8082_v49, 2  ;;  %v8146_v19 = vld [vmem:[%s8598_s5 + $0x4] ss:$0 sm:$0xff] }
 0x236   : > { %5185 = vmatprep.mubr.msk.f32.mxu1 %vm2147_vm3, %v4418_v57  ;;  %v3603_v27 = vadd.f32 %v3527_v56, %v3355_v18  ;;  %v3409_v43 = vmul.f32 %v7516_v1, %v8023_v63  ;;  %v3656_v23 = vmul.f32 %v7532_v44, %v8016_v36  ;;  %v4343_v16 = vsel %vm865_vm2, %v4340_v25, %v4342_v48 }
 0x237   : > { %v2962_v54 = vsel %vm616_vm1, %v2960_v10, %v2961_v6  ;;  %v3528_v50 = vrot.slane %v3408_v26, 1  ;;  %v3657_v2 = vmul.f32 %v7532_v44, %v8023_v63  ;;  %v3210_v28 = vsel %vm865_vm2, %v3208_v39, %v3209_v12 }
 0x238   : > { %v3851_v0 = vadd.f32 %v3775_v11, %v3603_v27  ;;  %v3036_v38 = vadd.f32 %v2962_v54, %v2756_v4  ;;  %v3529_v55 = vrot.slane %v3409_v43, 1  ;;  %v3776_v60 = vrot.slane %v3656_v23, 2  ;;  %v8154_v11 = vld [vmem:[%s8598_s5 + $0x3] ss:$0 sm:$0xff] }
 0x239   : > { %v3777_v5 = vrot.slane %v3657_v2, 2  ;;  %v3976_v1 = vmul.f32 %v7597_v8, %v8089_v22  ;;  %v3977_v62 = vmul.f32 %v7597_v8, %v8091_v31  ;;  %v3324_v61 = vmul.f32 %v7544_v30, %v8016_v36 }
 0x23a   : > { %v3923_v25 = vadd.f32 %v3891_v47, %v3851_v0  ;;  %v3284_v17 = vadd.f32 %v3210_v28, %v3036_v38  ;;  %v4224_v44 = vmul.f32 %v7606_v51, %v8089_v22  ;;  %v3892_v15 = vmul.f32 %v7616_v45, %v8089_v22  ;;  %v8132_v47 = vld [vmem:[%s8598_s5 + $0x2] ss:$0 sm:$0xff] }
 0x23b   : > { %v4096_v21 = vrot.slane %v3976_v1, 1  ;;  %v4097_v9 = vrot.slane %v3977_v62, 1  ;;  %v8115_v46 = vmul.f32 %v7606_v51, %v8091_v31  ;;  %v3530_v35 = vsel %vm616_vm1, %v3528_v50, %v3529_v55 }
 0x23c   : > { %v4171_v53 = vadd.f32 %v4095_v52, %v3923_v25  ;;  %v3356_v59 = vadd.f32 %v3324_v61, %v3284_v17  ;;  %v4344_v13 = vrot.slane %v4224_v44, 2  ;;  %v3778_v41 = vsel %vm865_vm2, %v3776_v60, %v3777_v5 }
 0x23d   : > { %v4345_v30 = vrot.slane %v8115_v46, 2  ;;  %v2842_v40 = vmul.f32 %v8125_v58, %v7968_v34  ;;  %v3090_v7 = vmul.f32 %v8132_v47, %v7968_v34  ;;  %v2757_v14 = vmul.f32 %v8139_v33, %v7932_v20  ;;  %v8161_v20 = vld [vmem:[%s8598_s5 + $0x5] ss:$0 sm:$0xff] }
 0x23e   : > { %v4419_v56 = vadd.f32 %v4343_v16, %v4171_v53  ;;  %v3604_v37 = vadd.f32 %v3530_v35, %v3356_v59  ;;  %v3410_v48 = vmul.f32 %v8146_v19, %v8045_v3  ;;  %v4098_v34 = vsel %vm616_vm1, %v4096_v21, %v4097_v9  ;;  %v8201_v21 = vld [vmem:[#allocation2 + $0x170] sm:$0xff] }
 0x23f   : > { %v2963_v42 = vrot.slane %v2842_v40, 1  ;;  %v3325_v4 = vmul.f32 %v8154_v11, %v8023_v63  ;;  %v3658_v29 = vmul.f32 %v8161_v20, %v8045_v3  ;;  %v4346_v57 = vsel %vm865_vm2, %v4344_v13, %v4345_v30 }
 0x240   : > { %5186 = vmatmul.mubr.msk.f32.gmra.mxu1 %vm2147_vm3, %v4419_v56  ;;  %v3852_v24 = vadd.f32 %v3778_v41, %v3604_v37  ;;  %v3211_v18 = vrot.slane %v3090_v7, 2  ;;  %v3978_v10 = vmul.f32 %v7597_v8, %v8120_v32  ;;  %v3531_v52 = vrot.slane %v3410_v48, 1 }
 0x241   : > { %v2964_v49 = vsel %vm616_vm1, %v2961_v6, %v2963_v42  ;;  %v3779_v39 = vrot.slane %v3658_v29, 2  ;;  %v4226_v26 = vmul.f32 %v7606_v51, %v8120_v32  ;;  %v3893_v16 = vmul.f32 %v7616_v45, %v8091_v31  ;;  %v8224_v29 = vld [vmem:[%s8598_s5 + $0x6] ss:$0 sm:$0xff] }
 0x242   : > { %v3924_v27 = vadd.f32 %v3892_v15, %v3852_v24  ;;  %v3037_v43 = vadd.f32 %v2964_v49, %v2757_v14  ;;  %v3212_v23 = vsel %vm865_vm2, %v3209_v12, %v3211_v18  ;;  %v3532_v54 = vsel %vm616_vm1, %v3529_v55, %v3531_v52  ;;  %v8199_v15 = vld [vmem:[#allocation2 + $0x168] sm:$0xff] }
 0x243   : > { %v3780_v50 = vsel %vm865_vm2, %v3777_v5, %v3779_v39  ;;  %v4099_v2 = vrot.slane %v3978_v10, 1  ;;  %v2843_v8 = vmul.f32 %v8125_v58, %v8016_v36  ;;  %v4347_v38 = vrot.slane %v4226_v26, 2 }
 0x244   : > { %v4172_v6 = vadd.f32 %v4098_v34, %v3924_v27  ;;  %v3285_v0 = vadd.f32 %v3212_v23, %v3037_v43  ;;  %v8181_v51 = vmul.f32 %v8125_v58, %v8023_v63  ;;  %v2758_v12 = vmul.f32 %v8139_v33, %v8016_v36  ;;  %v8215_v34 = vld [vmem:[%s8598_s5 + $0x7] ss:$0 sm:$0xff] }
 0x245   : > { %v2965_v28 = vrot.slane %v2843_v8, 1  ;;  %v3091_v45 = vmul.f32 %v8132_v47, %v8016_v36  ;;  %v8189_v55 = vmul.f32 %v8132_v47, %v8023_v63  ;;  %v4100_v1 = vsel %vm616_vm1, %v4097_v9, %v4099_v2  ;;  %v8243_v8 = vld [vmem:[#allocation2 + $0x178] sm:$0x3] }
 0x246   : > { %v4420_v60 = vadd.f32 %v4346_v57, %v4172_v6  ;;  %v3357_v5 = vadd.f32 %v3325_v4, %v3285_v0  ;;  %v2966_v62 = vrot.slane %v8181_v51, 1  ;;  %v3411_v61 = vmul.f32 %v8146_v19, %v8089_v22  ;;  %v8231_v57 = vld [vmem:[%s8598_s5 + $0x8] ss:$0 sm:$0xff] }
 0x247   : > { %v3213_v25 = vrot.slane %v3091_v45, 2  ;;  %v3214_v17 = vrot.slane %v8189_v55, 2  ;;  %v3412_v44 = vmul.f32 %v8146_v19, %v8091_v31  ;;  %v3659_v46 = vmul.f32 %v8161_v20, %v8089_v22 }
 0x248   : > { %5188 = vmatprep.mubr.msk.f32.mxu1 %vm2147_vm3, %v4420_v60  ;;  %v3605_v36 = vadd.f32 %v3532_v54, %v3357_v5  ;;  %v2967_v9 = vsel %vm616_vm1, %v2965_v28, %v2966_v62  ;;  %v3660_v53 = vmul.f32 %v8161_v20, %v8091_v31  ;;  %v4348_v59 = vsel %vm865_vm2, %v4345_v30, %v4347_v38 }
 0x249   : > { %v3038_v35 = vadd.f32 %v2967_v9, %v2758_v12  ;;  %v3533_v13 = vrot.slane %v3411_v61, 1  ;;  %v3534_v41 = vrot.slane %v3412_v44, 1  ;;  %v3215_v7 = vsel %vm865_vm2, %v3213_v25, %v3214_v17 }
 0x24a   : > { %v3853_v40 = vadd.f32 %v3780_v50, %v3605_v36  ;;  %v3781_v56 = vrot.slane %v3659_v46, 2  ;;  %v3782_v37 = vrot.slane %v3660_v53, 2  ;;  %v3326_v48 = vmul.f32 %v8154_v11, %v8089_v22 }
 0x24b   : > { %v3286_v14 = vadd.f32 %v3215_v7, %v3038_v35  ;;  %v3979_v30 = vmul.f32 %v8215_v34, %v8199_v15  ;;  %v3980_v42 = vmul.f32 %v8215_v34, %v8201_v21  ;;  %v3894_v24 = vmul.f32 %v8224_v29, %v8199_v15 }
 0x24c   : > { %v3925_v4 = vadd.f32 %v3893_v16, %v3853_v40  ;;  %v4227_v18 = vmul.f32 %v8231_v57, %v8199_v15  ;;  %v4228_v10 = vmul.f32 %v8231_v57, %v8201_v21  ;;  %v3535_v52 = vsel %vm616_vm1, %v3533_v13, %v3534_v41 }
 0x24d   : > { %v3358_v49 = vadd.f32 %v3326_v48, %v3286_v14  ;;  %v4101_v39 = vrot.slane %v3979_v30, 1  ;;  %v4102_v26 = vrot.slane %v3980_v42, 1  ;;  %v3783_v43 = vsel %vm865_vm2, %v3781_v56, %v3782_v37 }
 0x24e   : > { %v4173_v27 = vadd.f32 %v4100_v1, %v3925_v4  ;;  %v2759_v23 = vmul.f32 %v8139_v33, %v8023_v63  ;;  %v2845_v16 = vmul.f32 %v8125_v58, %v8045_v3  ;;  %v4349_v50 = vrot.slane %v4227_v18, 2 }
 0x24f   : > { %v3606_v54 = vadd.f32 %v3535_v52, %v3358_v49  ;;  %v4350_v2 = vrot.slane %v4228_v10, 2  ;;  %v3093_v6 = vmul.f32 %v8132_v47, %v8045_v3  ;;  %v4103_v38 = vsel %vm616_vm1, %v4101_v39, %v4102_v26  ;;  %v8285_v49 = vld [vmem:[#allocation2 + $0x180] sm:$0xff] }
 0x250   : > { %v4421_v0 = vadd.f32 %v4348_v59, %v4173_v27  ;;  %v2968_v51 = vrot.slane %v2845_v16, 1  ;;  %v3413_v12 = vmul.f32 %v8146_v19, %v8120_v32  ;;  %v3327_v45 = vmul.f32 %v8154_v11, %v8091_v31 }
 0x251   : > { %v3854_v28 = vadd.f32 %v3783_v43, %v3606_v54  ;;  %v3216_v63 = vrot.slane %v3093_v6, 2  ;;  %v3661_v55 = vmul.f32 %v8161_v20, %v8120_v32  ;;  %v3981_v5 = vmul.f32 %v8215_v34, %v8243_v8 }
 0x252   : > { %5189 = vmatmul.mubr.msk.f32.gmra.mxu1 %vm2147_vm3, %v4421_v0  ;;  %v2969_v60 = vsel %vm616_vm1, %v2966_v62, %v2968_v51  ;;  %v3536_v3 = vrot.slane %v3413_v12, 1  ;;  %v4229_v1 = vmul.f32 %v8231_v57, %v8243_v8  ;;  %v4351_v61 = vsel %vm865_vm2, %v4349_v50, %v4350_v2 }
 0x253   : > { %v3926_v25 = vadd.f32 %v3894_v24, %v3854_v28  ;;  %v3039_v44 = vadd.f32 %v2969_v60, %v2759_v23  ;;  %v3895_v36 = vmul.f32 %v8224_v29, %v8201_v21  ;;  %v3217_v9 = vsel %vm865_vm2, %v3214_v17, %v3216_v63  ;;  %v8307_v60 = vpop.f32.mrf.mxu1 }
 0x254   : > { %v3537_v46 = vsel %vm616_vm1, %v3534_v41, %v3536_v3  ;;  %v3784_v53 = vrot.slane %v3661_v55, 2  ;;  %v4104_v62 = vrot.slane %v3981_v5, 1  ;;  %v4352_v13 = vrot.slane %v4229_v1, 2 }
 0x255   : > { %v4174_v59 = vadd.f32 %v4103_v38, %v3926_v25  ;;  %v3287_v35 = vadd.f32 %v3217_v9, %v3039_v44  ;;  %v2846_v40 = vmul.f32 %v8125_v58, %v8089_v22  ;;  %v2760_v56 = vmul.f32 %v8139_v33, %v8089_v22 }
 0x256   : > { %v3785_v7 = vsel %vm865_vm2, %v3782_v37, %v3784_v53  ;;  %v8272_v14 = vmul.f32 %v8125_v58, %v8091_v31  ;;  %v3094_v17 = vmul.f32 %v8132_v47, %v8089_v22  ;;  %v8278_v42 = vmul.f32 %v8132_v47, %v8091_v31  ;;  %v8287_v22 = vld [vmem:[#allocation2 + $0x188] sm:$0xff] }
 0x257   : > { %v4422_v41 = vadd.f32 %v4351_v61, %v4174_v59  ;;  %v3359_v48 = vadd.f32 %v3327_v45, %v3287_v35  ;;  %v2970_v30 = vrot.slane %v2846_v40, 1  ;;  %v4105_v4 = vsel %vm616_vm1, %v4102_v26, %v4104_v62  ;;  %v8318_v62 = vld [vmem:[#allocation2 + $0x190] sm:$0x3] }
 0x258   : > { %v2971_v37 = vrot.slane %v8272_v14, 1  ;;  %v3218_v24 = vrot.slane %v3094_v17, 2  ;;  %v3414_v18 = vmul.f32 %v8146_v19, %v8199_v15  ;;  %v3219_v52 = vrot.slane %v8278_v42, 2  ;;  %v8328_v14 = vpop.f32.mrf.mxu1 }
 0x259   : > { %5191 = vmatprep.mubr.msk.f32.mxu1 %vm2147_vm3, %v4422_v41  ;;  %v3607_v10 = vadd.f32 %v3537_v46, %v3359_v48  ;;  %v3415_v39 = vmul.f32 %v8146_v19, %v8201_v21  ;;  %v3662_v26 = vmul.f32 %v8161_v20, %v8199_v15  ;;  %v4353_v27 = vsel %vm865_vm2, %v4350_v2, %v4352_v13 }
 0x25a   : > { %v2972_v43 = vsel %vm616_vm1, %v2970_v30, %v2971_v37  ;;  %v3538_v23 = vrot.slane %v3414_v18, 1  ;;  %v3663_v16 = vmul.f32 %v8161_v20, %v8201_v21  ;;  %v3220_v6 = vsel %vm865_vm2, %v3218_v24, %v3219_v52  ;;  %v8339_v24 = vpop.f32.mrf.mxu1 }
 0x25b   : > { %v3855_v54 = vadd.f32 %v3785_v7, %v3607_v10  ;;  %v3040_v50 = vadd.f32 %v2972_v43, %v2760_v56  ;;  %v3539_v0 = vrot.slane %v3415_v39, 1  ;;  %v3786_v38 = vrot.slane %v3662_v26, 2 }
 0x25c   : > { %v3787_v51 = vrot.slane %v3663_v16, 2  ;;  %v3982_v12 = vmul.f32 %v8215_v34, %v8285_v49  ;;  %v3983_v28 = vmul.f32 %v8215_v34, %v8287_v22  ;;  %v3328_v45 = vmul.f32 %v8154_v11, %v8199_v15 }
 0x25d   : > { %v3927_v2 = vadd.f32 %v3895_v36, %v3855_v54  ;;  %v3288_v63 = vadd.f32 %v3220_v6, %v3040_v50  ;;  %v4230_v55 = vmul.f32 %v8231_v57, %v8285_v49  ;;  %v3896_v3 = vmul.f32 %v8224_v29, %v8285_v49 }
 0x25e   : > { %v4106_v5 = vrot.slane %v3982_v12, 1  ;;  %v4107_v1 = vrot.slane %v3983_v28, 1  ;;  %v8313_v25 = vmul.f32 %v8231_v57, %v8287_v22  ;;  %v3540_v36 = vsel %vm616_vm1, %v3538_v23, %v3539_v0 }
 0x25f   : > { %v4175_v61 = vadd.f32 %v4105_v4, %v3927_v2  ;;  %v3360_v44 = vadd.f32 %v3328_v45, %v3288_v63  ;;  %v4354_v9 = vrot.slane %v4230_v55, 2  ;;  %v3788_v46 = vsel %vm865_vm2, %v3786_v38, %v3787_v51  ;;  %v8355_v63 = vpop.f32.mrf.mxu1 }
 0x260   : > { %v4355_v53 = vrot.slane %v8313_v25, 2  ;;  %v2848_v59 = vmul.f32 %v8125_v58, %v8120_v32  ;;  %v3096_v35 = vmul.f32 %v8132_v47, %v8120_v32  ;;  %v2761_v7 = vmul.f32 %v8139_v33, %v8091_v31 }
 0x261   : > { %v4423_v13 = vadd.f32 %v4353_v27, %v4175_v61  ;;  %v3608_v40 = vadd.f32 %v3540_v36, %v3360_v44  ;;  %v3416_v56 = vmul.f32 %v8146_v19, %v8243_v8  ;;  %v4108_v17 = vsel %vm616_vm1, %v4106_v5, %v4107_v1 }
 0x262   : > { %v2973_v41 = vrot.slane %v2848_v59, 1  ;;  %v3329_v48 = vmul.f32 %v8154_v11, %v8201_v21  ;;  %v3664_v30 = vmul.f32 %v8161_v20, %v8243_v8  ;;  %v4356_v42 = vsel %vm865_vm2, %v4354_v9, %v4355_v53  ;;  %v2723_v59 = vld [vmem:[#allocation2 + $0x1a0] sm:$0xff] }
 0x263   : > { %5192 = vmatmul.mubr.msk.f32.gmra.mxu1 %vm2147_vm3, %v4423_v13  ;;  %v3856_v32 = vadd.f32 %v3788_v46, %v3608_v40  ;;  %v3221_v31 = vrot.slane %v3096_v35, 2  ;;  %v3984_v4 = vmul.f32 %v8215_v34, %v8318_v62  ;;  %v3541_v10 = vrot.slane %v3416_v56, 1  ;;  %v2722_v46 = vld [vmem:[#allocation2 + $0x198] sm:$0xff]  ;;  %v8382_v40 = vpop.f32.mrf.mxu1 }
 0x264   : > { %v2974_v18 = vsel %vm616_vm1, %v2971_v37, %v2973_v41  ;;  %v3789_v39 = vrot.slane %v3664_v30, 2  ;;  %v4232_v26 = vmul.f32 %v8231_v57, %v8318_v62  ;;  %v3897_v23 = vmul.f32 %v8224_v29, %v8287_v22 }
 0x265   : > { %v3928_v27 = vadd.f32 %v3896_v3, %v3856_v32  ;;  %v3041_v43 = vadd.f32 %v2974_v18, %v2761_v7  ;;  %v4109_v16 = vrot.slane %v3984_v4, 1  ;;  %v3222_v54 = vsel %vm865_vm2, %v3219_v52, %v3221_v31 }
 0x266   : > { %v3542_v50 = vsel %vm616_vm1, %v3539_v0, %v3541_v10  ;;  %v3790_v6 = vsel %vm865_vm2, %v3787_v51, %v3789_v39  ;;  %v2849_v37 = vmul.f32 %v8125_v58, %v8199_v15  ;;  %v4357_v28 = vrot.slane %v4232_v26, 2 }
 0x267   : > { %v4176_v38 = vadd.f32 %v4108_v17, %v3928_v27  ;;  %v3289_v12 = vadd.f32 %v3222_v54, %v3041_v43  ;;  %v8353_v2 = vmul.f32 %v8125_v58, %v8201_v21  ;;  %v2762_v45 = vmul.f32 %v8139_v33, %v8199_v15  ;;  %v4614_v43 = vpop.f32.mrf.mxu1 }
 0x268   : > { %v2975_v52 = vrot.slane %v2849_v37, 1  ;;  %v3097_v0 = vmul.f32 %v8132_v47, %v8199_v15  ;;  %v8363_v51 = vmul.f32 %v8132_v47, %v8201_v21  ;;  %v4110_v5 = vsel %vm616_vm1, %v4107_v1, %v4109_v16 }
 0x269   : > { %v4424_v55 = vadd.f32 %v4356_v42, %v4176_v38  ;;  %v3361_v3 = vadd.f32 %v3329_v48, %v3289_v12  ;;  %v2976_v25 = vrot.slane %v8353_v2, 1  ;;  %v3417_v36 = vmul.f32 %v8146_v19, %v8285_v49 }
 0x26a   : > { %v3223_v61 = vrot.slane %v3097_v0, 2  ;;  %v3224_v44 = vrot.slane %v8363_v51, 2  ;;  %v8372_v9 = vmul.f32 %v8146_v19, %v8287_v22  ;;  %v3665_v1 = vmul.f32 %v8161_v20, %v8285_v49 }
 0x26b   : > { %5194 = vmatprep.mubr.msk.f32.mxu1 %vm2147_vm3, %v4424_v55  ;;  %v3609_v15 = vadd.f32 %v3542_v50, %v3361_v3  ;;  %v2977_v35 = vsel %vm616_vm1, %v2975_v52, %v2976_v25  ;;  %v8380_v13 = vmul.f32 %v8161_v20, %v8287_v22  ;;  %v4358_v7 = vsel %vm865_vm2, %v4355_v53, %v4357_v28 }
 0x26c   : > { %v3042_v56 = vadd.f32 %v2977_v35, %v2762_v45  ;;  %v3543_v17 = vrot.slane %v3417_v36, 1  ;;  %v3544_v41 = vrot.slane %v8372_v9, 1  ;;  %v3225_v30 = vsel %vm865_vm2, %v3223_v61, %v3224_v44  ;;  %v2724_v45 = vld [vmem:[#allocation2 + $0x1a8] sm:$0x3] }
 0x26d   : > { %v3857_v48 = vadd.f32 %v3790_v6, %v3609_v15  ;;  %v3791_v32 = vrot.slane %v3665_v1, 2  ;;  %v3792_v42 = vrot.slane %v8380_v13, 2  ;;  %v3330_v4 = vmul.f32 %v8154_v11, %v8285_v49 }
 0x26e   : > { %v3290_v31 = vadd.f32 %v3225_v30, %v3042_v56  ;;  %v3985_v18 = vmul.f32 %v8215_v34, %v2722_v46  ;;  %v8394_v53 = vmul.f32 %v8215_v34, %v2723_v59  ;;  %v3898_v39 = vmul.f32 %v8224_v29, %v2722_v46 }
 0x26f   : > { %v3929_v10 = vadd.f32 %v3897_v23, %v3857_v48  ;;  %v4233_v26 = vmul.f32 %v8231_v57, %v2722_v46  ;;  %v8399_v27 = vmul.f32 %v8231_v57, %v2723_v59  ;;  %v3545_v54 = vsel %vm616_vm1, %v3543_v17, %v3544_v41 }
 0x270   : > { %v3362_v16 = vadd.f32 %v3330_v4, %v3290_v31  ;;  %v4111_v50 = vrot.slane %v3985_v18, 1  ;;  %v4112_v49 = vrot.slane %v8394_v53, 1  ;;  %v3793_v37 = vsel %vm865_vm2, %v3791_v32, %v3792_v42 }
 0x271   : > { %v4177_v6 = vadd.f32 %v4110_v5, %v3929_v10  ;;  %v2763_v23 = vmul.f32 %v8139_v33, %v8201_v21  ;;  %v2851_v38 = vmul.f32 %v8125_v58, %v8243_v8  ;;  %v4359_v28 = vrot.slane %v4233_v26, 2  ;;  %v5163_v21 = vpop.f32.mrf.mxu1 }
 0x272   : > { %v3610_v12 = vadd.f32 %v3545_v54, %v3362_v16  ;;  %v4360_v2 = vrot.slane %v8399_v27, 2  ;;  %v3099_v52 = vmul.f32 %v8132_v47, %v8243_v8  ;;  %v4113_v55 = vsel %vm616_vm1, %v4111_v50, %v4112_v49  ;;  %v8423_v47 = vld [vmem:[%s8600_s7] ss:$0 sm:$0xff] }
 0x273   : > { %v4425_v0 = vadd.f32 %v4358_v7, %v4177_v6  ;;  %v2978_v3 = vrot.slane %v2851_v38, 1  ;;  %v3419_v33 = vmul.f32 %v8146_v19, %v8318_v62  ;;  %v3331_v61 = vmul.f32 %v8154_v11, %v8287_v22  ;;  %v4624_v1 = vpop.f32.mrf.mxu1 }
 0x274   : > { %v3858_v58 = vadd.f32 %v3793_v37, %v3610_v12  ;;  %v3226_v5 = vrot.slane %v3099_v52, 2  ;;  %v3667_v36 = vmul.f32 %v8161_v20, %v8318_v62  ;;  %v3987_v19 = vmul.f32 %v8215_v34, %v2724_v45  ;;  %v8436_v62 = vld [vmem:[%s8601_s8] ss:$0 sm:$0xff] }
 0x275   : > { %5195 = vmatmul.mubr.msk.f32.gmra.mxu1 %vm2147_vm3, %v4425_v0  ;;  %v2979_v8 = vsel %vm616_vm1, %v2976_v25, %v2978_v3  ;;  %v3546_v9 = vrot.slane %v3419_v33, 1  ;;  %v4235_v15 = vmul.f32 %v8231_v57, %v2724_v45  ;;  %v4361_v11 = vsel %vm865_vm2, %v4359_v28, %v4360_v2 }
 0x276   : > { %v3930_v46 = vadd.f32 %v3898_v39, %v3858_v58  ;;  %v3043_v20 = vadd.f32 %v2979_v8, %v2763_v23  ;;  %v3794_v22 = vrot.slane %v3667_v36, 2  ;;  %v3227_v25 = vsel %vm865_vm2, %v3224_v44, %v3226_v5 }
 0x277   : > { %v3547_v34 = vsel %vm616_vm1, %v3544_v41, %v3546_v9  ;;  %v3899_v57 = vmul.f32 %v8224_v29, %v2723_v59  ;;  %v4761_v35 = vmul.f32 %v8307_v60, %v8423_v47  ;;  %v4114_v56 = vrot.slane %v3987_v19, 1 }
 0x278   : > { %v4178_v13 = vadd.f32 %v4113_v55, %v3930_v46  ;;  %v3291_v7 = vadd.f32 %v3227_v25, %v3043_v20  ;;  %v3795_v51 = vsel %vm865_vm2, %v3792_v42, %v3794_v22  ;;  %v4362_v44 = vrot.slane %v4235_v15, 2 }
 0x279   : > { %v4800_v17 = vadd.f32 %v8436_v62, %v4761_v35  ;;  %v4760_v29 = vmul.f32 %v8423_v47, %v8328_v14  ;;  %v4763_v41 = vmul.f32 %v8339_v24, %v8423_v47  ;;  %v4762_v48 = vmul.f32 %v8423_v47, %v8355_v63 }
 0x27a   : > { %v4426_v60 = vadd.f32 %v4361_v11, %v4178_v13  ;;  %v3363_v59 = vadd.f32 %v3331_v61, %v3291_v7  ;;  %v4765_v32 = vmul.f32 %v8382_v40, %v8423_v47  ;;  %v4764_v42 = vmul.f32 %v8423_v47, %v4614_v43 }
 0x27b   : > { %4833 = vst.msk [vmem:[%s8448_s29 + $0x8] sm:$0xff] %vm4831_vm5, %v4800_v17  ;;  %v4799_v30 = vadd.f32 %v8436_v62, %v4760_v29  ;;  %v4767_v14 = vmul.f32 %v5163_v21, %v8423_v47  ;;  %v5166_v31 = vpop.f32.mrf.mxu1  ;;  %v4802_v63 = vadd.f32 %v8436_v62, %v4763_v41  ;;  %v4801_v4 = vadd.f32 %v8436_v62, %v4762_v48 }
 0x27c   : > { %5197 = vmatprep.mubr.msk.f32.mxu1 %vm2147_vm3, %v4426_v60  ;;  %v3611_v24 = vadd.f32 %v3547_v34, %v3363_v59  ;;  %v4766_v18 = vmul.f32 %v8423_v47, %v4624_v1  ;;  %v4804_v40 = vadd.f32 %v8436_v62, %v4765_v32  ;;  %v4803_v10 = vadd.f32 %v8436_v62, %v4764_v42 }
 0x27d   : > { %4832 = vst.msk [vmem:[%s8448_s29] sm:$0xff] %vm4831_vm5, %v4799_v30  ;;  %v4806_v39 = vadd.f32 %v8436_v62, %v4767_v14  ;;  %v4769_v26 = vmul.f32 %v5166_v31, %v8423_v47  ;;  %v4634_v43 = vpop.f32.mrf.mxu1  ;;  %4835 = vst.msk [vmem:[%s8448_s29 + $0x18] sm:$0xff] %vm4831_vm5, %v4802_v63  ;;  %v4115_v6 = vsel %vm616_vm1, %v4112_v49, %v4114_v56 }
 0x27e   : > { %v3859_v16 = vadd.f32 %v3795_v51, %v3611_v24  ;;  %4834 = vst.msk [vmem:[%s8448_s29 + $0x10] sm:$0xff] %vm4831_vm5, %v4801_v4  ;;  %v4805_v54 = vadd.f32 %v8436_v62, %v4766_v18  ;;  %v4768_v50 = vmul.f32 %v8423_v47, %v4634_v43  ;;  %4837 = vst.msk [vmem:[%s8448_s29 + $0x28] sm:$0xff] %vm4831_vm5, %v4804_v40 }
 0x27f   : > { %4836 = vst.msk [vmem:[%s8448_s29 + $0x20] sm:$0xff] %vm4831_vm5, %v4803_v10  ;;  %4839 = vst.msk [vmem:[%s8448_s29 + $0x38] sm:$0xff] %vm4831_vm5, %v4806_v39  ;;  %v4808_v37 = vadd.f32 %v8436_v62, %v4769_v26  ;;  %v4363_v53 = vsel %vm865_vm2, %v4360_v2, %v4362_v44 }
 0x280   : > { %v3931_v23 = vadd.f32 %v3899_v57, %v3859_v16  ;;  %4838 = vst.msk [vmem:[%s8448_s29 + $0x30] sm:$0xff] %vm4831_vm5, %v4805_v54  ;;  %v4807_v38 = vadd.f32 %v8436_v62, %v4768_v50 }
 0x281   : > { %4841 = vst.msk [vmem:[%s8448_s29 + $0x48] sm:$0xff] %vm4831_vm5, %v4808_v37 }
 0x282   : > { %v4179_v49 = vadd.f32 %v4115_v6, %v3931_v23  ;;  %4840 = vst.msk [vmem:[%s8448_s29 + $0x40] sm:$0xff] %vm4831_vm5, %v4807_v38 }
 0x284   : > { %v4427_v12 = vadd.f32 %v4363_v53, %v4179_v49 }
 0x286   : > { %5198 = vmatmul.mubr.msk.f32.gmra.mxu1 %vm2147_vm3, %v4427_v12 }
 0x28f   : > { %v5169_v28 = vpop.f32.mrf.mxu1 }
 0x290   : > { %v4771_v45 = vmul.f32 %v5169_v28, %v8423_v47 }
 0x291   : > { %v4644_v52 = vpop.f32.mrf.mxu1 }
 0x292   : > { %v4810_v0 = vadd.f32 %v8436_v62, %v4771_v45  ;;  %v4770_v27 = vmul.f32 %v8423_v47, %v4644_v52 }
 0x294   : > { %4843 = vst.msk [vmem:[%s8448_s29 + $0x58] sm:$0xff] %vm4831_vm5, %v4810_v0  ;;  %v4809_v2 = vadd.f32 %v8436_v62, %v4770_v27 }
 0x296   : > { %4842 = vst.msk [vmem:[%s8448_s29 + $0x50] sm:$0xff] %vm4831_vm5, %v4809_v2 }
 0x2a1   : > { %v5172_v55 = vpop.f32.mrf.mxu1 }
 0x2a2   : > { %v4773_v3 = vmul.f32 %v5172_v55, %v8423_v47 }
 0x2a3   : > { %v4654_v33 = vpop.f32.mrf.mxu1 }
 0x2a4   : > { %v4812_v21 = vadd.f32 %v8436_v62, %v4773_v3  ;;  %v4772_v58 = vmul.f32 %v8423_v47, %v4654_v33 }
 0x2a6   : > { %4845 = vst.msk [vmem:[%s8448_s29 + $0x68] sm:$0xff] %vm4831_vm5, %v4812_v21  ;;  %v4811_v5 = vadd.f32 %v8436_v62, %v4772_v58 }
 0x2a8   : > { %4844 = vst.msk [vmem:[%s8448_s29 + $0x60] sm:$0xff] %vm4831_vm5, %v4811_v5 }
 0x2b5   : > { %v5175_v61 = vpop.f32.mrf.mxu1 }
 0x2b6   : > { %v4775_v36 = vmul.f32 %v5175_v61, %v8423_v47 }
 0x2b7   : > { %v4664_v8 = vpop.f32.mrf.mxu1 }
 0x2b8   : > { %v4814_v9 = vadd.f32 %v8436_v62, %v4775_v36  ;;  %v4774_v19 = vmul.f32 %v8423_v47, %v4664_v8 }
 0x2ba   : > { %4847 = vst.msk [vmem:[%s8448_s29 + $0x78] sm:$0xff] %vm4831_vm5, %v4814_v9  ;;  %v4813_v15 = vadd.f32 %v8436_v62, %v4774_v19 }
 0x2bc   : > { %4846 = vst.msk [vmem:[%s8448_s29 + $0x70] sm:$0xff] %vm4831_vm5, %v4813_v15 }
 0x2c8   : > { %v5178_v46 = vpop.f32.mrf.mxu1 }
 0x2c9   : > { %v4777_v11 = vmul.f32 %v5178_v46, %v8423_v47 }
 0x2ca   : > { %v4674_v20 = vpop.f32.mrf.mxu1 }
 0x2cb   : > { %v4816_v22 = vadd.f32 %v8436_v62, %v4777_v11  ;;  %v4776_v25 = vmul.f32 %v8423_v47, %v4674_v20 }
 0x2cd   : > { %4849 = vst.msk [vmem:[%s8448_s29 + $0x88] sm:$0xff] %vm4831_vm5, %v4816_v22  ;;  %v4815_v34 = vadd.f32 %v8436_v62, %v4776_v25 }
 0x2cf   : > { %4848 = vst.msk [vmem:[%s8448_s29 + $0x80] sm:$0xff] %vm4831_vm5, %v4815_v34 }
 0x2dc   : > { %v5181_v57 = vpop.f32.mrf.mxu1 }
 0x2dd   : > { %v4779_v35 = vmul.f32 %v5181_v57, %v8423_v47 }
 0x2de   : > { %v4684_v1 = vpop.f32.mrf.mxu1 }
 0x2df   : > { %v4818_v13 = vadd.f32 %v8436_v62, %v4779_v35  ;;  %v4778_v7 = vmul.f32 %v8423_v47, %v4684_v1 }
 0x2e1   : > { %4851 = vst.msk [vmem:[%s8448_s29 + $0x98] sm:$0xff] %vm4831_vm5, %v4818_v13  ;;  %v4817_v56 = vadd.f32 %v8436_v62, %v4778_v7 }
 0x2e3   : > { %4850 = vst.msk [vmem:[%s8448_s29 + $0x90] sm:$0xff] %vm4831_vm5, %v4817_v56 }
 0x2ee   : > { %v5184_v51 = vpop.f32.mrf.mxu1 }
 0x2ef   : > { %v4781_v44 = vmul.f32 %v5184_v51, %v8423_v47 }
 0x2f0   : > { %v4694_v17 = vpop.f32.mrf.mxu1 }
 0x2f1   : > { %v4820_v29 = vadd.f32 %v8436_v62, %v4781_v44  ;;  %v4780_v60 = vmul.f32 %v8423_v47, %v4694_v17 }
 0x2f3   : > { %4853 = vst.msk [vmem:[%s8448_s29 + $0xa8] sm:$0xff] %vm4831_vm5, %v4820_v29  ;;  %v4819_v59 = vadd.f32 %v8436_v62, %v4780_v60 }
 0x2f5   : > { %4852 = vst.msk [vmem:[%s8448_s29 + $0xa0] sm:$0xff] %vm4831_vm5, %v4819_v59 }
 0x300   : > { %v5187_v41 = vpop.f32.mrf.mxu1 }
 0x301   : > { %v4783_v48 = vmul.f32 %v5187_v41, %v8423_v47 }
 0x302   : > { %v4704_v30 = vpop.f32.mrf.mxu1 }
 0x303   : > { %v4822_v32 = vadd.f32 %v8436_v62, %v4783_v48  ;;  %v4782_v42 = vmul.f32 %v8423_v47, %v4704_v30 }
 0x305   : > { %4855 = vst.msk [vmem:[%s8448_s29 + $0xb8] sm:$0xff] %vm4831_vm5, %v4822_v32  ;;  %v4821_v14 = vadd.f32 %v8436_v62, %v4782_v42 }
 0x307   : > { %4854 = vst.msk [vmem:[%s8448_s29 + $0xb0] sm:$0xff] %vm4831_vm5, %v4821_v14 }
 0x312   : > { %v5190_v31 = vpop.f32.mrf.mxu1 }
 0x313   : > { %v4785_v24 = vmul.f32 %v5190_v31, %v8423_v47 }
 0x314   : > { %v4714_v63 = vpop.f32.mrf.mxu1 }
 0x315   : > { %v4824_v4 = vadd.f32 %v8436_v62, %v4785_v24  ;;  %v4784_v18 = vmul.f32 %v8423_v47, %v4714_v63 }
 0x317   : > { %4857 = vst.msk [vmem:[%s8448_s29 + $0xc8] sm:$0xff] %vm4831_vm5, %v4824_v4  ;;  %v4823_v40 = vadd.f32 %v8436_v62, %v4784_v18 }
 0x319   : > { %4856 = vst.msk [vmem:[%s8448_s29 + $0xc0] sm:$0xff] %vm4831_vm5, %v4823_v40 }
 0x323   : > { %v5193_v10 = vpop.f32.mrf.mxu1 }
 0x324   : > { %v4787_v39 = vmul.f32 %v5193_v10, %v8423_v47 }
 0x325   : > { %v4724_v26 = vpop.f32.mrf.mxu1 }
 0x326   : > { %v4826_v43 = vadd.f32 %v8436_v62, %v4787_v39  ;;  %v4786_v16 = vmul.f32 %v8423_v47, %v4724_v26 }
 0x328   : > { %4859 = vst.msk [vmem:[%s8448_s29 + $0xd8] sm:$0xff] %vm4831_vm5, %v4826_v43  ;;  %v4825_v54 = vadd.f32 %v8436_v62, %v4786_v16 }
 0x32a   : > { %4858 = vst.msk [vmem:[%s8448_s29 + $0xd0] sm:$0xff] %vm4831_vm5, %v4825_v54 }
 0x335   : > { %v5196_v50 = vpop.f32.mrf.mxu1 }
 0x336   : > { %v4789_v6 = vmul.f32 %v5196_v50, %v8423_v47 }
 0x337   : > { %v4734_v37 = vpop.f32.mrf.mxu1 }
 0x338   : > { %v4828_v23 = vadd.f32 %v8436_v62, %v4789_v6  ;;  %v4788_v38 = vmul.f32 %v8423_v47, %v4734_v37 }
 0x33a   : > { %4861 = vst.msk [vmem:[%s8448_s29 + $0xe8] sm:$0xff] %vm4831_vm5, %v4828_v23  ;;  %v4827_v53 = vadd.f32 %v8436_v62, %v4788_v38 }
 0x33c   : > { %4860 = vst.msk [vmem:[%s8448_s29 + $0xe0] sm:$0xff] %vm4831_vm5, %v4827_v53 }
 0x346   : > { %v5199_v49 = vpop.f32.mrf.mxu1 }
 0x347   : > { %v4791_v12 = vmul.f32 %v5199_v49, %v8423_v47 }
 0x348   : > { %v4744_v28 = vpop.f32.mrf.mxu1 }
 0x349   : > { %v4830_v45 = vadd.f32 %v8436_v62, %v4791_v12  ;;  %v4790_v52 = vmul.f32 %v8423_v47, %v4744_v28 }
 0x34b   : > { %4863 = vst.msk [vmem:[%s8448_s29 + $0xf8] sm:$0xff] %vm4831_vm5, %v4830_v45  ;;  %v4829_v0 = vadd.f32 %v8436_v62, %v4790_v52 }
 0x34d   : > { %4862 = vst.msk [vmem:[%s8448_s29 + $0xf0] sm:$0xff] %vm4831_vm5, %v4829_v0 }
 0x34e PF: > { %s19_s30 = sadd.s32 1, %s5254_s30  }
 0x34f   : > { %p16_p4 = scmp.ge.s32.totalorder %s19_s30, 4  }
 0x351   :  { %18 = sbr.rel (!%p16_p4) target bundleno = 1 (0x1), region = 103 }

</bundles_post_ra>
